<compile_context>
chip_gen: v7x
topology: tpu7x:2x2x1
jax: 0.10.0
libtpu: 0.0.40
codegen_flags: <defaults>
</compile_context>

<pallas_src>
import functools

import jax
import jax.numpy as jnp
import numpy as np
from jax.experimental import pallas as pl
from jax.experimental.pallas import tpu as pltpu


def _phase_shift(r, d):
    """Full-res row y = 2q + r read at kernel tap d (pad=1) lives in low-res phase
    k = (r+d-1) % 2 at low-res shift (r+d-1) // 2  (shift in {-1, 0, +1})."""
    a = r + d - 1
    return a % 2, a // 2


# ------------------------------ fused kernel --------------------------------------

def _fused_upconvblock_kernel(x_ref, br_ref, mask_ref, wup_ref, bup_ref,
                              w1_ref, b1_ref, w2_ref, b2_ref,
                              o_ref, u_ref, h1_ref, slab_ref, *, H, W):
    # x_ref    : (1, Cin, H*Wlp)     x rows zero-padded to width Wlp=W+2, flattened.
    # br_ref   : (1, 4, Cb, Llp)     bridge phase images, padded (H+3, Wlp), flattened.
    # mask_ref : (1, Ml) f32         1 where lane's column < W, else 0 (junk columns).
    # wup_ref  : (4*Cu, Cin)         ConvTranspose taps, rows ordered (kh, kw, co).
    # w1_ref   : (Co, 9*(Cu+Cb))     conv1 weights, cols ordered [up taps | bridge taps].
    # w2_ref   : (Co, 9*Co)          conv2 weights.
    # o_ref    : (1, 4, Co, Ml)      output phase slabs (phase = rh*2 + rw).
    # u_ref    : (4, Cu, Llp)        scratch: padded `up` phase images (compute dtype).
    # h1_ref   : (4, Co, Llp)        scratch: padded conv1 phase images (compute dtype).
    # slab_ref : (Kmax, Ml)          scratch: im2col slab (compute dtype).
    Wlp = W + 2
    Ml = H * Wlp
    cdt = u_ref.dtype
    Cu = u_ref.shape[1]
    Cb = br_ref.shape[2]
    Co = o_ref.shape[2]
    K1 = 9 * (Cu + Cb)
    K2 = 9 * Co

    mask = mask_ref[...]                                   # (1, Ml) f32

    # ---- stage 1: ConvTranspose2d(k=2, s=2) -> 4 `up` phase images, kept in VMEM ----
    taps = jnp.dot(wup_ref[...], x_ref[0], preferred_element_type=jnp.float32)
    taps = (taps + bup_ref[...]) * mask                    # f32 epilogue, junk cols -> 0
    taps = taps.astype(cdt)                                # single narrowing cast
    zu = jnp.zeros((Cu, 2 * Wlp), cdt)
    for t in range(4):                                     # t = kh*2 + kw
        # zero only the pad rows (top / bottom); the data region is overwritten below
        # and the masked store keeps left/right pad columns at zero.  Megacore-safe.
        u_ref[t, :, pl.ds(0, 2 * Wlp)] = zu
        u_ref[t, :, pl.ds((H + 1) * Wlp, 2 * Wlp)] = zu
        u_ref[t, :, pl.ds(Wlp + 1, Ml)] = taps[t * Cu:(t + 1) * Cu, :]

    # ---- stage 2: conv3x3(concat(up, bridge)) + ReLU, phase-decomposed --------------
    zo = jnp.zeros((Co, 2 * Wlp), cdt)
    for rh in range(2):
        for rw in range(2):
            r = rh * 2 + rw
            # build the (9*(Cu+Cb), Ml) im2col slab for this output phase
            for dh in range(3):
                kh, sh = _phase_shift(rh, dh)
                for dw in range(3):
                    kw, sw = _phase_shift(rw, dw)
                    t = dh * 3 + dw
                    ph = kh * 2 + kw
                    off = (1 + sh) * Wlp + (1 + sw)
                    slab_ref[pl.ds(t * Cu, Cu), :] = u_ref[ph, :, pl.ds(off, Ml)]
                    slab_ref[pl.ds(9 * Cu + t * Cb, Cb), :] = \
                        br_ref[0, ph, :, pl.ds(off, Ml)]
            # ONE big-K MXU matmul, f32 accumulator drained once
            h1 = jnp.dot(w1_ref[...], slab_ref[pl.ds(0, K1), :],
                         preferred_element_type=jnp.float32)
            h1 = jnp.maximum(h1 + b1_ref[...], 0.0) * mask  # f32 epilogue + junk mask
            h1_ref[r, :, pl.ds(0, 2 * Wlp)] = zo
            h1_ref[r, :, pl.ds((H + 1) * Wlp, 2 * Wlp)] = zo
            h1_ref[r, :, pl.ds(Wlp + 1, Ml)] = h1.astype(cdt)

    # ---- stage 3: conv3x3 + ReLU on the VMEM-resident conv1 phases -------------------
    for rh in range(2):
        for rw in range(2):
            r = rh * 2 + rw
            for dh in range(3):
                kh, sh = _phase_shift(rh, dh)
                for dw in range(3):
                    kw, sw = _phase_shift(rw, dw)
                    t = dh * 3 + dw
                    ph = kh * 2 + kw
                    off = (1 + sh) * Wlp + (1 + sw)
                    slab_ref[pl.ds(t * Co, Co), :] = h1_ref[ph, :, pl.ds(off, Ml)]
            h2 = jnp.dot(w2_ref[...], slab_ref[pl.ds(0, K2), :],
                         preferred_element_type=jnp.float32)
            h2 = jnp.maximum(h2 + b2_ref[...], 0.0)
            o_ref[0, r] = h2.astype(o_ref.dtype)           # junk cols cropped by wrapper


def fused_upconvblock(x_wide, br_ph, mask, wup, bup, w1, b1, w2, b2, *, H, W, out_dtype):
    N, Cin, _ = x_wide.shape
    Cb = br_ph.shape[2]
    Cu = bup.shape[0] // 4
    Co = w1.shape[0]
    Wlp = W + 2
    Llp = (H + 3) * Wlp
    Ml = H * Wlp
    K1 = 9 * (Cu + Cb)
    K2 = 9 * Co
    Kmax = max(K1, K2)
    assert w1.shape[1] == K1 and w2.shape[1] == K2
    assert br_ph.shape == (N, 4, Cb, Llp)

    kern = functools.partial(_fused_upconvblock_kernel, H=H, W=W)
    return pl.pallas_call(
        kern,
        out_shape=jax.ShapeDtypeStruct((N, 4, Co, Ml), out_dtype),
        grid_spec=pltpu.PrefetchScalarGridSpec(
            num_scalar_prefetch=0,
            grid=(N,),
            in_specs=[
                pl.BlockSpec((1, Cin, Ml), lambda n: (n, 0, 0)),
                pl.BlockSpec((1, 4, Cb, Llp), lambda n: (n, 0, 0, 0)),
                pl.BlockSpec((1, Ml), lambda n: (0, 0)),
                pl.BlockSpec((4 * Cu, Cin), lambda n: (0, 0)),
                pl.BlockSpec((4 * Cu, 1), lambda n: (0, 0)),
                pl.BlockSpec((Co, K1), lambda n: (0, 0)),
                pl.BlockSpec((Co, 1), lambda n: (0, 0)),
                pl.BlockSpec((Co, K2), lambda n: (0, 0)),
                pl.BlockSpec((Co, 1), lambda n: (0, 0)),
            ],
            out_specs=pl.BlockSpec((1, 4, Co, Ml), lambda n: (n, 0, 0, 0)),
            scratch_shapes=[
                pltpu.VMEM((4, Cu, Llp), x_wide.dtype),   # `up` phase images
                pltpu.VMEM((4, Co, Llp), x_wide.dtype),   # conv1 phase images
                pltpu.VMEM((Kmax, Ml), x_wide.dtype),     # im2col slab
            ],
        ),
        compiler_params=pltpu.CompilerParams(dimension_semantics=("parallel",)),
    )(x_wide, br_ph, mask, wup, bup, w1, b1, w2, b2)


# ------------------------- weight pre-pack (once per module) -----------------------

def prepare_params(params, compute_dtype):
    """Pack all weight relayouts / casts once, outside the per-call path."""
    cdt = compute_dtype
    Cin, Cout = params["up_w"].shape[:2]
    w1 = params["w1"]
    Co = w1.shape[0]
    Cu, Cb = Cout, w1.shape[1] - Cout
    # ConvTranspose taps: rows ordered (kh, kw, co)
    wup = jnp.transpose(params["up_w"], (2, 3, 1, 0)).reshape(4 * Cout, Cin).astype(cdt)
    bup = jnp.tile(params["up_b"], 4).reshape(4 * Cout, 1).astype(jnp.float32)
    # conv1: big-K layout, columns ordered [up taps (t-major, c-minor) | bridge taps]
    w1u = jnp.transpose(w1[:, :Cu], (0, 2, 3, 1)).reshape(Co, 9 * Cu)
    w1b = jnp.transpose(w1[:, Cu:], (0, 2, 3, 1)).reshape(Co, 9 * Cb)
    w1big = jnp.concatenate([w1u, w1b], axis=1).astype(cdt)
    b1 = params["b1"].reshape(Co, 1).astype(jnp.float32)
    w2big = jnp.transpose(params["w2"], (0, 2, 3, 1)).reshape(Co, 9 * Co).astype(cdt)
    b2 = params["b2"].reshape(Co, 1).astype(jnp.float32)
    return {"wup": wup, "bup": bup, "w1": w1big, "b1": b1, "w2": w2big, "b2": b2}


# ------------------------- module forward (light glue + kernel) --------------------

def up_conv_block_forward(x_nchw, bridge_nchw, prep, compute_dtype=jnp.bfloat16):
    cdt = compute_dtype
    N, Cin, H, W = x_nchw.shape
    Cu = prep["bup"].shape[0] // 4
    Co = prep["w1"].shape[0]
    Cb = prep["w1"].shape[1] // 9 - Cu
    Ho, Wo = 2 * H, 2 * W
    Wlp = W + 2
    Llp = (H + 3) * Wlp
    Ml = H * Wlp

    # x rows zero-padded to Wlp and flattened (small single XLA pass over x)
    x_wide = jnp.pad(x_nchw, ((0, 0), (0, 0), (0, 0), (0, 2))) \
                .reshape(N, Cin, Ml).astype(cdt)

    # bridge: crop -> phase split -> pad(1 top,2 bot,1 l,1 r) -> flatten (one XLA pass)
    Hb, Wb = bridge_nchw.shape[2], bridge_nchw.shape[3]
    dy, dx = (Hb - Ho) // 2, (Wb - Wo) // 2
    crop1 = bridge_nchw[:, :, dy:dy + Ho, dx:dx + Wo]
    br = crop1.reshape(N, Cb, H, 2, W, 2).transpose(0, 3, 5, 1, 2, 4)  # (N,2,2,Cb,H,W)
    br = jnp.pad(br, ((0, 0), (0, 0), (0, 0), (0, 0), (1, 2), (1, 1)))
    br_ph = br.reshape(N, 4, Cb, Llp).astype(cdt)

    # junk-column mask, baked as a compile-time constant (item 11)
    mask = jnp.asarray((np.arange(Ml) % Wlp < W).astype(np.float32)).reshape(1, Ml)

    out_ph = fused_upconvblock(x_wide, br_ph, mask, prep["wup"], prep["bup"],
                               prep["w1"], prep["b1"], prep["w2"], prep["b2"],
                               H=H, W=W, out_dtype=cdt)

    # single phase-interleave of the output (one XLA layout pass on the writeback data)
    out = (out_ph.reshape(N, 2, 2, Co, H, Wlp)[..., :W]
                 .transpose(0, 3, 4, 1, 5, 2)
                 .reshape(N, Co, Ho, Wo))
    return out


# ------------------------- pure-JAX reference (NCHW, f32) --------------------------

def ref_forward(x, bridge, params):
    hp = jax.lax.Precision.HIGHEST
    y = jnp.einsum("ncij,cokl->noikjl", x, params["up_w"], precision=hp)
    N, Co, H, _, W, _ = y.shape
    up = y.reshape(N, Co, 2 * H, 2 * W) + params["up_b"][None, :, None, None]

    Hb, Wb = bridge.shape[2:]
    th, tw = up.shape[2], up.shape[3]
    dy, dx = (Hb - th) // 2, (Wb - tw) // 2
    crop1 = bridge[:, :, dy:dy + th, dx:dx + tw]
    out = jnp.concatenate([up, crop1], axis=1)

    def conv(z, w, bb):
        z = jax.lax.conv_general_dilated(
            z, w, (1, 1), ((1, 1), (1, 1)),
            dimension_numbers=("NCHW", "OIHW", "NCHW"), precision=hp)
        return jax.nn.relu(z + bb[None, :, None, None])

    out = conv(out, params["w1"], params["b1"])
    out = conv(out, params["w2"], params["b2"])
    return out


# ------------------------- parameter init ------------------------------------------

def init_params(key, in_ch, out_ch):
    ks = jax.random.split(key, 6)
    s = 0.1
    return {
        "up_w": s * jax.random.normal(ks[0], (in_ch, out_ch, 2, 2), jnp.float32),
        "up_b": s * jax.random.normal(ks[1], (out_ch,), jnp.float32),
        "w1":   s * jax.random.normal(ks[2], (out_ch, in_ch, 3, 3), jnp.float32),
        "b1":   s * jax.random.normal(ks[3], (out_ch,), jnp.float32),
        "w2":   s * jax.random.normal(ks[4], (out_ch, out_ch, 3, 3), jnp.float32),
        "b2":   s * jax.random.normal(ks[5], (out_ch,), jnp.float32),
    }


if __name__ == "__main__":
    in_channels, out_channels = 8, 4
    key = jax.random.PRNGKey(0)
    kx, kb, kp = jax.random.split(key, 3)

    # x: decoder feature map (NCHW); bridge: skip-connection feature map (larger spatial)
    x = jax.random.normal(kx, (2, in_channels, 8, 8), jnp.float32)
    bridge = jax.random.normal(kb, (2, out_channels, 20, 20), jnp.float32)
    params = init_params(kp, in_channels, out_channels)

    ref = ref_forward(x, bridge, params)

    # exactness check: f32 operands everywhere
    prep_f32 = prepare_params(params, jnp.float32)
    fwd_f32 = jax.jit(functools.partial(up_conv_block_forward,
                                        compute_dtype=jnp.float32))
    out_f32 = fwd_f32(x, bridge, prep_f32)
    jax.block_until_ready(out_f32)
    assert out_f32.shape == ref.shape == (2, out_channels, 16, 16), (out_f32.shape,)
    np.testing.assert_allclose(np.asarray(out_f32), np.asarray(ref),
                               rtol=5e-3, atol=5e-3)

    # perf path: bf16 MXU operands / bf16 activation scratch, f32 accumulation
    prep_bf16 = prepare_params(params, jnp.bfloat16)
    fwd_bf16 = jax.jit(functools.partial(up_conv_block_forward,
                                         compute_dtype=jnp.bfloat16))
    out_bf16 = fwd_bf16(x, bridge, prep_bf16)
    jax.block_until_ready(out_bf16)
    assert out_bf16.shape == ref.shape
    np.testing.assert_allclose(np.asarray(out_bf16.astype(jnp.float32)),
                               np.asarray(ref), rtol=2e-2, atol=2e-2)

    print("KERNEL_OK")
</pallas_src>

<mosaic_0001>
module attributes {stable_mosaic.version = 11 : i64} {
  func.func @_fused_upconvblock_kernel(%arg0: i32, %arg1: memref<1x8x80xf32, #tpu.memory_space<vmem>>, %arg2: memref<1x4x4x110xf32, #tpu.memory_space<vmem>>, %arg3: memref<1x80xf32, #tpu.memory_space<vmem>>, %arg4: memref<16x8xf32, #tpu.memory_space<vmem>>, %arg5: memref<16x1xf32, #tpu.memory_space<vmem>>, %arg6: memref<4x72xf32, #tpu.memory_space<vmem>>, %arg7: memref<4x1xf32, #tpu.memory_space<vmem>>, %arg8: memref<4x36xf32, #tpu.memory_space<vmem>>, %arg9: memref<4x1xf32, #tpu.memory_space<vmem>>, %arg10: memref<1x4x4x80xf32, #tpu.memory_space<vmem>>, %arg11: memref<4x4x110xf32, #tpu.memory_space<vmem>>, %arg12: memref<4x4x110xf32, #tpu.memory_space<vmem>>, %arg13: memref<72x80xf32, #tpu.memory_space<vmem>>) attributes {dimension_semantics = [#tpu.dimension_semantics<parallel>], iteration_bounds = array<i64: 2>, scalar_prefetch = 0 : i64, scratch_operands = 3 : i64, tpu.core_type = #tpu.core_type<tc>, window_params = [{transform_indices = @transform_0, window_bounds = array<i64: 1, 8, 80>}, {transform_indices = @transform_1, window_bounds = array<i64: 1, 4, 4, 110>}, {pipeline_mode = #tpu.pipeline_mode<synchronous>, transform_indices = @transform_2, window_bounds = array<i64: 1, 80>}, {pipeline_mode = #tpu.pipeline_mode<synchronous>, transform_indices = @transform_3, window_bounds = array<i64: 16, 8>}, {pipeline_mode = #tpu.pipeline_mode<synchronous>, transform_indices = @transform_4, window_bounds = array<i64: 16, 1>}, {pipeline_mode = #tpu.pipeline_mode<synchronous>, transform_indices = @transform_5, window_bounds = array<i64: 4, 72>}, {pipeline_mode = #tpu.pipeline_mode<synchronous>, transform_indices = @transform_6, window_bounds = array<i64: 4, 1>}, {pipeline_mode = #tpu.pipeline_mode<synchronous>, transform_indices = @transform_7, window_bounds = array<i64: 4, 36>}, {pipeline_mode = #tpu.pipeline_mode<synchronous>, transform_indices = @transform_8, window_bounds = array<i64: 4, 1>}, {transform_indices = @transform_9, window_bounds = array<i64: 1, 4, 4, 80>}]} {
    %c0 = arith.constant 0 : index
    %c0_0 = arith.constant 0 : index
    %0 = vector.load %arg3[%c0, %c0_0] : memref<1x80xf32, #tpu.memory_space<vmem>>, vector<1x80xf32>
    %c0_1 = arith.constant 0 : index
    %c0_2 = arith.constant 0 : index
    %1 = vector.load %arg4[%c0_1, %c0_2] : memref<16x8xf32, #tpu.memory_space<vmem>>, vector<16x8xf32>
    %c0_3 = arith.constant 0 : index
    %c0_4 = arith.constant 0 : index
    %c0_5 = arith.constant 0 : index
    %2 = vector.load %arg1[%c0_3, %c0_4, %c0_5] : memref<1x8x80xf32, #tpu.memory_space<vmem>>, vector<1x8x80xf32>
    %3 = vector.shape_cast %2 : vector<1x8x80xf32> to vector<8x80xf32>
    %cst = arith.constant dense<0.000000e+00> : vector<16x80xf32>
    %4 = tpu.matmul %1, %3, %cst {dimension_numbers = #tpu.dot_dimension_numbers<[1], [0], [0], [1], [0, 0, 1, 1], [], []>} : vector<16x8xf32>, vector<8x80xf32>, vector<16x80xf32> -> vector<16x80xf32>
    %c0_6 = arith.constant 0 : index
    %c0_7 = arith.constant 0 : index
    %5 = vector.load %arg5[%c0_6, %c0_7] : memref<16x1xf32, #tpu.memory_space<vmem>>, vector<16x1xf32>
    %6 = vector.broadcast %5 : vector<16x1xf32> to vector<16x80xf32>
    %7 = arith.addf %4, %6 : vector<16x80xf32>
    %8 = vector.broadcast %0 : vector<1x80xf32> to vector<16x80xf32>
    %9 = arith.mulf %7, %8 : vector<16x80xf32>
    %cst_8 = arith.constant 0.000000e+00 : f32
    %10 = vector.broadcast %cst_8 : f32 to vector<4x20xf32>
    %c0_9 = arith.constant 0 : index
    %c0_10 = arith.constant 0 : index
    %c0_11 = arith.constant 0 : index
    %11 = vector.load %arg11[%c0_9, %c0_10, %c0_11] : memref<4x4x110xf32, #tpu.memory_space<vmem>>, vector<1x4x20xf32>
    %12 = vector.shape_cast %11 : vector<1x4x20xf32> to vector<4x20xf32>
    %13 = vector.shape_cast %10 : vector<4x20xf32> to vector<1x4x20xf32>
    tpu.vector_store %arg11[%c0_9, %c0_10, %c0_11], %13 {strides = array<i32>} : memref<4x4x110xf32, #tpu.memory_space<vmem>>, vector<1x4x20xf32>,
    %c0_12 = arith.constant 0 : index
    %c0_13 = arith.constant 0 : index
    %c90 = arith.constant 90 : index
    %14 = vector.load %arg11[%c0_12, %c0_13, %c90] : memref<4x4x110xf32, #tpu.memory_space<vmem>>, vector<1x4x20xf32>
    %15 = vector.shape_cast %14 : vector<1x4x20xf32> to vector<4x20xf32>
    %16 = vector.shape_cast %10 : vector<4x20xf32> to vector<1x4x20xf32>
    tpu.vector_store %arg11[%c0_12, %c0_13, %c90], %16 {strides = array<i32>} : memref<4x4x110xf32, #tpu.memory_space<vmem>>, vector<1x4x20xf32>,
    %17 = vector.extract_strided_slice %9 {offsets = [0, 0], sizes = [4, 80], strides = [1, 1]} : vector<16x80xf32> to vector<4x80xf32>
    %c0_14 = arith.constant 0 : index
    %c0_15 = arith.constant 0 : index
    %c11 = arith.constant 11 : index
    %18 = vector.load %arg11[%c0_14, %c0_15, %c11] : memref<4x4x110xf32, #tpu.memory_space<vmem>>, vector<1x4x80xf32>
    %19 = vector.shape_cast %18 : vector<1x4x80xf32> to vector<4x80xf32>
    %20 = vector.shape_cast %17 : vector<4x80xf32> to vector<1x4x80xf32>
    tpu.vector_store %arg11[%c0_14, %c0_15, %c11], %20 {strides = array<i32>} : memref<4x4x110xf32, #tpu.memory_space<vmem>>, vector<1x4x80xf32>,
    %c1 = arith.constant 1 : index
    %c0_16 = arith.constant 0 : index
    %c0_17 = arith.constant 0 : index
    %21 = vector.load %arg11[%c1, %c0_16, %c0_17] : memref<4x4x110xf32, #tpu.memory_space<vmem>>, vector<1x4x20xf32>
    %22 = vector.shape_cast %21 : vector<1x4x20xf32> to vector<4x20xf32>
    %23 = vector.shape_cast %10 : vector<4x20xf32> to vector<1x4x20xf32>
    tpu.vector_store %arg11[%c1, %c0_16, %c0_17], %23 {strides = array<i32>} : memref<4x4x110xf32, #tpu.memory_space<vmem>>, vector<1x4x20xf32>,
    %c1_18 = arith.constant 1 : index
    %c0_19 = arith.constant 0 : index
    %c90_20 = arith.constant 90 : index
    %24 = vector.load %arg11[%c1_18, %c0_19, %c90_20] : memref<4x4x110xf32, #tpu.memory_space<vmem>>, vector<1x4x20xf32>
    %25 = vector.shape_cast %24 : vector<1x4x20xf32> to vector<4x20xf32>
    %26 = vector.shape_cast %10 : vector<4x20xf32> to vector<1x4x20xf32>
    tpu.vector_store %arg11[%c1_18, %c0_19, %c90_20], %26 {strides = array<i32>} : memref<4x4x110xf32, #tpu.memory_space<vmem>>, vector<1x4x20xf32>,
    %27 = vector.extract_strided_slice %9 {offsets = [4, 0], sizes = [4, 80], strides = [1, 1]} : vector<16x80xf32> to vector<4x80xf32>
    %c1_21 = arith.constant 1 : index
    %c0_22 = arith.constant 0 : index
    %c11_23 = arith.constant 11 : index
    %28 = vector.load %arg11[%c1_21, %c0_22, %c11_23] : memref<4x4x110xf32, #tpu.memory_space<vmem>>, vector<1x4x80xf32>
    %29 = vector.shape_cast %28 : vector<1x4x80xf32> to vector<4x80xf32>
    %30 = vector.shape_cast %27 : vector<4x80xf32> to vector<1x4x80xf32>
    tpu.vector_store %arg11[%c1_21, %c0_22, %c11_23], %30 {strides = array<i32>} : memref<4x4x110xf32, #tpu.memory_space<vmem>>, vector<1x4x80xf32>,
    %c2 = arith.constant 2 : index
    %c0_24 = arith.constant 0 : index
    %c0_25 = arith.constant 0 : index
    %31 = vector.load %arg11[%c2, %c0_24, %c0_25] : memref<4x4x110xf32, #tpu.memory_space<vmem>>, vector<1x4x20xf32>
    %32 = vector.shape_cast %31 : vector<1x4x20xf32> to vector<4x20xf32>
    %33 = vector.shape_cast %10 : vector<4x20xf32> to vector<1x4x20xf32>
    tpu.vector_store %arg11[%c2, %c0_24, %c0_25], %33 {strides = array<i32>} : memref<4x4x110xf32, #tpu.memory_space<vmem>>, vector<1x4x20xf32>,
    %c2_26 = arith.constant 2 : index
    %c0_27 = arith.constant 0 : index
    %c90_28 = arith.constant 90 : index
    %34 = vector.load %arg11[%c2_26, %c0_27, %c90_28] : memref<4x4x110xf32, #tpu.memory_space<vmem>>, vector<1x4x20xf32>
    %35 = vector.shape_cast %34 : vector<1x4x20xf32> to vector<4x20xf32>
    %36 = vector.shape_cast %10 : vector<4x20xf32> to vector<1x4x20xf32>
    tpu.vector_store %arg11[%c2_26, %c0_27, %c90_28], %36 {strides = array<i32>} : memref<4x4x110xf32, #tpu.memory_space<vmem>>, vector<1x4x20xf32>,
    %37 = vector.extract_strided_slice %9 {offsets = [8, 0], sizes = [4, 80], strides = [1, 1]} : vector<16x80xf32> to vector<4x80xf32>
    %c2_29 = arith.constant 2 : index
    %c0_30 = arith.constant 0 : index
    %c11_31 = arith.constant 11 : index
    %38 = vector.load %arg11[%c2_29, %c0_30, %c11_31] : memref<4x4x110xf32, #tpu.memory_space<vmem>>, vector<1x4x80xf32>
    %39 = vector.shape_cast %38 : vector<1x4x80xf32> to vector<4x80xf32>
    %40 = vector.shape_cast %37 : vector<4x80xf32> to vector<1x4x80xf32>
    tpu.vector_store %arg11[%c2_29, %c0_30, %c11_31], %40 {strides = array<i32>} : memref<4x4x110xf32, #tpu.memory_space<vmem>>, vector<1x4x80xf32>,
    %c3 = arith.constant 3 : index
    %c0_32 = arith.constant 0 : index
    %c0_33 = arith.constant 0 : index
    %41 = vector.load %arg11[%c3, %c0_32, %c0_33] : memref<4x4x110xf32, #tpu.memory_space<vmem>>, vector<1x4x20xf32>
    %42 = vector.shape_cast %41 : vector<1x4x20xf32> to vector<4x20xf32>
    %43 = vector.shape_cast %10 : vector<4x20xf32> to vector<1x4x20xf32>
    tpu.vector_store %arg11[%c3, %c0_32, %c0_33], %43 {strides = array<i32>} : memref<4x4x110xf32, #tpu.memory_space<vmem>>, vector<1x4x20xf32>,
    %c3_34 = arith.constant 3 : index
    %c0_35 = arith.constant 0 : index
    %c90_36 = arith.constant 90 : index
    %44 = vector.load %arg11[%c3_34, %c0_35, %c90_36] : memref<4x4x110xf32, #tpu.memory_space<vmem>>, vector<1x4x20xf32>
    %45 = vector.shape_cast %44 : vector<1x4x20xf32> to vector<4x20xf32>
    %46 = vector.shape_cast %10 : vector<4x20xf32> to vector<1x4x20xf32>
    tpu.vector_store %arg11[%c3_34, %c0_35, %c90_36], %46 {strides = array<i32>} : memref<4x4x110xf32, #tpu.memory_space<vmem>>, vector<1x4x20xf32>,
    %47 = vector.extract_strided_slice %9 {offsets = [12, 0], sizes = [4, 80], strides = [1, 1]} : vector<16x80xf32> to vector<4x80xf32>
    %c3_37 = arith.constant 3 : index
    %c0_38 = arith.constant 0 : index
    %c11_39 = arith.constant 11 : index
    %48 = vector.load %arg11[%c3_37, %c0_38, %c11_39] : memref<4x4x110xf32, #tpu.memory_space<vmem>>, vector<1x4x80xf32>
    %49 = vector.shape_cast %48 : vector<1x4x80xf32> to vector<4x80xf32>
    %50 = vector.shape_cast %47 : vector<4x80xf32> to vector<1x4x80xf32>
    tpu.vector_store %arg11[%c3_37, %c0_38, %c11_39], %50 {strides = array<i32>} : memref<4x4x110xf32, #tpu.memory_space<vmem>>, vector<1x4x80xf32>,
    %cst_40 = arith.constant 0.000000e+00 : f32
    %51 = vector.broadcast %cst_40 : f32 to vector<4x20xf32>
    %c3_41 = arith.constant 3 : index
    %c0_42 = arith.constant 0 : index
    %c0_43 = arith.constant 0 : index
    %52 = vector.load %arg11[%c3_41, %c0_42, %c0_43] : memref<4x4x110xf32, #tpu.memory_space<vmem>>, vector<1x4x80xf32>
    %53 = vector.shape_cast %52 : vector<1x4x80xf32> to vector<4x80xf32>
    %c0_44 = arith.constant 0 : index
    %c0_45 = arith.constant 0 : index
    %54 = vector.load %arg13[%c0_44, %c0_45] : memref<72x80xf32, #tpu.memory_space<vmem>>, vector<4x80xf32>
    tpu.vector_store %arg13[%c0_44, %c0_45], %53 {strides = array<i32>} : memref<72x80xf32, #tpu.memory_space<vmem>>, vector<4x80xf32>,
    %c0_46 = arith.constant 0 : index
    %c3_47 = arith.constant 3 : index
    %c0_48 = arith.constant 0 : index
    %c0_49 = arith.constant 0 : index
    %55 = vector.load %arg2[%c0_46, %c3_47, %c0_48, %c0_49] : memref<1x4x4x110xf32, #tpu.memory_space<vmem>>, vector<1x1x4x80xf32>
    %56 = vector.shape_cast %55 : vector<1x1x4x80xf32> to vector<4x80xf32>
    %c36 = arith.constant 36 : index
    %c0_50 = arith.constant 0 : index
    %57 = vector.load %arg13[%c36, %c0_50] : memref<72x80xf32, #tpu.memory_space<vmem>>, vector<4x80xf32>
    tpu.vector_store %arg13[%c36, %c0_50], %56 {strides = array<i32>} : memref<72x80xf32, #tpu.memory_space<vmem>>, vector<4x80xf32>,
    %c2_51 = arith.constant 2 : index
    %c0_52 = arith.constant 0 : index
    %c1_53 = arith.constant 1 : index
    %58 = vector.load %arg11[%c2_51, %c0_52, %c1_53] : memref<4x4x110xf32, #tpu.memory_space<vmem>>, vector<1x4x80xf32>
    %59 = vector.shape_cast %58 : vector<1x4x80xf32> to vector<4x80xf32>
    %c4 = arith.constant 4 : index
    %c0_54 = arith.constant 0 : index
    %60 = vector.load %arg13[%c4, %c0_54] : memref<72x80xf32, #tpu.memory_space<vmem>>, vector<4x80xf32>
    tpu.vector_store %arg13[%c4, %c0_54], %59 {strides = array<i32>} : memref<72x80xf32, #tpu.memory_space<vmem>>, vector<4x80xf32>,
    %c0_55 = arith.constant 0 : index
    %c2_56 = arith.constant 2 : index
    %c0_57 = arith.constant 0 : index
    %c1_58 = arith.constant 1 : index
    %61 = vector.load %arg2[%c0_55, %c2_56, %c0_57, %c1_58] : memref<1x4x4x110xf32, #tpu.memory_space<vmem>>, vector<1x1x4x80xf32>
    %62 = vector.shape_cast %61 : vector<1x1x4x80xf32> to vector<4x80xf32>
    %c40 = arith.constant 40 : index
    %c0_59 = arith.constant 0 : index
    %63 = vector.load %arg13[%c40, %c0_59] : memref<72x80xf32, #tpu.memory_space<vmem>>, vector<4x80xf32>
    tpu.vector_store %arg13[%c40, %c0_59], %62 {strides = array<i32>} : memref<72x80xf32, #tpu.memory_space<vmem>>, vector<4x80xf32>,
    %c3_60 = arith.constant 3 : index
    %c0_61 = arith.constant 0 : index
    %c1_62 = arith.constant 1 : index
    %64 = vector.load %arg11[%c3_60, %c0_61, %c1_62] : memref<4x4x110xf32, #tpu.memory_space<vmem>>, vector<1x4x80xf32>
    %65 = vector.shape_cast %64 : vector<1x4x80xf32> to vector<4x80xf32>
    %c8 = arith.constant 8 : index
    %c0_63 = arith.constant 0 : index
    %66 = vector.load %arg13[%c8, %c0_63] : memref<72x80xf32, #tpu.memory_space<vmem>>, vector<4x80xf32>
    tpu.vector_store %arg13[%c8, %c0_63], %65 {strides = array<i32>} : memref<72x80xf32, #tpu.memory_space<vmem>>, vector<4x80xf32>,
    %c0_64 = arith.constant 0 : index
    %c3_65 = arith.constant 3 : index
    %c0_66 = arith.constant 0 : index
    %c1_67 = arith.constant 1 : index
    %67 = vector.load %arg2[%c0_64, %c3_65, %c0_66, %c1_67] : memref<1x4x4x110xf32, #tpu.memory_space<vmem>>, vector<1x1x4x80xf32>
    %68 = vector.shape_cast %67 : vector<1x1x4x80xf32> to vector<4x80xf32>
    %c44 = arith.constant 44 : index
    %c0_68 = arith.constant 0 : index
    %69 = vector.load %arg13[%c44, %c0_68] : memref<72x80xf32, #tpu.memory_space<vmem>>, vector<4x80xf32>
    tpu.vector_store %arg13[%c44, %c0_68], %68 {strides = array<i32>} : memref<72x80xf32, #tpu.memory_space<vmem>>, vector<4x80xf32>,
    %c1_69 = arith.constant 1 : index
    %c0_70 = arith.constant 0 : index
    %c10 = arith.constant 10 : index
    %70 = vector.load %arg11[%c1_69, %c0_70, %c10] : memref<4x4x110xf32, #tpu.memory_space<vmem>>, vector<1x4x80xf32>
    %71 = vector.shape_cast %70 : vector<1x4x80xf32> to vector<4x80xf32>
    %c12 = arith.constant 12 : index
    %c0_71 = arith.constant 0 : index
    %72 = vector.load %arg13[%c12, %c0_71] : memref<72x80xf32, #tpu.memory_space<vmem>>, vector<4x80xf32>
    tpu.vector_store %arg13[%c12, %c0_71], %71 {strides = array<i32>} : memref<72x80xf32, #tpu.memory_space<vmem>>, vector<4x80xf32>,
    %c0_72 = arith.constant 0 : index
    %c1_73 = arith.constant 1 : index
    %c0_74 = arith.constant 0 : index
    %c10_75 = arith.constant 10 : index
    %73 = vector.load %arg2[%c0_72, %c1_73, %c0_74, %c10_75] : memref<1x4x4x110xf32, #tpu.memory_space<vmem>>, vector<1x1x4x80xf32>
    %74 = vector.shape_cast %73 : vector<1x1x4x80xf32> to vector<4x80xf32>
    %c48 = arith.constant 48 : index
    %c0_76 = arith.constant 0 : index
    %75 = vector.load %arg13[%c48, %c0_76] : memref<72x80xf32, #tpu.memory_space<vmem>>, vector<4x80xf32>
    tpu.vector_store %arg13[%c48, %c0_76], %74 {strides = array<i32>} : memref<72x80xf32, #tpu.memory_space<vmem>>, vector<4x80xf32>,
    %c0_77 = arith.constant 0 : index
    %c0_78 = arith.constant 0 : index
    %c11_79 = arith.constant 11 : index
    %76 = vector.load %arg11[%c0_77, %c0_78, %c11_79] : memref<4x4x110xf32, #tpu.memory_space<vmem>>, vector<1x4x80xf32>
    %77 = vector.shape_cast %76 : vector<1x4x80xf32> to vector<4x80xf32>
    %c16 = arith.constant 16 : index
    %c0_80 = arith.constant 0 : index
    %78 = vector.load %arg13[%c16, %c0_80] : memref<72x80xf32, #tpu.memory_space<vmem>>, vector<4x80xf32>
    tpu.vector_store %arg13[%c16, %c0_80], %77 {strides = array<i32>} : memref<72x80xf32, #tpu.memory_space<vmem>>, vector<4x80xf32>,
    %c0_81 = arith.constant 0 : index
    %c0_82 = arith.constant 0 : index
    %c0_83 = arith.constant 0 : index
    %c11_84 = arith.constant 11 : index
    %79 = vector.load %arg2[%c0_81, %c0_82, %c0_83, %c11_84] : memref<1x4x4x110xf32, #tpu.memory_space<vmem>>, vector<1x1x4x80xf32>
    %80 = vector.shape_cast %79 : vector<1x1x4x80xf32> to vector<4x80xf32>
    %c52 = arith.constant 52 : index
    %c0_85 = arith.constant 0 : index
    %81 = vector.load %arg13[%c52, %c0_85] : memref<72x80xf32, #tpu.memory_space<vmem>>, vector<4x80xf32>
    tpu.vector_store %arg13[%c52, %c0_85], %80 {strides = array<i32>} : memref<72x80xf32, #tpu.memory_space<vmem>>, vector<4x80xf32>,
    %c1_86 = arith.constant 1 : index
    %c0_87 = arith.constant 0 : index
    %c11_88 = arith.constant 11 : index
    %82 = vector.load %arg11[%c1_86, %c0_87, %c11_88] : memref<4x4x110xf32, #tpu.memory_space<vmem>>, vector<1x4x80xf32>
    %83 = vector.shape_cast %82 : vector<1x4x80xf32> to vector<4x80xf32>
    %c20 = arith.constant 20 : index
    %c0_89 = arith.constant 0 : index
    %84 = vector.load %arg13[%c20, %c0_89] : memref<72x80xf32, #tpu.memory_space<vmem>>, vector<4x80xf32>
    tpu.vector_store %arg13[%c20, %c0_89], %83 {strides = array<i32>} : memref<72x80xf32, #tpu.memory_space<vmem>>, vector<4x80xf32>,
    %c0_90 = arith.constant 0 : index
    %c1_91 = arith.constant 1 : index
    %c0_92 = arith.constant 0 : index
    %c11_93 = arith.constant 11 : index
    %85 = vector.load %arg2[%c0_90, %c1_91, %c0_92, %c11_93] : memref<1x4x4x110xf32, #tpu.memory_space<vmem>>, vector<1x1x4x80xf32>
    %86 = vector.shape_cast %85 : vector<1x1x4x80xf32> to vector<4x80xf32>
    %c56 = arith.constant 56 : index
    %c0_94 = arith.constant 0 : index
    %87 = vector.load %arg13[%c56, %c0_94] : memref<72x80xf32, #tpu.memory_space<vmem>>, vector<4x80xf32>
    tpu.vector_store %arg13[%c56, %c0_94], %86 {strides = array<i32>} : memref<72x80xf32, #tpu.memory_space<vmem>>, vector<4x80xf32>,
    %c3_95 = arith.constant 3 : index
    %c0_96 = arith.constant 0 : index
    %c10_97 = arith.constant 10 : index
    %88 = vector.load %arg11[%c3_95, %c0_96, %c10_97] : memref<4x4x110xf32, #tpu.memory_space<vmem>>, vector<1x4x80xf32>
    %89 = vector.shape_cast %88 : vector<1x4x80xf32> to vector<4x80xf32>
    %c24 = arith.constant 24 : index
    %c0_98 = arith.constant 0 : index
    %90 = vector.load %arg13[%c24, %c0_98] : memref<72x80xf32, #tpu.memory_space<vmem>>, vector<4x80xf32>
    tpu.vector_store %arg13[%c24, %c0_98], %89 {strides = array<i32>} : memref<72x80xf32, #tpu.memory_space<vmem>>, vector<4x80xf32>,
    %c0_99 = arith.constant 0 : index
    %c3_100 = arith.constant 3 : index
    %c0_101 = arith.constant 0 : index
    %c10_102 = arith.constant 10 : index
    %91 = vector.load %arg2[%c0_99, %c3_100, %c0_101, %c10_102] : memref<1x4x4x110xf32, #tpu.memory_space<vmem>>, vector<1x1x4x80xf32>
    %92 = vector.shape_cast %91 : vector<1x1x4x80xf32> to vector<4x80xf32>
    %c60 = arith.constant 60 : index
    %c0_103 = arith.constant 0 : index
    %93 = vector.load %arg13[%c60, %c0_103] : memref<72x80xf32, #tpu.memory_space<vmem>>, vector<4x80xf32>
    tpu.vector_store %arg13[%c60, %c0_103], %92 {strides = array<i32>} : memref<72x80xf32, #tpu.memory_space<vmem>>, vector<4x80xf32>,
    %c2_104 = arith.constant 2 : index
    %c0_105 = arith.constant 0 : index
    %c11_106 = arith.constant 11 : index
    %94 = vector.load %arg11[%c2_104, %c0_105, %c11_106] : memref<4x4x110xf32, #tpu.memory_space<vmem>>, vector<1x4x80xf32>
    %95 = vector.shape_cast %94 : vector<1x4x80xf32> to vector<4x80xf32>
    %c28 = arith.constant 28 : index
    %c0_107 = arith.constant 0 : index
    %96 = vector.load %arg13[%c28, %c0_107] : memref<72x80xf32, #tpu.memory_space<vmem>>, vector<4x80xf32>
    tpu.vector_store %arg13[%c28, %c0_107], %95 {strides = array<i32>} : memref<72x80xf32, #tpu.memory_space<vmem>>, vector<4x80xf32>,
    %c0_108 = arith.constant 0 : index
    %c2_109 = arith.constant 2 : index
    %c0_110 = arith.constant 0 : index
    %c11_111 = arith.constant 11 : index
    %97 = vector.load %arg2[%c0_108, %c2_109, %c0_110, %c11_111] : memref<1x4x4x110xf32, #tpu.memory_space<vmem>>, vector<1x1x4x80xf32>
    %98 = vector.shape_cast %97 : vector<1x1x4x80xf32> to vector<4x80xf32>
    %c64 = arith.constant 64 : index
    %c0_112 = arith.constant 0 : index
    %99 = vector.load %arg13[%c64, %c0_112] : memref<72x80xf32, #tpu.memory_space<vmem>>, vector<4x80xf32>
    tpu.vector_store %arg13[%c64, %c0_112], %98 {strides = array<i32>} : memref<72x80xf32, #tpu.memory_space<vmem>>, vector<4x80xf32>,
    %c3_113 = arith.constant 3 : index
    %c0_114 = arith.constant 0 : index
    %c11_115 = arith.constant 11 : index
    %100 = vector.load %arg11[%c3_113, %c0_114, %c11_115] : memref<4x4x110xf32, #tpu.memory_space<vmem>>, vector<1x4x80xf32>
    %101 = vector.shape_cast %100 : vector<1x4x80xf32> to vector<4x80xf32>
    %c32 = arith.constant 32 : index
    %c0_116 = arith.constant 0 : index
    %102 = vector.load %arg13[%c32, %c0_116] : memref<72x80xf32, #tpu.memory_space<vmem>>, vector<4x80xf32>
    tpu.vector_store %arg13[%c32, %c0_116], %101 {strides = array<i32>} : memref<72x80xf32, #tpu.memory_space<vmem>>, vector<4x80xf32>,
    %c0_117 = arith.constant 0 : index
    %c3_118 = arith.constant 3 : index
    %c0_119 = arith.constant 0 : index
    %c11_120 = arith.constant 11 : index
    %103 = vector.load %arg2[%c0_117, %c3_118, %c0_119, %c11_120] : memref<1x4x4x110xf32, #tpu.memory_space<vmem>>, vector<1x1x4x80xf32>
    %104 = vector.shape_cast %103 : vector<1x1x4x80xf32> to vector<4x80xf32>
    %c68 = arith.constant 68 : index
    %c0_121 = arith.constant 0 : index
    %105 = vector.load %arg13[%c68, %c0_121] : memref<72x80xf32, #tpu.memory_space<vmem>>, vector<4x80xf32>
    tpu.vector_store %arg13[%c68, %c0_121], %104 {strides = array<i32>} : memref<72x80xf32, #tpu.memory_space<vmem>>, vector<4x80xf32>,
    %c0_122 = arith.constant 0 : index
    %c0_123 = arith.constant 0 : index
    %106 = vector.load %arg6[%c0_122, %c0_123] : memref<4x72xf32, #tpu.memory_space<vmem>>, vector<4x72xf32>
    %c0_124 = arith.constant 0 : index
    %c0_125 = arith.constant 0 : index
    %107 = vector.load %arg13[%c0_124, %c0_125] : memref<72x80xf32, #tpu.memory_space<vmem>>, vector<72x80xf32>
    %cst_126 = arith.constant dense<0.000000e+00> : vector<4x80xf32>
    %108 = tpu.matmul %106, %107, %cst_126 {dimension_numbers = #tpu.dot_dimension_numbers<[1], [0], [0], [1], [0, 0, 1, 1], [], []>} : vector<4x72xf32>, vector<72x80xf32>, vector<4x80xf32> -> vector<4x80xf32>
    %c0_127 = arith.constant 0 : index
    %c0_128 = arith.constant 0 : index
    %109 = vector.load %arg7[%c0_127, %c0_128] : memref<4x1xf32, #tpu.memory_space<vmem>>, vector<4x1xf32>
    %110 = vector.broadcast %109 : vector<4x1xf32> to vector<4x80xf32>
    %111 = arith.addf %108, %110 : vector<4x80xf32>
    %cst_129 = arith.constant 0.000000e+00 : f32
    %112 = vector.broadcast %cst_129 : f32 to vector<4x80xf32>
    %113 = arith.maximumf %111, %112 : vector<4x80xf32>
    %114 = vector.broadcast %0 : vector<1x80xf32> to vector<4x80xf32>
    %115 = arith.mulf %113, %114 : vector<4x80xf32>
    %c0_130 = arith.constant 0 : index
    %c0_131 = arith.constant 0 : index
    %c0_132 = arith.constant 0 : index
    %116 = vector.load %arg12[%c0_130, %c0_131, %c0_132] : memref<4x4x110xf32, #tpu.memory_space<vmem>>, vector<1x4x20xf32>
    %117 = vector.shape_cast %116 : vector<1x4x20xf32> to vector<4x20xf32>
    %118 = vector.shape_cast %51 : vector<4x20xf32> to vector<1x4x20xf32>
    tpu.vector_store %arg12[%c0_130, %c0_131, %c0_132], %118 {strides = array<i32>} : memref<4x4x110xf32, #tpu.memory_space<vmem>>, vector<1x4x20xf32>,
    %c0_133 = arith.constant 0 : index
    %c0_134 = arith.constant 0 : index
    %c90_135 = arith.constant 90 : index
    %119 = vector.load %arg12[%c0_133, %c0_134, %c90_135] : memref<4x4x110xf32, #tpu.memory_space<vmem>>, vector<1x4x20xf32>
    %120 = vector.shape_cast %119 : vector<1x4x20xf32> to vector<4x20xf32>
    %121 = vector.shape_cast %51 : vector<4x20xf32> to vector<1x4x20xf32>
    tpu.vector_store %arg12[%c0_133, %c0_134, %c90_135], %121 {strides = array<i32>} : memref<4x4x110xf32, #tpu.memory_space<vmem>>, vector<1x4x20xf32>,
    %c0_136 = arith.constant 0 : index
    %c0_137 = arith.constant 0 : index
    %c11_138 = arith.constant 11 : index
    %122 = vector.load %arg12[%c0_136, %c0_137, %c11_138] : memref<4x4x110xf32, #tpu.memory_space<vmem>>, vector<1x4x80xf32>
    %123 = vector.shape_cast %122 : vector<1x4x80xf32> to vector<4x80xf32>
    %124 = vector.shape_cast %115 : vector<4x80xf32> to vector<1x4x80xf32>
    tpu.vector_store %arg12[%c0_136, %c0_137, %c11_138], %124 {strides = array<i32>} : memref<4x4x110xf32, #tpu.memory_space<vmem>>, vector<1x4x80xf32>,
    %c2_139 = arith.constant 2 : index
    %c0_140 = arith.constant 0 : index
    %c1_141 = arith.constant 1 : index
    %125 = vector.load %arg11[%c2_139, %c0_140, %c1_141] : memref<4x4x110xf32, #tpu.memory_space<vmem>>, vector<1x4x80xf32>
    %126 = vector.shape_cast %125 : vector<1x4x80xf32> to vector<4x80xf32>
    %c0_142 = arith.constant 0 : index
    %c0_143 = arith.constant 0 : index
    %127 = vector.load %arg13[%c0_142, %c0_143] : memref<72x80xf32, #tpu.memory_space<vmem>>, vector<4x80xf32>
    tpu.vector_store %arg13[%c0_142, %c0_143], %126 {strides = array<i32>} : memref<72x80xf32, #tpu.memory_space<vmem>>, vector<4x80xf32>,
    %c0_144 = arith.constant 0 : index
    %c2_145 = arith.constant 2 : index
    %c0_146 = arith.constant 0 : index
    %c1_147 = arith.constant 1 : index
    %128 = vector.load %arg2[%c0_144, %c2_145, %c0_146, %c1_147] : memref<1x4x4x110xf32, #tpu.memory_space<vmem>>, vector<1x1x4x80xf32>
    %129 = vector.shape_cast %128 : vector<1x1x4x80xf32> to vector<4x80xf32>
    %c36_148 = arith.constant 36 : index
    %c0_149 = arith.constant 0 : index
    %130 = vector.load %arg13[%c36_148, %c0_149] : memref<72x80xf32, #tpu.memory_space<vmem>>, vector<4x80xf32>
    tpu.vector_store %arg13[%c36_148, %c0_149], %129 {strides = array<i32>} : memref<72x80xf32, #tpu.memory_space<vmem>>, vector<4x80xf32>,
    %c3_150 = arith.constant 3 : index
    %c0_151 = arith.constant 0 : index
    %c1_152 = arith.constant 1 : index
    %131 = vector.load %arg11[%c3_150, %c0_151, %c1_152] : memref<4x4x110xf32, #tpu.memory_space<vmem>>, vector<1x4x80xf32>
    %132 = vector.shape_cast %131 : vector<1x4x80xf32> to vector<4x80xf32>
    %c4_153 = arith.constant 4 : index
    %c0_154 = arith.constant 0 : index
    %133 = vector.load %arg13[%c4_153, %c0_154] : memref<72x80xf32, #tpu.memory_space<vmem>>, vector<4x80xf32>
    tpu.vector_store %arg13[%c4_153, %c0_154], %132 {strides = array<i32>} : memref<72x80xf32, #tpu.memory_space<vmem>>, vector<4x80xf32>,
    %c0_155 = arith.constant 0 : index
    %c3_156 = arith.constant 3 : index
    %c0_157 = arith.constant 0 : index
    %c1_158 = arith.constant 1 : index
    %134 = vector.load %arg2[%c0_155, %c3_156, %c0_157, %c1_158] : memref<1x4x4x110xf32, #tpu.memory_space<vmem>>, vector<1x1x4x80xf32>
    %135 = vector.shape_cast %134 : vector<1x1x4x80xf32> to vector<4x80xf32>
    %c40_159 = arith.constant 40 : index
    %c0_160 = arith.constant 0 : index
    %136 = vector.load %arg13[%c40_159, %c0_160] : memref<72x80xf32, #tpu.memory_space<vmem>>, vector<4x80xf32>
    tpu.vector_store %arg13[%c40_159, %c0_160], %135 {strides = array<i32>} : memref<72x80xf32, #tpu.memory_space<vmem>>, vector<4x80xf32>,
    %c2_161 = arith.constant 2 : index
    %c0_162 = arith.constant 0 : index
    %c2_163 = arith.constant 2 : index
    %137 = vector.load %arg11[%c2_161, %c0_162, %c2_163] : memref<4x4x110xf32, #tpu.memory_space<vmem>>, vector<1x4x80xf32>
    %138 = vector.shape_cast %137 : vector<1x4x80xf32> to vector<4x80xf32>
    %c8_164 = arith.constant 8 : index
    %c0_165 = arith.constant 0 : index
    %139 = vector.load %arg13[%c8_164, %c0_165] : memref<72x80xf32, #tpu.memory_space<vmem>>, vector<4x80xf32>
    tpu.vector_store %arg13[%c8_164, %c0_165], %138 {strides = array<i32>} : memref<72x80xf32, #tpu.memory_space<vmem>>, vector<4x80xf32>,
    %c0_166 = arith.constant 0 : index
    %c2_167 = arith.constant 2 : index
    %c0_168 = arith.constant 0 : index
    %c2_169 = arith.constant 2 : index
    %140 = vector.load %arg2[%c0_166, %c2_167, %c0_168, %c2_169] : memref<1x4x4x110xf32, #tpu.memory_space<vmem>>, vector<1x1x4x80xf32>
    %141 = vector.shape_cast %140 : vector<1x1x4x80xf32> to vector<4x80xf32>
    %c44_170 = arith.constant 44 : index
    %c0_171 = arith.constant 0 : index
    %142 = vector.load %arg13[%c44_170, %c0_171] : memref<72x80xf32, #tpu.memory_space<vmem>>, vector<4x80xf32>
    tpu.vector_store %arg13[%c44_170, %c0_171], %141 {strides = array<i32>} : memref<72x80xf32, #tpu.memory_space<vmem>>, vector<4x80xf32>,
    %c0_172 = arith.constant 0 : index
    %c0_173 = arith.constant 0 : index
    %c11_174 = arith.constant 11 : index
    %143 = vector.load %arg11[%c0_172, %c0_173, %c11_174] : memref<4x4x110xf32, #tpu.memory_space<vmem>>, vector<1x4x80xf32>
    %144 = vector.shape_cast %143 : vector<1x4x80xf32> to vector<4x80xf32>
    %c12_175 = arith.constant 12 : index
    %c0_176 = arith.constant 0 : index
    %145 = vector.load %arg13[%c12_175, %c0_176] : memref<72x80xf32, #tpu.memory_space<vmem>>, vector<4x80xf32>
    tpu.vector_store %arg13[%c12_175, %c0_176], %144 {strides = array<i32>} : memref<72x80xf32, #tpu.memory_space<vmem>>, vector<4x80xf32>,
    %c0_177 = arith.constant 0 : index
    %c0_178 = arith.constant 0 : index
    %c0_179 = arith.constant 0 : index
    %c11_180 = arith.constant 11 : index
    %146 = vector.load %arg2[%c0_177, %c0_178, %c0_179, %c11_180] : memref<1x4x4x110xf32, #tpu.memory_space<vmem>>, vector<1x1x4x80xf32>
    %147 = vector.shape_cast %146 : vector<1x1x4x80xf32> to vector<4x80xf32>
    %c48_181 = arith.constant 48 : index
    %c0_182 = arith.constant 0 : index
    %148 = vector.load %arg13[%c48_181, %c0_182] : memref<72x80xf32, #tpu.memory_space<vmem>>, vector<4x80xf32>
    tpu.vector_store %arg13[%c48_181, %c0_182], %147 {strides = array<i32>} : memref<72x80xf32, #tpu.memory_space<vmem>>, vector<4x80xf32>,
    %c1_183 = arith.constant 1 : index
    %c0_184 = arith.constant 0 : index
    %c11_185 = arith.constant 11 : index
    %149 = vector.load %arg11[%c1_183, %c0_184, %c11_185] : memref<4x4x110xf32, #tpu.memory_space<vmem>>, vector<1x4x80xf32>
    %150 = vector.shape_cast %149 : vector<1x4x80xf32> to vector<4x80xf32>
    %c16_186 = arith.constant 16 : index
    %c0_187 = arith.constant 0 : index
    %151 = vector.load %arg13[%c16_186, %c0_187] : memref<72x80xf32, #tpu.memory_space<vmem>>, vector<4x80xf32>
    tpu.vector_store %arg13[%c16_186, %c0_187], %150 {strides = array<i32>} : memref<72x80xf32, #tpu.memory_space<vmem>>, vector<4x80xf32>,
    %c0_188 = arith.constant 0 : index
    %c1_189 = arith.constant 1 : index
    %c0_190 = arith.constant 0 : index
    %c11_191 = arith.constant 11 : index
    %152 = vector.load %arg2[%c0_188, %c1_189, %c0_190, %c11_191] : memref<1x4x4x110xf32, #tpu.memory_space<vmem>>, vector<1x1x4x80xf32>
    %153 = vector.shape_cast %152 : vector<1x1x4x80xf32> to vector<4x80xf32>
    %c52_192 = arith.constant 52 : index
    %c0_193 = arith.constant 0 : index
    %154 = vector.load %arg13[%c52_192, %c0_193] : memref<72x80xf32, #tpu.memory_space<vmem>>, vector<4x80xf32>
    tpu.vector_store %arg13[%c52_192, %c0_193], %153 {strides = array<i32>} : memref<72x80xf32, #tpu.memory_space<vmem>>, vector<4x80xf32>,
    %c0_194 = arith.constant 0 : index
    %c0_195 = arith.constant 0 : index
    %c12_196 = arith.constant 12 : index
    %155 = vector.load %arg11[%c0_194, %c0_195, %c12_196] : memref<4x4x110xf32, #tpu.memory_space<vmem>>, vector<1x4x80xf32>
    %156 = vector.shape_cast %155 : vector<1x4x80xf32> to vector<4x80xf32>
    %c20_197 = arith.constant 20 : index
    %c0_198 = arith.constant 0 : index
    %157 = vector.load %arg13[%c20_197, %c0_198] : memref<72x80xf32, #tpu.memory_space<vmem>>, vector<4x80xf32>
    tpu.vector_store %arg13[%c20_197, %c0_198], %156 {strides = array<i32>} : memref<72x80xf32, #tpu.memory_space<vmem>>, vector<4x80xf32>,
    %c0_199 = arith.constant 0 : index
    %c0_200 = arith.constant 0 : index
    %c0_201 = arith.constant 0 : index
    %c12_202 = arith.constant 12 : index
    %158 = vector.load %arg2[%c0_199, %c0_200, %c0_201, %c12_202] : memref<1x4x4x110xf32, #tpu.memory_space<vmem>>, vector<1x1x4x80xf32>
    %159 = vector.shape_cast %158 : vector<1x1x4x80xf32> to vector<4x80xf32>
    %c56_203 = arith.constant 56 : index
    %c0_204 = arith.constant 0 : index
    %160 = vector.load %arg13[%c56_203, %c0_204] : memref<72x80xf32, #tpu.memory_space<vmem>>, vector<4x80xf32>
    tpu.vector_store %arg13[%c56_203, %c0_204], %159 {strides = array<i32>} : memref<72x80xf32, #tpu.memory_space<vmem>>, vector<4x80xf32>,
    %c2_205 = arith.constant 2 : index
    %c0_206 = arith.constant 0 : index
    %c11_207 = arith.constant 11 : index
    %161 = vector.load %arg11[%c2_205, %c0_206, %c11_207] : memref<4x4x110xf32, #tpu.memory_space<vmem>>, vector<1x4x80xf32>
    %162 = vector.shape_cast %161 : vector<1x4x80xf32> to vector<4x80xf32>
    %c24_208 = arith.constant 24 : index
    %c0_209 = arith.constant 0 : index
    %163 = vector.load %arg13[%c24_208, %c0_209] : memref<72x80xf32, #tpu.memory_space<vmem>>, vector<4x80xf32>
    tpu.vector_store %arg13[%c24_208, %c0_209], %162 {strides = array<i32>} : memref<72x80xf32, #tpu.memory_space<vmem>>, vector<4x80xf32>,
    %c0_210 = arith.constant 0 : index
    %c2_211 = arith.constant 2 : index
    %c0_212 = arith.constant 0 : index
    %c11_213 = arith.constant 11 : index
    %164 = vector.load %arg2[%c0_210, %c2_211, %c0_212, %c11_213] : memref<1x4x4x110xf32, #tpu.memory_space<vmem>>, vector<1x1x4x80xf32>
    %165 = vector.shape_cast %164 : vector<1x1x4x80xf32> to vector<4x80xf32>
    %c60_214 = arith.constant 60 : index
    %c0_215 = arith.constant 0 : index
    %166 = vector.load %arg13[%c60_214, %c0_215] : memref<72x80xf32, #tpu.memory_space<vmem>>, vector<4x80xf32>
    tpu.vector_store %arg13[%c60_214, %c0_215], %165 {strides = array<i32>} : memref<72x80xf32, #tpu.memory_space<vmem>>, vector<4x80xf32>,
    %c3_216 = arith.constant 3 : index
    %c0_217 = arith.constant 0 : index
    %c11_218 = arith.constant 11 : index
    %167 = vector.load %arg11[%c3_216, %c0_217, %c11_218] : memref<4x4x110xf32, #tpu.memory_space<vmem>>, vector<1x4x80xf32>
    %168 = vector.shape_cast %167 : vector<1x4x80xf32> to vector<4x80xf32>
    %c28_219 = arith.constant 28 : index
    %c0_220 = arith.constant 0 : index
    %169 = vector.load %arg13[%c28_219, %c0_220] : memref<72x80xf32, #tpu.memory_space<vmem>>, vector<4x80xf32>
    tpu.vector_store %arg13[%c28_219, %c0_220], %168 {strides = array<i32>} : memref<72x80xf32, #tpu.memory_space<vmem>>, vector<4x80xf32>,
    %c0_221 = arith.constant 0 : index
    %c3_222 = arith.constant 3 : index
    %c0_223 = arith.constant 0 : index
    %c11_224 = arith.constant 11 : index
    %170 = vector.load %arg2[%c0_221, %c3_222, %c0_223, %c11_224] : memref<1x4x4x110xf32, #tpu.memory_space<vmem>>, vector<1x1x4x80xf32>
    %171 = vector.shape_cast %170 : vector<1x1x4x80xf32> to vector<4x80xf32>
    %c64_225 = arith.constant 64 : index
    %c0_226 = arith.constant 0 : index
    %172 = vector.load %arg13[%c64_225, %c0_226] : memref<72x80xf32, #tpu.memory_space<vmem>>, vector<4x80xf32>
    tpu.vector_store %arg13[%c64_225, %c0_226], %171 {strides = array<i32>} : memref<72x80xf32, #tpu.memory_space<vmem>>, vector<4x80xf32>,
    %c2_227 = arith.constant 2 : index
    %c0_228 = arith.constant 0 : index
    %c12_229 = arith.constant 12 : index
    %173 = vector.load %arg11[%c2_227, %c0_228, %c12_229] : memref<4x4x110xf32, #tpu.memory_space<vmem>>, vector<1x4x80xf32>
    %174 = vector.shape_cast %173 : vector<1x4x80xf32> to vector<4x80xf32>
    %c32_230 = arith.constant 32 : index
    %c0_231 = arith.constant 0 : index
    %175 = vector.load %arg13[%c32_230, %c0_231] : memref<72x80xf32, #tpu.memory_space<vmem>>, vector<4x80xf32>
    tpu.vector_store %arg13[%c32_230, %c0_231], %174 {strides = array<i32>} : memref<72x80xf32, #tpu.memory_space<vmem>>, vector<4x80xf32>,
    %c0_232 = arith.constant 0 : index
    %c2_233 = arith.constant 2 : index
    %c0_234 = arith.constant 0 : index
    %c12_235 = arith.constant 12 : index
    %176 = vector.load %arg2[%c0_232, %c2_233, %c0_234, %c12_235] : memref<1x4x4x110xf32, #tpu.memory_space<vmem>>, vector<1x1x4x80xf32>
    %177 = vector.shape_cast %176 : vector<1x1x4x80xf32> to vector<4x80xf32>
    %c68_236 = arith.constant 68 : index
    %c0_237 = arith.constant 0 : index
    %178 = vector.load %arg13[%c68_236, %c0_237] : memref<72x80xf32, #tpu.memory_space<vmem>>, vector<4x80xf32>
    tpu.vector_store %arg13[%c68_236, %c0_237], %177 {strides = array<i32>} : memref<72x80xf32, #tpu.memory_space<vmem>>, vector<4x80xf32>,
    %c0_238 = arith.constant 0 : index
    %c0_239 = arith.constant 0 : index
    %179 = vector.load %arg6[%c0_238, %c0_239] : memref<4x72xf32, #tpu.memory_space<vmem>>, vector<4x72xf32>
    %c0_240 = arith.constant 0 : index
    %c0_241 = arith.constant 0 : index
    %180 = vector.load %arg13[%c0_240, %c0_241] : memref<72x80xf32, #tpu.memory_space<vmem>>, vector<72x80xf32>
    %cst_242 = arith.constant dense<0.000000e+00> : vector<4x80xf32>
    %181 = tpu.matmul %179, %180, %cst_242 {dimension_numbers = #tpu.dot_dimension_numbers<[1], [0], [0], [1], [0, 0, 1, 1], [], []>} : vector<4x72xf32>, vector<72x80xf32>, vector<4x80xf32> -> vector<4x80xf32>
    %c0_243 = arith.constant 0 : index
    %c0_244 = arith.constant 0 : index
    %182 = vector.load %arg7[%c0_243, %c0_244] : memref<4x1xf32, #tpu.memory_space<vmem>>, vector<4x1xf32>
    %183 = vector.broadcast %182 : vector<4x1xf32> to vector<4x80xf32>
    %184 = arith.addf %181, %183 : vector<4x80xf32>
    %cst_245 = arith.constant 0.000000e+00 : f32
    %185 = vector.broadcast %cst_245 : f32 to vector<4x80xf32>
    %186 = arith.maximumf %184, %185 : vector<4x80xf32>
    %187 = vector.broadcast %0 : vector<1x80xf32> to vector<4x80xf32>
    %188 = arith.mulf %186, %187 : vector<4x80xf32>
    %c1_246 = arith.constant 1 : index
    %c0_247 = arith.constant 0 : index
    %c0_248 = arith.constant 0 : index
    %189 = vector.load %arg12[%c1_246, %c0_247, %c0_248] : memref<4x4x110xf32, #tpu.memory_space<vmem>>, vector<1x4x20xf32>
    %190 = vector.shape_cast %189 : vector<1x4x20xf32> to vector<4x20xf32>
    %191 = vector.shape_cast %51 : vector<4x20xf32> to vector<1x4x20xf32>
    tpu.vector_store %arg12[%c1_246, %c0_247, %c0_248], %191 {strides = array<i32>} : memref<4x4x110xf32, #tpu.memory_space<vmem>>, vector<1x4x20xf32>,
    %c1_249 = arith.constant 1 : index
    %c0_250 = arith.constant 0 : index
    %c90_251 = arith.constant 90 : index
    %192 = vector.load %arg12[%c1_249, %c0_250, %c90_251] : memref<4x4x110xf32, #tpu.memory_space<vmem>>, vector<1x4x20xf32>
    %193 = vector.shape_cast %192 : vector<1x4x20xf32> to vector<4x20xf32>
    %194 = vector.shape_cast %51 : vector<4x20xf32> to vector<1x4x20xf32>
    tpu.vector_store %arg12[%c1_249, %c0_250, %c90_251], %194 {strides = array<i32>} : memref<4x4x110xf32, #tpu.memory_space<vmem>>, vector<1x4x20xf32>,
    %c1_252 = arith.constant 1 : index
    %c0_253 = arith.constant 0 : index
    %c11_254 = arith.constant 11 : index
    %195 = vector.load %arg12[%c1_252, %c0_253, %c11_254] : memref<4x4x110xf32, #tpu.memory_space<vmem>>, vector<1x4x80xf32>
    %196 = vector.shape_cast %195 : vector<1x4x80xf32> to vector<4x80xf32>
    %197 = vector.shape_cast %188 : vector<4x80xf32> to vector<1x4x80xf32>
    tpu.vector_store %arg12[%c1_252, %c0_253, %c11_254], %197 {strides = array<i32>} : memref<4x4x110xf32, #tpu.memory_space<vmem>>, vector<1x4x80xf32>,
    %c1_255 = arith.constant 1 : index
    %c0_256 = arith.constant 0 : index
    %c10_257 = arith.constant 10 : index
    %198 = vector.load %arg11[%c1_255, %c0_256, %c10_257] : memref<4x4x110xf32, #tpu.memory_space<vmem>>, vector<1x4x80xf32>
    %199 = vector.shape_cast %198 : vector<1x4x80xf32> to vector<4x80xf32>
    %c0_258 = arith.constant 0 : index
    %c0_259 = arith.constant 0 : index
    %200 = vector.load %arg13[%c0_258, %c0_259] : memref<72x80xf32, #tpu.memory_space<vmem>>, vector<4x80xf32>
    tpu.vector_store %arg13[%c0_258, %c0_259], %199 {strides = array<i32>} : memref<72x80xf32, #tpu.memory_space<vmem>>, vector<4x80xf32>,
    %c0_260 = arith.constant 0 : index
    %c1_261 = arith.constant 1 : index
    %c0_262 = arith.constant 0 : index
    %c10_263 = arith.constant 10 : index
    %201 = vector.load %arg2[%c0_260, %c1_261, %c0_262, %c10_263] : memref<1x4x4x110xf32, #tpu.memory_space<vmem>>, vector<1x1x4x80xf32>
    %202 = vector.shape_cast %201 : vector<1x1x4x80xf32> to vector<4x80xf32>
    %c36_264 = arith.constant 36 : index
    %c0_265 = arith.constant 0 : index
    %203 = vector.load %arg13[%c36_264, %c0_265] : memref<72x80xf32, #tpu.memory_space<vmem>>, vector<4x80xf32>
    tpu.vector_store %arg13[%c36_264, %c0_265], %202 {strides = array<i32>} : memref<72x80xf32, #tpu.memory_space<vmem>>, vector<4x80xf32>,
    %c0_266 = arith.constant 0 : index
    %c0_267 = arith.constant 0 : index
    %c11_268 = arith.constant 11 : index
    %204 = vector.load %arg11[%c0_266, %c0_267, %c11_268] : memref<4x4x110xf32, #tpu.memory_space<vmem>>, vector<1x4x80xf32>
    %205 = vector.shape_cast %204 : vector<1x4x80xf32> to vector<4x80xf32>
    %c4_269 = arith.constant 4 : index
    %c0_270 = arith.constant 0 : index
    %206 = vector.load %arg13[%c4_269, %c0_270] : memref<72x80xf32, #tpu.memory_space<vmem>>, vector<4x80xf32>
    tpu.vector_store %arg13[%c4_269, %c0_270], %205 {strides = array<i32>} : memref<72x80xf32, #tpu.memory_space<vmem>>, vector<4x80xf32>,
    %c0_271 = arith.constant 0 : index
    %c0_272 = arith.constant 0 : index
    %c0_273 = arith.constant 0 : index
    %c11_274 = arith.constant 11 : index
    %207 = vector.load %arg2[%c0_271, %c0_272, %c0_273, %c11_274] : memref<1x4x4x110xf32, #tpu.memory_space<vmem>>, vector<1x1x4x80xf32>
    %208 = vector.shape_cast %207 : vector<1x1x4x80xf32> to vector<4x80xf32>
    %c40_275 = arith.constant 40 : index
    %c0_276 = arith.constant 0 : index
    %209 = vector.load %arg13[%c40_275, %c0_276] : memref<72x80xf32, #tpu.memory_space<vmem>>, vector<4x80xf32>
    tpu.vector_store %arg13[%c40_275, %c0_276], %208 {strides = array<i32>} : memref<72x80xf32, #tpu.memory_space<vmem>>, vector<4x80xf32>,
    %c1_277 = arith.constant 1 : index
    %c0_278 = arith.constant 0 : index
    %c11_279 = arith.constant 11 : index
    %210 = vector.load %arg11[%c1_277, %c0_278, %c11_279] : memref<4x4x110xf32, #tpu.memory_space<vmem>>, vector<1x4x80xf32>
    %211 = vector.shape_cast %210 : vector<1x4x80xf32> to vector<4x80xf32>
    %c8_280 = arith.constant 8 : index
    %c0_281 = arith.constant 0 : index
    %212 = vector.load %arg13[%c8_280, %c0_281] : memref<72x80xf32, #tpu.memory_space<vmem>>, vector<4x80xf32>
    tpu.vector_store %arg13[%c8_280, %c0_281], %211 {strides = array<i32>} : memref<72x80xf32, #tpu.memory_space<vmem>>, vector<4x80xf32>,
    %c0_282 = arith.constant 0 : index
    %c1_283 = arith.constant 1 : index
    %c0_284 = arith.constant 0 : index
    %c11_285 = arith.constant 11 : index
    %213 = vector.load %arg2[%c0_282, %c1_283, %c0_284, %c11_285] : memref<1x4x4x110xf32, #tpu.memory_space<vmem>>, vector<1x1x4x80xf32>
    %214 = vector.shape_cast %213 : vector<1x1x4x80xf32> to vector<4x80xf32>
    %c44_286 = arith.constant 44 : index
    %c0_287 = arith.constant 0 : index
    %215 = vector.load %arg13[%c44_286, %c0_287] : memref<72x80xf32, #tpu.memory_space<vmem>>, vector<4x80xf32>
    tpu.vector_store %arg13[%c44_286, %c0_287], %214 {strides = array<i32>} : memref<72x80xf32, #tpu.memory_space<vmem>>, vector<4x80xf32>,
    %c3_288 = arith.constant 3 : index
    %c0_289 = arith.constant 0 : index
    %c10_290 = arith.constant 10 : index
    %216 = vector.load %arg11[%c3_288, %c0_289, %c10_290] : memref<4x4x110xf32, #tpu.memory_space<vmem>>, vector<1x4x80xf32>
    %217 = vector.shape_cast %216 : vector<1x4x80xf32> to vector<4x80xf32>
    %c12_291 = arith.constant 12 : index
    %c0_292 = arith.constant 0 : index
    %218 = vector.load %arg13[%c12_291, %c0_292] : memref<72x80xf32, #tpu.memory_space<vmem>>, vector<4x80xf32>
    tpu.vector_store %arg13[%c12_291, %c0_292], %217 {strides = array<i32>} : memref<72x80xf32, #tpu.memory_space<vmem>>, vector<4x80xf32>,
    %c0_293 = arith.constant 0 : index
    %c3_294 = arith.constant 3 : index
    %c0_295 = arith.constant 0 : index
    %c10_296 = arith.constant 10 : index
    %219 = vector.load %arg2[%c0_293, %c3_294, %c0_295, %c10_296] : memref<1x4x4x110xf32, #tpu.memory_space<vmem>>, vector<1x1x4x80xf32>
    %220 = vector.shape_cast %219 : vector<1x1x4x80xf32> to vector<4x80xf32>
    %c48_297 = arith.constant 48 : index
    %c0_298 = arith.constant 0 : index
    %221 = vector.load %arg13[%c48_297, %c0_298] : memref<72x80xf32, #tpu.memory_space<vmem>>, vector<4x80xf32>
    tpu.vector_store %arg13[%c48_297, %c0_298], %220 {strides = array<i32>} : memref<72x80xf32, #tpu.memory_space<vmem>>, vector<4x80xf32>,
    %c2_299 = arith.constant 2 : index
    %c0_300 = arith.constant 0 : index
    %c11_301 = arith.constant 11 : index
    %222 = vector.load %arg11[%c2_299, %c0_300, %c11_301] : memref<4x4x110xf32, #tpu.memory_space<vmem>>, vector<1x4x80xf32>
    %223 = vector.shape_cast %222 : vector<1x4x80xf32> to vector<4x80xf32>
    %c16_302 = arith.constant 16 : index
    %c0_303 = arith.constant 0 : index
    %224 = vector.load %arg13[%c16_302, %c0_303] : memref<72x80xf32, #tpu.memory_space<vmem>>, vector<4x80xf32>
    tpu.vector_store %arg13[%c16_302, %c0_303], %223 {strides = array<i32>} : memref<72x80xf32, #tpu.memory_space<vmem>>, vector<4x80xf32>,
    %c0_304 = arith.constant 0 : index
    %c2_305 = arith.constant 2 : index
    %c0_306 = arith.constant 0 : index
    %c11_307 = arith.constant 11 : index
    %225 = vector.load %arg2[%c0_304, %c2_305, %c0_306, %c11_307] : memref<1x4x4x110xf32, #tpu.memory_space<vmem>>, vector<1x1x4x80xf32>
    %226 = vector.shape_cast %225 : vector<1x1x4x80xf32> to vector<4x80xf32>
    %c52_308 = arith.constant 52 : index
    %c0_309 = arith.constant 0 : index
    %227 = vector.load %arg13[%c52_308, %c0_309] : memref<72x80xf32, #tpu.memory_space<vmem>>, vector<4x80xf32>
    tpu.vector_store %arg13[%c52_308, %c0_309], %226 {strides = array<i32>} : memref<72x80xf32, #tpu.memory_space<vmem>>, vector<4x80xf32>,
    %c3_310 = arith.constant 3 : index
    %c0_311 = arith.constant 0 : index
    %c11_312 = arith.constant 11 : index
    %228 = vector.load %arg11[%c3_310, %c0_311, %c11_312] : memref<4x4x110xf32, #tpu.memory_space<vmem>>, vector<1x4x80xf32>
    %229 = vector.shape_cast %228 : vector<1x4x80xf32> to vector<4x80xf32>
    %c20_313 = arith.constant 20 : index
    %c0_314 = arith.constant 0 : index
    %230 = vector.load %arg13[%c20_313, %c0_314] : memref<72x80xf32, #tpu.memory_space<vmem>>, vector<4x80xf32>
    tpu.vector_store %arg13[%c20_313, %c0_314], %229 {strides = array<i32>} : memref<72x80xf32, #tpu.memory_space<vmem>>, vector<4x80xf32>,
    %c0_315 = arith.constant 0 : index
    %c3_316 = arith.constant 3 : index
    %c0_317 = arith.constant 0 : index
    %c11_318 = arith.constant 11 : index
    %231 = vector.load %arg2[%c0_315, %c3_316, %c0_317, %c11_318] : memref<1x4x4x110xf32, #tpu.memory_space<vmem>>, vector<1x1x4x80xf32>
    %232 = vector.shape_cast %231 : vector<1x1x4x80xf32> to vector<4x80xf32>
    %c56_319 = arith.constant 56 : index
    %c0_320 = arith.constant 0 : index
    %233 = vector.load %arg13[%c56_319, %c0_320] : memref<72x80xf32, #tpu.memory_space<vmem>>, vector<4x80xf32>
    tpu.vector_store %arg13[%c56_319, %c0_320], %232 {strides = array<i32>} : memref<72x80xf32, #tpu.memory_space<vmem>>, vector<4x80xf32>,
    %c1_321 = arith.constant 1 : index
    %c0_322 = arith.constant 0 : index
    %c20_323 = arith.constant 20 : index
    %234 = vector.load %arg11[%c1_321, %c0_322, %c20_323] : memref<4x4x110xf32, #tpu.memory_space<vmem>>, vector<1x4x80xf32>
    %235 = vector.shape_cast %234 : vector<1x4x80xf32> to vector<4x80xf32>
    %c24_324 = arith.constant 24 : index
    %c0_325 = arith.constant 0 : index
    %236 = vector.load %arg13[%c24_324, %c0_325] : memref<72x80xf32, #tpu.memory_space<vmem>>, vector<4x80xf32>
    tpu.vector_store %arg13[%c24_324, %c0_325], %235 {strides = array<i32>} : memref<72x80xf32, #tpu.memory_space<vmem>>, vector<4x80xf32>,
    %c0_326 = arith.constant 0 : index
    %c1_327 = arith.constant 1 : index
    %c0_328 = arith.constant 0 : index
    %c20_329 = arith.constant 20 : index
    %237 = vector.load %arg2[%c0_326, %c1_327, %c0_328, %c20_329] : memref<1x4x4x110xf32, #tpu.memory_space<vmem>>, vector<1x1x4x80xf32>
    %238 = vector.shape_cast %237 : vector<1x1x4x80xf32> to vector<4x80xf32>
    %c60_330 = arith.constant 60 : index
    %c0_331 = arith.constant 0 : index
    %239 = vector.load %arg13[%c60_330, %c0_331] : memref<72x80xf32, #tpu.memory_space<vmem>>, vector<4x80xf32>
    tpu.vector_store %arg13[%c60_330, %c0_331], %238 {strides = array<i32>} : memref<72x80xf32, #tpu.memory_space<vmem>>, vector<4x80xf32>,
    %c0_332 = arith.constant 0 : index
    %c0_333 = arith.constant 0 : index
    %c21 = arith.constant 21 : index
    %240 = vector.load %arg11[%c0_332, %c0_333, %c21] : memref<4x4x110xf32, #tpu.memory_space<vmem>>, vector<1x4x80xf32>
    %241 = vector.shape_cast %240 : vector<1x4x80xf32> to vector<4x80xf32>
    %c28_334 = arith.constant 28 : index
    %c0_335 = arith.constant 0 : index
    %242 = vector.load %arg13[%c28_334, %c0_335] : memref<72x80xf32, #tpu.memory_space<vmem>>, vector<4x80xf32>
    tpu.vector_store %arg13[%c28_334, %c0_335], %241 {strides = array<i32>} : memref<72x80xf32, #tpu.memory_space<vmem>>, vector<4x80xf32>,
    %c0_336 = arith.constant 0 : index
    %c0_337 = arith.constant 0 : index
    %c0_338 = arith.constant 0 : index
    %c21_339 = arith.constant 21 : index
    %243 = vector.load %arg2[%c0_336, %c0_337, %c0_338, %c21_339] : memref<1x4x4x110xf32, #tpu.memory_space<vmem>>, vector<1x1x4x80xf32>
    %244 = vector.shape_cast %243 : vector<1x1x4x80xf32> to vector<4x80xf32>
    %c64_340 = arith.constant 64 : index
    %c0_341 = arith.constant 0 : index
    %245 = vector.load %arg13[%c64_340, %c0_341] : memref<72x80xf32, #tpu.memory_space<vmem>>, vector<4x80xf32>
    tpu.vector_store %arg13[%c64_340, %c0_341], %244 {strides = array<i32>} : memref<72x80xf32, #tpu.memory_space<vmem>>, vector<4x80xf32>,
    %c1_342 = arith.constant 1 : index
    %c0_343 = arith.constant 0 : index
    %c21_344 = arith.constant 21 : index
    %246 = vector.load %arg11[%c1_342, %c0_343, %c21_344] : memref<4x4x110xf32, #tpu.memory_space<vmem>>, vector<1x4x80xf32>
    %247 = vector.shape_cast %246 : vector<1x4x80xf32> to vector<4x80xf32>
    %c32_345 = arith.constant 32 : index
    %c0_346 = arith.constant 0 : index
    %248 = vector.load %arg13[%c32_345, %c0_346] : memref<72x80xf32, #tpu.memory_space<vmem>>, vector<4x80xf32>
    tpu.vector_store %arg13[%c32_345, %c0_346], %247 {strides = array<i32>} : memref<72x80xf32, #tpu.memory_space<vmem>>, vector<4x80xf32>,
    %c0_347 = arith.constant 0 : index
    %c1_348 = arith.constant 1 : index
    %c0_349 = arith.constant 0 : index
    %c21_350 = arith.constant 21 : index
    %249 = vector.load %arg2[%c0_347, %c1_348, %c0_349, %c21_350] : memref<1x4x4x110xf32, #tpu.memory_space<vmem>>, vector<1x1x4x80xf32>
    %250 = vector.shape_cast %249 : vector<1x1x4x80xf32> to vector<4x80xf32>
    %c68_351 = arith.constant 68 : index
    %c0_352 = arith.constant 0 : index
    %251 = vector.load %arg13[%c68_351, %c0_352] : memref<72x80xf32, #tpu.memory_space<vmem>>, vector<4x80xf32>
    tpu.vector_store %arg13[%c68_351, %c0_352], %250 {strides = array<i32>} : memref<72x80xf32, #tpu.memory_space<vmem>>, vector<4x80xf32>,
    %c0_353 = arith.constant 0 : index
    %c0_354 = arith.constant 0 : index
    %252 = vector.load %arg6[%c0_353, %c0_354] : memref<4x72xf32, #tpu.memory_space<vmem>>, vector<4x72xf32>
    %c0_355 = arith.constant 0 : index
    %c0_356 = arith.constant 0 : index
    %253 = vector.load %arg13[%c0_355, %c0_356] : memref<72x80xf32, #tpu.memory_space<vmem>>, vector<72x80xf32>
    %cst_357 = arith.constant dense<0.000000e+00> : vector<4x80xf32>
    %254 = tpu.matmul %252, %253, %cst_357 {dimension_numbers = #tpu.dot_dimension_numbers<[1], [0], [0], [1], [0, 0, 1, 1], [], []>} : vector<4x72xf32>, vector<72x80xf32>, vector<4x80xf32> -> vector<4x80xf32>
    %c0_358 = arith.constant 0 : index
    %c0_359 = arith.constant 0 : index
    %255 = vector.load %arg7[%c0_358, %c0_359] : memref<4x1xf32, #tpu.memory_space<vmem>>, vector<4x1xf32>
    %256 = vector.broadcast %255 : vector<4x1xf32> to vector<4x80xf32>
    %257 = arith.addf %254, %256 : vector<4x80xf32>
    %cst_360 = arith.constant 0.000000e+00 : f32
    %258 = vector.broadcast %cst_360 : f32 to vector<4x80xf32>
    %259 = arith.maximumf %257, %258 : vector<4x80xf32>
    %260 = vector.broadcast %0 : vector<1x80xf32> to vector<4x80xf32>
    %261 = arith.mulf %259, %260 : vector<4x80xf32>
    %c2_361 = arith.constant 2 : index
    %c0_362 = arith.constant 0 : index
    %c0_363 = arith.constant 0 : index
    %262 = vector.load %arg12[%c2_361, %c0_362, %c0_363] : memref<4x4x110xf32, #tpu.memory_space<vmem>>, vector<1x4x20xf32>
    %263 = vector.shape_cast %262 : vector<1x4x20xf32> to vector<4x20xf32>
    %264 = vector.shape_cast %51 : vector<4x20xf32> to vector<1x4x20xf32>
    tpu.vector_store %arg12[%c2_361, %c0_362, %c0_363], %264 {strides = array<i32>} : memref<4x4x110xf32, #tpu.memory_space<vmem>>, vector<1x4x20xf32>,
    %c2_364 = arith.constant 2 : index
    %c0_365 = arith.constant 0 : index
    %c90_366 = arith.constant 90 : index
    %265 = vector.load %arg12[%c2_364, %c0_365, %c90_366] : memref<4x4x110xf32, #tpu.memory_space<vmem>>, vector<1x4x20xf32>
    %266 = vector.shape_cast %265 : vector<1x4x20xf32> to vector<4x20xf32>
    %267 = vector.shape_cast %51 : vector<4x20xf32> to vector<1x4x20xf32>
    tpu.vector_store %arg12[%c2_364, %c0_365, %c90_366], %267 {strides = array<i32>} : memref<4x4x110xf32, #tpu.memory_space<vmem>>, vector<1x4x20xf32>,
    %c2_367 = arith.constant 2 : index
    %c0_368 = arith.constant 0 : index
    %c11_369 = arith.constant 11 : index
    %268 = vector.load %arg12[%c2_367, %c0_368, %c11_369] : memref<4x4x110xf32, #tpu.memory_space<vmem>>, vector<1x4x80xf32>
    %269 = vector.shape_cast %268 : vector<1x4x80xf32> to vector<4x80xf32>
    %270 = vector.shape_cast %261 : vector<4x80xf32> to vector<1x4x80xf32>
    tpu.vector_store %arg12[%c2_367, %c0_368, %c11_369], %270 {strides = array<i32>} : memref<4x4x110xf32, #tpu.memory_space<vmem>>, vector<1x4x80xf32>,
    %c0_370 = arith.constant 0 : index
    %c0_371 = arith.constant 0 : index
    %c11_372 = arith.constant 11 : index
    %271 = vector.load %arg11[%c0_370, %c0_371, %c11_372] : memref<4x4x110xf32, #tpu.memory_space<vmem>>, vector<1x4x80xf32>
    %272 = vector.shape_cast %271 : vector<1x4x80xf32> to vector<4x80xf32>
    %c0_373 = arith.constant 0 : index
    %c0_374 = arith.constant 0 : index
    %273 = vector.load %arg13[%c0_373, %c0_374] : memref<72x80xf32, #tpu.memory_space<vmem>>, vector<4x80xf32>
    tpu.vector_store %arg13[%c0_373, %c0_374], %272 {strides = array<i32>} : memref<72x80xf32, #tpu.memory_space<vmem>>, vector<4x80xf32>,
    %c0_375 = arith.constant 0 : index
    %c0_376 = arith.constant 0 : index
    %c0_377 = arith.constant 0 : index
    %c11_378 = arith.constant 11 : index
    %274 = vector.load %arg2[%c0_375, %c0_376, %c0_377, %c11_378] : memref<1x4x4x110xf32, #tpu.memory_space<vmem>>, vector<1x1x4x80xf32>
    %275 = vector.shape_cast %274 : vector<1x1x4x80xf32> to vector<4x80xf32>
    %c36_379 = arith.constant 36 : index
    %c0_380 = arith.constant 0 : index
    %276 = vector.load %arg13[%c36_379, %c0_380] : memref<72x80xf32, #tpu.memory_space<vmem>>, vector<4x80xf32>
    tpu.vector_store %arg13[%c36_379, %c0_380], %275 {strides = array<i32>} : memref<72x80xf32, #tpu.memory_space<vmem>>, vector<4x80xf32>,
    %c1_381 = arith.constant 1 : index
    %c0_382 = arith.constant 0 : index
    %c11_383 = arith.constant 11 : index
    %277 = vector.load %arg11[%c1_381, %c0_382, %c11_383] : memref<4x4x110xf32, #tpu.memory_space<vmem>>, vector<1x4x80xf32>
    %278 = vector.shape_cast %277 : vector<1x4x80xf32> to vector<4x80xf32>
    %c4_384 = arith.constant 4 : index
    %c0_385 = arith.constant 0 : index
    %279 = vector.load %arg13[%c4_384, %c0_385] : memref<72x80xf32, #tpu.memory_space<vmem>>, vector<4x80xf32>
    tpu.vector_store %arg13[%c4_384, %c0_385], %278 {strides = array<i32>} : memref<72x80xf32, #tpu.memory_space<vmem>>, vector<4x80xf32>,
    %c0_386 = arith.constant 0 : index
    %c1_387 = arith.constant 1 : index
    %c0_388 = arith.constant 0 : index
    %c11_389 = arith.constant 11 : index
    %280 = vector.load %arg2[%c0_386, %c1_387, %c0_388, %c11_389] : memref<1x4x4x110xf32, #tpu.memory_space<vmem>>, vector<1x1x4x80xf32>
    %281 = vector.shape_cast %280 : vector<1x1x4x80xf32> to vector<4x80xf32>
    %c40_390 = arith.constant 40 : index
    %c0_391 = arith.constant 0 : index
    %282 = vector.load %arg13[%c40_390, %c0_391] : memref<72x80xf32, #tpu.memory_space<vmem>>, vector<4x80xf32>
    tpu.vector_store %arg13[%c40_390, %c0_391], %281 {strides = array<i32>} : memref<72x80xf32, #tpu.memory_space<vmem>>, vector<4x80xf32>,
    %c0_392 = arith.constant 0 : index
    %c0_393 = arith.constant 0 : index
    %c12_394 = arith.constant 12 : index
    %283 = vector.load %arg11[%c0_392, %c0_393, %c12_394] : memref<4x4x110xf32, #tpu.memory_space<vmem>>, vector<1x4x80xf32>
    %284 = vector.shape_cast %283 : vector<1x4x80xf32> to vector<4x80xf32>
    %c8_395 = arith.constant 8 : index
    %c0_396 = arith.constant 0 : index
    %285 = vector.load %arg13[%c8_395, %c0_396] : memref<72x80xf32, #tpu.memory_space<vmem>>, vector<4x80xf32>
    tpu.vector_store %arg13[%c8_395, %c0_396], %284 {strides = array<i32>} : memref<72x80xf32, #tpu.memory_space<vmem>>, vector<4x80xf32>,
    %c0_397 = arith.constant 0 : index
    %c0_398 = arith.constant 0 : index
    %c0_399 = arith.constant 0 : index
    %c12_400 = arith.constant 12 : index
    %286 = vector.load %arg2[%c0_397, %c0_398, %c0_399, %c12_400] : memref<1x4x4x110xf32, #tpu.memory_space<vmem>>, vector<1x1x4x80xf32>
    %287 = vector.shape_cast %286 : vector<1x1x4x80xf32> to vector<4x80xf32>
    %c44_401 = arith.constant 44 : index
    %c0_402 = arith.constant 0 : index
    %288 = vector.load %arg13[%c44_401, %c0_402] : memref<72x80xf32, #tpu.memory_space<vmem>>, vector<4x80xf32>
    tpu.vector_store %arg13[%c44_401, %c0_402], %287 {strides = array<i32>} : memref<72x80xf32, #tpu.memory_space<vmem>>, vector<4x80xf32>,
    %c2_403 = arith.constant 2 : index
    %c0_404 = arith.constant 0 : index
    %c11_405 = arith.constant 11 : index
    %289 = vector.load %arg11[%c2_403, %c0_404, %c11_405] : memref<4x4x110xf32, #tpu.memory_space<vmem>>, vector<1x4x80xf32>
    %290 = vector.shape_cast %289 : vector<1x4x80xf32> to vector<4x80xf32>
    %c12_406 = arith.constant 12 : index
    %c0_407 = arith.constant 0 : index
    %291 = vector.load %arg13[%c12_406, %c0_407] : memref<72x80xf32, #tpu.memory_space<vmem>>, vector<4x80xf32>
    tpu.vector_store %arg13[%c12_406, %c0_407], %290 {strides = array<i32>} : memref<72x80xf32, #tpu.memory_space<vmem>>, vector<4x80xf32>,
    %c0_408 = arith.constant 0 : index
    %c2_409 = arith.constant 2 : index
    %c0_410 = arith.constant 0 : index
    %c11_411 = arith.constant 11 : index
    %292 = vector.load %arg2[%c0_408, %c2_409, %c0_410, %c11_411] : memref<1x4x4x110xf32, #tpu.memory_space<vmem>>, vector<1x1x4x80xf32>
    %293 = vector.shape_cast %292 : vector<1x1x4x80xf32> to vector<4x80xf32>
    %c48_412 = arith.constant 48 : index
    %c0_413 = arith.constant 0 : index
    %294 = vector.load %arg13[%c48_412, %c0_413] : memref<72x80xf32, #tpu.memory_space<vmem>>, vector<4x80xf32>
    tpu.vector_store %arg13[%c48_412, %c0_413], %293 {strides = array<i32>} : memref<72x80xf32, #tpu.memory_space<vmem>>, vector<4x80xf32>,
    %c3_414 = arith.constant 3 : index
    %c0_415 = arith.constant 0 : index
    %c11_416 = arith.constant 11 : index
    %295 = vector.load %arg11[%c3_414, %c0_415, %c11_416] : memref<4x4x110xf32, #tpu.memory_space<vmem>>, vector<1x4x80xf32>
    %296 = vector.shape_cast %295 : vector<1x4x80xf32> to vector<4x80xf32>
    %c16_417 = arith.constant 16 : index
    %c0_418 = arith.constant 0 : index
    %297 = vector.load %arg13[%c16_417, %c0_418] : memref<72x80xf32, #tpu.memory_space<vmem>>, vector<4x80xf32>
    tpu.vector_store %arg13[%c16_417, %c0_418], %296 {strides = array<i32>} : memref<72x80xf32, #tpu.memory_space<vmem>>, vector<4x80xf32>,
    %c0_419 = arith.constant 0 : index
    %c3_420 = arith.constant 3 : index
    %c0_421 = arith.constant 0 : index
    %c11_422 = arith.constant 11 : index
    %298 = vector.load %arg2[%c0_419, %c3_420, %c0_421, %c11_422] : memref<1x4x4x110xf32, #tpu.memory_space<vmem>>, vector<1x1x4x80xf32>
    %299 = vector.shape_cast %298 : vector<1x1x4x80xf32> to vector<4x80xf32>
    %c52_423 = arith.constant 52 : index
    %c0_424 = arith.constant 0 : index
    %300 = vector.load %arg13[%c52_423, %c0_424] : memref<72x80xf32, #tpu.memory_space<vmem>>, vector<4x80xf32>
    tpu.vector_store %arg13[%c52_423, %c0_424], %299 {strides = array<i32>} : memref<72x80xf32, #tpu.memory_space<vmem>>, vector<4x80xf32>,
    %c2_425 = arith.constant 2 : index
    %c0_426 = arith.constant 0 : index
    %c12_427 = arith.constant 12 : index
    %301 = vector.load %arg11[%c2_425, %c0_426, %c12_427] : memref<4x4x110xf32, #tpu.memory_space<vmem>>, vector<1x4x80xf32>
    %302 = vector.shape_cast %301 : vector<1x4x80xf32> to vector<4x80xf32>
    %c20_428 = arith.constant 20 : index
    %c0_429 = arith.constant 0 : index
    %303 = vector.load %arg13[%c20_428, %c0_429] : memref<72x80xf32, #tpu.memory_space<vmem>>, vector<4x80xf32>
    tpu.vector_store %arg13[%c20_428, %c0_429], %302 {strides = array<i32>} : memref<72x80xf32, #tpu.memory_space<vmem>>, vector<4x80xf32>,
    %c0_430 = arith.constant 0 : index
    %c2_431 = arith.constant 2 : index
    %c0_432 = arith.constant 0 : index
    %c12_433 = arith.constant 12 : index
    %304 = vector.load %arg2[%c0_430, %c2_431, %c0_432, %c12_433] : memref<1x4x4x110xf32, #tpu.memory_space<vmem>>, vector<1x1x4x80xf32>
    %305 = vector.shape_cast %304 : vector<1x1x4x80xf32> to vector<4x80xf32>
    %c56_434 = arith.constant 56 : index
    %c0_435 = arith.constant 0 : index
    %306 = vector.load %arg13[%c56_434, %c0_435] : memref<72x80xf32, #tpu.memory_space<vmem>>, vector<4x80xf32>
    tpu.vector_store %arg13[%c56_434, %c0_435], %305 {strides = array<i32>} : memref<72x80xf32, #tpu.memory_space<vmem>>, vector<4x80xf32>,
    %c0_436 = arith.constant 0 : index
    %c0_437 = arith.constant 0 : index
    %c21_438 = arith.constant 21 : index
    %307 = vector.load %arg11[%c0_436, %c0_437, %c21_438] : memref<4x4x110xf32, #tpu.memory_space<vmem>>, vector<1x4x80xf32>
    %308 = vector.shape_cast %307 : vector<1x4x80xf32> to vector<4x80xf32>
    %c24_439 = arith.constant 24 : index
    %c0_440 = arith.constant 0 : index
    %309 = vector.load %arg13[%c24_439, %c0_440] : memref<72x80xf32, #tpu.memory_space<vmem>>, vector<4x80xf32>
    tpu.vector_store %arg13[%c24_439, %c0_440], %308 {strides = array<i32>} : memref<72x80xf32, #tpu.memory_space<vmem>>, vector<4x80xf32>,
    %c0_441 = arith.constant 0 : index
    %c0_442 = arith.constant 0 : index
    %c0_443 = arith.constant 0 : index
    %c21_444 = arith.constant 21 : index
    %310 = vector.load %arg2[%c0_441, %c0_442, %c0_443, %c21_444] : memref<1x4x4x110xf32, #tpu.memory_space<vmem>>, vector<1x1x4x80xf32>
    %311 = vector.shape_cast %310 : vector<1x1x4x80xf32> to vector<4x80xf32>
    %c60_445 = arith.constant 60 : index
    %c0_446 = arith.constant 0 : index
    %312 = vector.load %arg13[%c60_445, %c0_446] : memref<72x80xf32, #tpu.memory_space<vmem>>, vector<4x80xf32>
    tpu.vector_store %arg13[%c60_445, %c0_446], %311 {strides = array<i32>} : memref<72x80xf32, #tpu.memory_space<vmem>>, vector<4x80xf32>,
    %c1_447 = arith.constant 1 : index
    %c0_448 = arith.constant 0 : index
    %c21_449 = arith.constant 21 : index
    %313 = vector.load %arg11[%c1_447, %c0_448, %c21_449] : memref<4x4x110xf32, #tpu.memory_space<vmem>>, vector<1x4x80xf32>
    %314 = vector.shape_cast %313 : vector<1x4x80xf32> to vector<4x80xf32>
    %c28_450 = arith.constant 28 : index
    %c0_451 = arith.constant 0 : index
    %315 = vector.load %arg13[%c28_450, %c0_451] : memref<72x80xf32, #tpu.memory_space<vmem>>, vector<4x80xf32>
    tpu.vector_store %arg13[%c28_450, %c0_451], %314 {strides = array<i32>} : memref<72x80xf32, #tpu.memory_space<vmem>>, vector<4x80xf32>,
    %c0_452 = arith.constant 0 : index
    %c1_453 = arith.constant 1 : index
    %c0_454 = arith.constant 0 : index
    %c21_455 = arith.constant 21 : index
    %316 = vector.load %arg2[%c0_452, %c1_453, %c0_454, %c21_455] : memref<1x4x4x110xf32, #tpu.memory_space<vmem>>, vector<1x1x4x80xf32>
    %317 = vector.shape_cast %316 : vector<1x1x4x80xf32> to vector<4x80xf32>
    %c64_456 = arith.constant 64 : index
    %c0_457 = arith.constant 0 : index
    %318 = vector.load %arg13[%c64_456, %c0_457] : memref<72x80xf32, #tpu.memory_space<vmem>>, vector<4x80xf32>
    tpu.vector_store %arg13[%c64_456, %c0_457], %317 {strides = array<i32>} : memref<72x80xf32, #tpu.memory_space<vmem>>, vector<4x80xf32>,
    %c0_458 = arith.constant 0 : index
    %c0_459 = arith.constant 0 : index
    %c22 = arith.constant 22 : index
    %319 = vector.load %arg11[%c0_458, %c0_459, %c22] : memref<4x4x110xf32, #tpu.memory_space<vmem>>, vector<1x4x80xf32>
    %320 = vector.shape_cast %319 : vector<1x4x80xf32> to vector<4x80xf32>
    %c32_460 = arith.constant 32 : index
    %c0_461 = arith.constant 0 : index
    %321 = vector.load %arg13[%c32_460, %c0_461] : memref<72x80xf32, #tpu.memory_space<vmem>>, vector<4x80xf32>
    tpu.vector_store %arg13[%c32_460, %c0_461], %320 {strides = array<i32>} : memref<72x80xf32, #tpu.memory_space<vmem>>, vector<4x80xf32>,
    %c0_462 = arith.constant 0 : index
    %c0_463 = arith.constant 0 : index
    %c0_464 = arith.constant 0 : index
    %c22_465 = arith.constant 22 : index
    %322 = vector.load %arg2[%c0_462, %c0_463, %c0_464, %c22_465] : memref<1x4x4x110xf32, #tpu.memory_space<vmem>>, vector<1x1x4x80xf32>
    %323 = vector.shape_cast %322 : vector<1x1x4x80xf32> to vector<4x80xf32>
    %c68_466 = arith.constant 68 : index
    %c0_467 = arith.constant 0 : index
    %324 = vector.load %arg13[%c68_466, %c0_467] : memref<72x80xf32, #tpu.memory_space<vmem>>, vector<4x80xf32>
    tpu.vector_store %arg13[%c68_466, %c0_467], %323 {strides = array<i32>} : memref<72x80xf32, #tpu.memory_space<vmem>>, vector<4x80xf32>,
    %c0_468 = arith.constant 0 : index
    %c0_469 = arith.constant 0 : index
    %325 = vector.load %arg6[%c0_468, %c0_469] : memref<4x72xf32, #tpu.memory_space<vmem>>, vector<4x72xf32>
    %c0_470 = arith.constant 0 : index
    %c0_471 = arith.constant 0 : index
    %326 = vector.load %arg13[%c0_470, %c0_471] : memref<72x80xf32, #tpu.memory_space<vmem>>, vector<72x80xf32>
    %cst_472 = arith.constant dense<0.000000e+00> : vector<4x80xf32>
    %327 = tpu.matmul %325, %326, %cst_472 {dimension_numbers = #tpu.dot_dimension_numbers<[1], [0], [0], [1], [0, 0, 1, 1], [], []>} : vector<4x72xf32>, vector<72x80xf32>, vector<4x80xf32> -> vector<4x80xf32>
    %c0_473 = arith.constant 0 : index
    %c0_474 = arith.constant 0 : index
    %328 = vector.load %arg7[%c0_473, %c0_474] : memref<4x1xf32, #tpu.memory_space<vmem>>, vector<4x1xf32>
    %329 = vector.broadcast %328 : vector<4x1xf32> to vector<4x80xf32>
    %330 = arith.addf %327, %329 : vector<4x80xf32>
    %cst_475 = arith.constant 0.000000e+00 : f32
    %331 = vector.broadcast %cst_475 : f32 to vector<4x80xf32>
    %332 = arith.maximumf %330, %331 : vector<4x80xf32>
    %333 = vector.broadcast %0 : vector<1x80xf32> to vector<4x80xf32>
    %334 = arith.mulf %332, %333 : vector<4x80xf32>
    %c3_476 = arith.constant 3 : index
    %c0_477 = arith.constant 0 : index
    %c0_478 = arith.constant 0 : index
    %335 = vector.load %arg12[%c3_476, %c0_477, %c0_478] : memref<4x4x110xf32, #tpu.memory_space<vmem>>, vector<1x4x20xf32>
    %336 = vector.shape_cast %335 : vector<1x4x20xf32> to vector<4x20xf32>
    %337 = vector.shape_cast %51 : vector<4x20xf32> to vector<1x4x20xf32>
    tpu.vector_store %arg12[%c3_476, %c0_477, %c0_478], %337 {strides = array<i32>} : memref<4x4x110xf32, #tpu.memory_space<vmem>>, vector<1x4x20xf32>,
    %c3_479 = arith.constant 3 : index
    %c0_480 = arith.constant 0 : index
    %c90_481 = arith.constant 90 : index
    %338 = vector.load %arg12[%c3_479, %c0_480, %c90_481] : memref<4x4x110xf32, #tpu.memory_space<vmem>>, vector<1x4x20xf32>
    %339 = vector.shape_cast %338 : vector<1x4x20xf32> to vector<4x20xf32>
    %340 = vector.shape_cast %51 : vector<4x20xf32> to vector<1x4x20xf32>
    tpu.vector_store %arg12[%c3_479, %c0_480, %c90_481], %340 {strides = array<i32>} : memref<4x4x110xf32, #tpu.memory_space<vmem>>, vector<1x4x20xf32>,
    %c3_482 = arith.constant 3 : index
    %c0_483 = arith.constant 0 : index
    %c11_484 = arith.constant 11 : index
    %341 = vector.load %arg12[%c3_482, %c0_483, %c11_484] : memref<4x4x110xf32, #tpu.memory_space<vmem>>, vector<1x4x80xf32>
    %342 = vector.shape_cast %341 : vector<1x4x80xf32> to vector<4x80xf32>
    %343 = vector.shape_cast %334 : vector<4x80xf32> to vector<1x4x80xf32>
    tpu.vector_store %arg12[%c3_482, %c0_483, %c11_484], %343 {strides = array<i32>} : memref<4x4x110xf32, #tpu.memory_space<vmem>>, vector<1x4x80xf32>,
    %c3_485 = arith.constant 3 : index
    %c0_486 = arith.constant 0 : index
    %c0_487 = arith.constant 0 : index
    %344 = vector.load %arg12[%c3_485, %c0_486, %c0_487] : memref<4x4x110xf32, #tpu.memory_space<vmem>>, vector<1x4x80xf32>
    %345 = vector.shape_cast %344 : vector<1x4x80xf32> to vector<4x80xf32>
    %c0_488 = arith.constant 0 : index
    %c0_489 = arith.constant 0 : index
    %346 = vector.load %arg13[%c0_488, %c0_489] : memref<72x80xf32, #tpu.memory_space<vmem>>, vector<4x80xf32>
    tpu.vector_store %arg13[%c0_488, %c0_489], %345 {strides = array<i32>} : memref<72x80xf32, #tpu.memory_space<vmem>>, vector<4x80xf32>,
    %c2_490 = arith.constant 2 : index
    %c0_491 = arith.constant 0 : index
    %c1_492 = arith.constant 1 : index
    %347 = vector.load %arg12[%c2_490, %c0_491, %c1_492] : memref<4x4x110xf32, #tpu.memory_space<vmem>>, vector<1x4x80xf32>
    %348 = vector.shape_cast %347 : vector<1x4x80xf32> to vector<4x80xf32>
    %c4_493 = arith.constant 4 : index
    %c0_494 = arith.constant 0 : index
    %349 = vector.load %arg13[%c4_493, %c0_494] : memref<72x80xf32, #tpu.memory_space<vmem>>, vector<4x80xf32>
    tpu.vector_store %arg13[%c4_493, %c0_494], %348 {strides = array<i32>} : memref<72x80xf32, #tpu.memory_space<vmem>>, vector<4x80xf32>,
    %c3_495 = arith.constant 3 : index
    %c0_496 = arith.constant 0 : index
    %c1_497 = arith.constant 1 : index
    %350 = vector.load %arg12[%c3_495, %c0_496, %c1_497] : memref<4x4x110xf32, #tpu.memory_space<vmem>>, vector<1x4x80xf32>
    %351 = vector.shape_cast %350 : vector<1x4x80xf32> to vector<4x80xf32>
    %c8_498 = arith.constant 8 : index
    %c0_499 = arith.constant 0 : index
    %352 = vector.load %arg13[%c8_498, %c0_499] : memref<72x80xf32, #tpu.memory_space<vmem>>, vector<4x80xf32>
    tpu.vector_store %arg13[%c8_498, %c0_499], %351 {strides = array<i32>} : memref<72x80xf32, #tpu.memory_space<vmem>>, vector<4x80xf32>,
    %c1_500 = arith.constant 1 : index
    %c0_501 = arith.constant 0 : index
    %c10_502 = arith.constant 10 : index
    %353 = vector.load %arg12[%c1_500, %c0_501, %c10_502] : memref<4x4x110xf32, #tpu.memory_space<vmem>>, vector<1x4x80xf32>
    %354 = vector.shape_cast %353 : vector<1x4x80xf32> to vector<4x80xf32>
    %c12_503 = arith.constant 12 : index
    %c0_504 = arith.constant 0 : index
    %355 = vector.load %arg13[%c12_503, %c0_504] : memref<72x80xf32, #tpu.memory_space<vmem>>, vector<4x80xf32>
    tpu.vector_store %arg13[%c12_503, %c0_504], %354 {strides = array<i32>} : memref<72x80xf32, #tpu.memory_space<vmem>>, vector<4x80xf32>,
    %c0_505 = arith.constant 0 : index
    %c0_506 = arith.constant 0 : index
    %c11_507 = arith.constant 11 : index
    %356 = vector.load %arg12[%c0_505, %c0_506, %c11_507] : memref<4x4x110xf32, #tpu.memory_space<vmem>>, vector<1x4x80xf32>
    %357 = vector.shape_cast %356 : vector<1x4x80xf32> to vector<4x80xf32>
    %c16_508 = arith.constant 16 : index
    %c0_509 = arith.constant 0 : index
    %358 = vector.load %arg13[%c16_508, %c0_509] : memref<72x80xf32, #tpu.memory_space<vmem>>, vector<4x80xf32>
    tpu.vector_store %arg13[%c16_508, %c0_509], %357 {strides = array<i32>} : memref<72x80xf32, #tpu.memory_space<vmem>>, vector<4x80xf32>,
    %c1_510 = arith.constant 1 : index
    %c0_511 = arith.constant 0 : index
    %c11_512 = arith.constant 11 : index
    %359 = vector.load %arg12[%c1_510, %c0_511, %c11_512] : memref<4x4x110xf32, #tpu.memory_space<vmem>>, vector<1x4x80xf32>
    %360 = vector.shape_cast %359 : vector<1x4x80xf32> to vector<4x80xf32>
    %c20_513 = arith.constant 20 : index
    %c0_514 = arith.constant 0 : index
    %361 = vector.load %arg13[%c20_513, %c0_514] : memref<72x80xf32, #tpu.memory_space<vmem>>, vector<4x80xf32>
    tpu.vector_store %arg13[%c20_513, %c0_514], %360 {strides = array<i32>} : memref<72x80xf32, #tpu.memory_space<vmem>>, vector<4x80xf32>,
    %c3_515 = arith.constant 3 : index
    %c0_516 = arith.constant 0 : index
    %c10_517 = arith.constant 10 : index
    %362 = vector.load %arg12[%c3_515, %c0_516, %c10_517] : memref<4x4x110xf32, #tpu.memory_space<vmem>>, vector<1x4x80xf32>
    %363 = vector.shape_cast %362 : vector<1x4x80xf32> to vector<4x80xf32>
    %c24_518 = arith.constant 24 : index
    %c0_519 = arith.constant 0 : index
    %364 = vector.load %arg13[%c24_518, %c0_519] : memref<72x80xf32, #tpu.memory_space<vmem>>, vector<4x80xf32>
    tpu.vector_store %arg13[%c24_518, %c0_519], %363 {strides = array<i32>} : memref<72x80xf32, #tpu.memory_space<vmem>>, vector<4x80xf32>,
    %c2_520 = arith.constant 2 : index
    %c0_521 = arith.constant 0 : index
    %c11_522 = arith.constant 11 : index
    %365 = vector.load %arg12[%c2_520, %c0_521, %c11_522] : memref<4x4x110xf32, #tpu.memory_space<vmem>>, vector<1x4x80xf32>
    %366 = vector.shape_cast %365 : vector<1x4x80xf32> to vector<4x80xf32>
    %c28_523 = arith.constant 28 : index
    %c0_524 = arith.constant 0 : index
    %367 = vector.load %arg13[%c28_523, %c0_524] : memref<72x80xf32, #tpu.memory_space<vmem>>, vector<4x80xf32>
    tpu.vector_store %arg13[%c28_523, %c0_524], %366 {strides = array<i32>} : memref<72x80xf32, #tpu.memory_space<vmem>>, vector<4x80xf32>,
    %c3_525 = arith.constant 3 : index
    %c0_526 = arith.constant 0 : index
    %c11_527 = arith.constant 11 : index
    %368 = vector.load %arg12[%c3_525, %c0_526, %c11_527] : memref<4x4x110xf32, #tpu.memory_space<vmem>>, vector<1x4x80xf32>
    %369 = vector.shape_cast %368 : vector<1x4x80xf32> to vector<4x80xf32>
    %c32_528 = arith.constant 32 : index
    %c0_529 = arith.constant 0 : index
    %370 = vector.load %arg13[%c32_528, %c0_529] : memref<72x80xf32, #tpu.memory_space<vmem>>, vector<4x80xf32>
    tpu.vector_store %arg13[%c32_528, %c0_529], %369 {strides = array<i32>} : memref<72x80xf32, #tpu.memory_space<vmem>>, vector<4x80xf32>,
    %c0_530 = arith.constant 0 : index
    %c0_531 = arith.constant 0 : index
    %371 = vector.load %arg8[%c0_530, %c0_531] : memref<4x36xf32, #tpu.memory_space<vmem>>, vector<4x36xf32>
    %c0_532 = arith.constant 0 : index
    %c0_533 = arith.constant 0 : index
    %372 = vector.load %arg13[%c0_532, %c0_533] : memref<72x80xf32, #tpu.memory_space<vmem>>, vector<36x80xf32>
    %cst_534 = arith.constant dense<0.000000e+00> : vector<4x80xf32>
    %373 = tpu.matmul %371, %372, %cst_534 {dimension_numbers = #tpu.dot_dimension_numbers<[1], [0], [0], [1], [0, 0, 1, 1], [], []>} : vector<4x36xf32>, vector<36x80xf32>, vector<4x80xf32> -> vector<4x80xf32>
    %c0_535 = arith.constant 0 : index
    %c0_536 = arith.constant 0 : index
    %374 = vector.load %arg9[%c0_535, %c0_536] : memref<4x1xf32, #tpu.memory_space<vmem>>, vector<4x1xf32>
    %375 = vector.broadcast %374 : vector<4x1xf32> to vector<4x80xf32>
    %376 = arith.addf %373, %375 : vector<4x80xf32>
    %cst_537 = arith.constant 0.000000e+00 : f32
    %377 = vector.broadcast %cst_537 : f32 to vector<4x80xf32>
    %378 = arith.maximumf %376, %377 : vector<4x80xf32>
    %c0_538 = arith.constant 0 : index
    %c0_539 = arith.constant 0 : index
    %c0_540 = arith.constant 0 : index
    %c0_541 = arith.constant 0 : index
    %379 = vector.load %arg10[%c0_538, %c0_539, %c0_540, %c0_541] : memref<1x4x4x80xf32, #tpu.memory_space<vmem>>, vector<1x1x4x80xf32>
    %380 = vector.shape_cast %379 : vector<1x1x4x80xf32> to vector<4x80xf32>
    %381 = vector.shape_cast %378 : vector<4x80xf32> to vector<1x1x4x80xf32>
    tpu.vector_store %arg10[%c0_538, %c0_539, %c0_540, %c0_541], %381 {strides = array<i32>} : memref<1x4x4x80xf32, #tpu.memory_space<vmem>>, vector<1x1x4x80xf32>,
    %c2_542 = arith.constant 2 : index
    %c0_543 = arith.constant 0 : index
    %c1_544 = arith.constant 1 : index
    %382 = vector.load %arg12[%c2_542, %c0_543, %c1_544] : memref<4x4x110xf32, #tpu.memory_space<vmem>>, vector<1x4x80xf32>
    %383 = vector.shape_cast %382 : vector<1x4x80xf32> to vector<4x80xf32>
    %c0_545 = arith.constant 0 : index
    %c0_546 = arith.constant 0 : index
    %384 = vector.load %arg13[%c0_545, %c0_546] : memref<72x80xf32, #tpu.memory_space<vmem>>, vector<4x80xf32>
    tpu.vector_store %arg13[%c0_545, %c0_546], %383 {strides = array<i32>} : memref<72x80xf32, #tpu.memory_space<vmem>>, vector<4x80xf32>,
    %c3_547 = arith.constant 3 : index
    %c0_548 = arith.constant 0 : index
    %c1_549 = arith.constant 1 : index
    %385 = vector.load %arg12[%c3_547, %c0_548, %c1_549] : memref<4x4x110xf32, #tpu.memory_space<vmem>>, vector<1x4x80xf32>
    %386 = vector.shape_cast %385 : vector<1x4x80xf32> to vector<4x80xf32>
    %c4_550 = arith.constant 4 : index
    %c0_551 = arith.constant 0 : index
    %387 = vector.load %arg13[%c4_550, %c0_551] : memref<72x80xf32, #tpu.memory_space<vmem>>, vector<4x80xf32>
    tpu.vector_store %arg13[%c4_550, %c0_551], %386 {strides = array<i32>} : memref<72x80xf32, #tpu.memory_space<vmem>>, vector<4x80xf32>,
    %c2_552 = arith.constant 2 : index
    %c0_553 = arith.constant 0 : index
    %c2_554 = arith.constant 2 : index
    %388 = vector.load %arg12[%c2_552, %c0_553, %c2_554] : memref<4x4x110xf32, #tpu.memory_space<vmem>>, vector<1x4x80xf32>
    %389 = vector.shape_cast %388 : vector<1x4x80xf32> to vector<4x80xf32>
    %c8_555 = arith.constant 8 : index
    %c0_556 = arith.constant 0 : index
    %390 = vector.load %arg13[%c8_555, %c0_556] : memref<72x80xf32, #tpu.memory_space<vmem>>, vector<4x80xf32>
    tpu.vector_store %arg13[%c8_555, %c0_556], %389 {strides = array<i32>} : memref<72x80xf32, #tpu.memory_space<vmem>>, vector<4x80xf32>,
    %c0_557 = arith.constant 0 : index
    %c0_558 = arith.constant 0 : index
    %c11_559 = arith.constant 11 : index
    %391 = vector.load %arg12[%c0_557, %c0_558, %c11_559] : memref<4x4x110xf32, #tpu.memory_space<vmem>>, vector<1x4x80xf32>
    %392 = vector.shape_cast %391 : vector<1x4x80xf32> to vector<4x80xf32>
    %c12_560 = arith.constant 12 : index
    %c0_561 = arith.constant 0 : index
    %393 = vector.load %arg13[%c12_560, %c0_561] : memref<72x80xf32, #tpu.memory_space<vmem>>, vector<4x80xf32>
    tpu.vector_store %arg13[%c12_560, %c0_561], %392 {strides = array<i32>} : memref<72x80xf32, #tpu.memory_space<vmem>>, vector<4x80xf32>,
    %c1_562 = arith.constant 1 : index
    %c0_563 = arith.constant 0 : index
    %c11_564 = arith.constant 11 : index
    %394 = vector.load %arg12[%c1_562, %c0_563, %c11_564] : memref<4x4x110xf32, #tpu.memory_space<vmem>>, vector<1x4x80xf32>
    %395 = vector.shape_cast %394 : vector<1x4x80xf32> to vector<4x80xf32>
    %c16_565 = arith.constant 16 : index
    %c0_566 = arith.constant 0 : index
    %396 = vector.load %arg13[%c16_565, %c0_566] : memref<72x80xf32, #tpu.memory_space<vmem>>, vector<4x80xf32>
    tpu.vector_store %arg13[%c16_565, %c0_566], %395 {strides = array<i32>} : memref<72x80xf32, #tpu.memory_space<vmem>>, vector<4x80xf32>,
    %c0_567 = arith.constant 0 : index
    %c0_568 = arith.constant 0 : index
    %c12_569 = arith.constant 12 : index
    %397 = vector.load %arg12[%c0_567, %c0_568, %c12_569] : memref<4x4x110xf32, #tpu.memory_space<vmem>>, vector<1x4x80xf32>
    %398 = vector.shape_cast %397 : vector<1x4x80xf32> to vector<4x80xf32>
    %c20_570 = arith.constant 20 : index
    %c0_571 = arith.constant 0 : index
    %399 = vector.load %arg13[%c20_570, %c0_571] : memref<72x80xf32, #tpu.memory_space<vmem>>, vector<4x80xf32>
    tpu.vector_store %arg13[%c20_570, %c0_571], %398 {strides = array<i32>} : memref<72x80xf32, #tpu.memory_space<vmem>>, vector<4x80xf32>,
    %c2_572 = arith.constant 2 : index
    %c0_573 = arith.constant 0 : index
    %c11_574 = arith.constant 11 : index
    %400 = vector.load %arg12[%c2_572, %c0_573, %c11_574] : memref<4x4x110xf32, #tpu.memory_space<vmem>>, vector<1x4x80xf32>
    %401 = vector.shape_cast %400 : vector<1x4x80xf32> to vector<4x80xf32>
    %c24_575 = arith.constant 24 : index
    %c0_576 = arith.constant 0 : index
    %402 = vector.load %arg13[%c24_575, %c0_576] : memref<72x80xf32, #tpu.memory_space<vmem>>, vector<4x80xf32>
    tpu.vector_store %arg13[%c24_575, %c0_576], %401 {strides = array<i32>} : memref<72x80xf32, #tpu.memory_space<vmem>>, vector<4x80xf32>,
    %c3_577 = arith.constant 3 : index
    %c0_578 = arith.constant 0 : index
    %c11_579 = arith.constant 11 : index
    %403 = vector.load %arg12[%c3_577, %c0_578, %c11_579] : memref<4x4x110xf32, #tpu.memory_space<vmem>>, vector<1x4x80xf32>
    %404 = vector.shape_cast %403 : vector<1x4x80xf32> to vector<4x80xf32>
    %c28_580 = arith.constant 28 : index
    %c0_581 = arith.constant 0 : index
    %405 = vector.load %arg13[%c28_580, %c0_581] : memref<72x80xf32, #tpu.memory_space<vmem>>, vector<4x80xf32>
    tpu.vector_store %arg13[%c28_580, %c0_581], %404 {strides = array<i32>} : memref<72x80xf32, #tpu.memory_space<vmem>>, vector<4x80xf32>,
    %c2_582 = arith.constant 2 : index
    %c0_583 = arith.constant 0 : index
    %c12_584 = arith.constant 12 : index
    %406 = vector.load %arg12[%c2_582, %c0_583, %c12_584] : memref<4x4x110xf32, #tpu.memory_space<vmem>>, vector<1x4x80xf32>
    %407 = vector.shape_cast %406 : vector<1x4x80xf32> to vector<4x80xf32>
    %c32_585 = arith.constant 32 : index
    %c0_586 = arith.constant 0 : index
    %408 = vector.load %arg13[%c32_585, %c0_586] : memref<72x80xf32, #tpu.memory_space<vmem>>, vector<4x80xf32>
    tpu.vector_store %arg13[%c32_585, %c0_586], %407 {strides = array<i32>} : memref<72x80xf32, #tpu.memory_space<vmem>>, vector<4x80xf32>,
    %c0_587 = arith.constant 0 : index
    %c0_588 = arith.constant 0 : index
    %409 = vector.load %arg8[%c0_587, %c0_588] : memref<4x36xf32, #tpu.memory_space<vmem>>, vector<4x36xf32>
    %c0_589 = arith.constant 0 : index
    %c0_590 = arith.constant 0 : index
    %410 = vector.load %arg13[%c0_589, %c0_590] : memref<72x80xf32, #tpu.memory_space<vmem>>, vector<36x80xf32>
    %cst_591 = arith.constant dense<0.000000e+00> : vector<4x80xf32>
    %411 = tpu.matmul %409, %410, %cst_591 {dimension_numbers = #tpu.dot_dimension_numbers<[1], [0], [0], [1], [0, 0, 1, 1], [], []>} : vector<4x36xf32>, vector<36x80xf32>, vector<4x80xf32> -> vector<4x80xf32>
    %c0_592 = arith.constant 0 : index
    %c0_593 = arith.constant 0 : index
    %412 = vector.load %arg9[%c0_592, %c0_593] : memref<4x1xf32, #tpu.memory_space<vmem>>, vector<4x1xf32>
    %413 = vector.broadcast %412 : vector<4x1xf32> to vector<4x80xf32>
    %414 = arith.addf %411, %413 : vector<4x80xf32>
    %cst_594 = arith.constant 0.000000e+00 : f32
    %415 = vector.broadcast %cst_594 : f32 to vector<4x80xf32>
    %416 = arith.maximumf %414, %415 : vector<4x80xf32>
    %c0_595 = arith.constant 0 : index
    %c1_596 = arith.constant 1 : index
    %c0_597 = arith.constant 0 : index
    %c0_598 = arith.constant 0 : index
    %417 = vector.load %arg10[%c0_595, %c1_596, %c0_597, %c0_598] : memref<1x4x4x80xf32, #tpu.memory_space<vmem>>, vector<1x1x4x80xf32>
    %418 = vector.shape_cast %417 : vector<1x1x4x80xf32> to vector<4x80xf32>
    %419 = vector.shape_cast %416 : vector<4x80xf32> to vector<1x1x4x80xf32>
    tpu.vector_store %arg10[%c0_595, %c1_596, %c0_597, %c0_598], %419 {strides = array<i32>} : memref<1x4x4x80xf32, #tpu.memory_space<vmem>>, vector<1x1x4x80xf32>,
    %c1_599 = arith.constant 1 : index
    %c0_600 = arith.constant 0 : index
    %c10_601 = arith.constant 10 : index
    %420 = vector.load %arg12[%c1_599, %c0_600, %c10_601] : memref<4x4x110xf32, #tpu.memory_space<vmem>>, vector<1x4x80xf32>
    %421 = vector.shape_cast %420 : vector<1x4x80xf32> to vector<4x80xf32>
    %c0_602 = arith.constant 0 : index
    %c0_603 = arith.constant 0 : index
    %422 = vector.load %arg13[%c0_602, %c0_603] : memref<72x80xf32, #tpu.memory_space<vmem>>, vector<4x80xf32>
    tpu.vector_store %arg13[%c0_602, %c0_603], %421 {strides = array<i32>} : memref<72x80xf32, #tpu.memory_space<vmem>>, vector<4x80xf32>,
    %c0_604 = arith.constant 0 : index
    %c0_605 = arith.constant 0 : index
    %c11_606 = arith.constant 11 : index
    %423 = vector.load %arg12[%c0_604, %c0_605, %c11_606] : memref<4x4x110xf32, #tpu.memory_space<vmem>>, vector<1x4x80xf32>
    %424 = vector.shape_cast %423 : vector<1x4x80xf32> to vector<4x80xf32>
    %c4_607 = arith.constant 4 : index
    %c0_608 = arith.constant 0 : index
    %425 = vector.load %arg13[%c4_607, %c0_608] : memref<72x80xf32, #tpu.memory_space<vmem>>, vector<4x80xf32>
    tpu.vector_store %arg13[%c4_607, %c0_608], %424 {strides = array<i32>} : memref<72x80xf32, #tpu.memory_space<vmem>>, vector<4x80xf32>,
    %c1_609 = arith.constant 1 : index
    %c0_610 = arith.constant 0 : index
    %c11_611 = arith.constant 11 : index
    %426 = vector.load %arg12[%c1_609, %c0_610, %c11_611] : memref<4x4x110xf32, #tpu.memory_space<vmem>>, vector<1x4x80xf32>
    %427 = vector.shape_cast %426 : vector<1x4x80xf32> to vector<4x80xf32>
    %c8_612 = arith.constant 8 : index
    %c0_613 = arith.constant 0 : index
    %428 = vector.load %arg13[%c8_612, %c0_613] : memref<72x80xf32, #tpu.memory_space<vmem>>, vector<4x80xf32>
    tpu.vector_store %arg13[%c8_612, %c0_613], %427 {strides = array<i32>} : memref<72x80xf32, #tpu.memory_space<vmem>>, vector<4x80xf32>,
    %c3_614 = arith.constant 3 : index
    %c0_615 = arith.constant 0 : index
    %c10_616 = arith.constant 10 : index
    %429 = vector.load %arg12[%c3_614, %c0_615, %c10_616] : memref<4x4x110xf32, #tpu.memory_space<vmem>>, vector<1x4x80xf32>
    %430 = vector.shape_cast %429 : vector<1x4x80xf32> to vector<4x80xf32>
    %c12_617 = arith.constant 12 : index
    %c0_618 = arith.constant 0 : index
    %431 = vector.load %arg13[%c12_617, %c0_618] : memref<72x80xf32, #tpu.memory_space<vmem>>, vector<4x80xf32>
    tpu.vector_store %arg13[%c12_617, %c0_618], %430 {strides = array<i32>} : memref<72x80xf32, #tpu.memory_space<vmem>>, vector<4x80xf32>,
    %c2_619 = arith.constant 2 : index
    %c0_620 = arith.constant 0 : index
    %c11_621 = arith.constant 11 : index
    %432 = vector.load %arg12[%c2_619, %c0_620, %c11_621] : memref<4x4x110xf32, #tpu.memory_space<vmem>>, vector<1x4x80xf32>
    %433 = vector.shape_cast %432 : vector<1x4x80xf32> to vector<4x80xf32>
    %c16_622 = arith.constant 16 : index
    %c0_623 = arith.constant 0 : index
    %434 = vector.load %arg13[%c16_622, %c0_623] : memref<72x80xf32, #tpu.memory_space<vmem>>, vector<4x80xf32>
    tpu.vector_store %arg13[%c16_622, %c0_623], %433 {strides = array<i32>} : memref<72x80xf32, #tpu.memory_space<vmem>>, vector<4x80xf32>,
    %c3_624 = arith.constant 3 : index
    %c0_625 = arith.constant 0 : index
    %c11_626 = arith.constant 11 : index
    %435 = vector.load %arg12[%c3_624, %c0_625, %c11_626] : memref<4x4x110xf32, #tpu.memory_space<vmem>>, vector<1x4x80xf32>
    %436 = vector.shape_cast %435 : vector<1x4x80xf32> to vector<4x80xf32>
    %c20_627 = arith.constant 20 : index
    %c0_628 = arith.constant 0 : index
    %437 = vector.load %arg13[%c20_627, %c0_628] : memref<72x80xf32, #tpu.memory_space<vmem>>, vector<4x80xf32>
    tpu.vector_store %arg13[%c20_627, %c0_628], %436 {strides = array<i32>} : memref<72x80xf32, #tpu.memory_space<vmem>>, vector<4x80xf32>,
    %c1_629 = arith.constant 1 : index
    %c0_630 = arith.constant 0 : index
    %c20_631 = arith.constant 20 : index
    %438 = vector.load %arg12[%c1_629, %c0_630, %c20_631] : memref<4x4x110xf32, #tpu.memory_space<vmem>>, vector<1x4x80xf32>
    %439 = vector.shape_cast %438 : vector<1x4x80xf32> to vector<4x80xf32>
    %c24_632 = arith.constant 24 : index
    %c0_633 = arith.constant 0 : index
    %440 = vector.load %arg13[%c24_632, %c0_633] : memref<72x80xf32, #tpu.memory_space<vmem>>, vector<4x80xf32>
    tpu.vector_store %arg13[%c24_632, %c0_633], %439 {strides = array<i32>} : memref<72x80xf32, #tpu.memory_space<vmem>>, vector<4x80xf32>,
    %c0_634 = arith.constant 0 : index
    %c0_635 = arith.constant 0 : index
    %c21_636 = arith.constant 21 : index
    %441 = vector.load %arg12[%c0_634, %c0_635, %c21_636] : memref<4x4x110xf32, #tpu.memory_space<vmem>>, vector<1x4x80xf32>
    %442 = vector.shape_cast %441 : vector<1x4x80xf32> to vector<4x80xf32>
    %c28_637 = arith.constant 28 : index
    %c0_638 = arith.constant 0 : index
    %443 = vector.load %arg13[%c28_637, %c0_638] : memref<72x80xf32, #tpu.memory_space<vmem>>, vector<4x80xf32>
    tpu.vector_store %arg13[%c28_637, %c0_638], %442 {strides = array<i32>} : memref<72x80xf32, #tpu.memory_space<vmem>>, vector<4x80xf32>,
    %c1_639 = arith.constant 1 : index
    %c0_640 = arith.constant 0 : index
    %c21_641 = arith.constant 21 : index
    %444 = vector.load %arg12[%c1_639, %c0_640, %c21_641] : memref<4x4x110xf32, #tpu.memory_space<vmem>>, vector<1x4x80xf32>
    %445 = vector.shape_cast %444 : vector<1x4x80xf32> to vector<4x80xf32>
    %c32_642 = arith.constant 32 : index
    %c0_643 = arith.constant 0 : index
    %446 = vector.load %arg13[%c32_642, %c0_643] : memref<72x80xf32, #tpu.memory_space<vmem>>, vector<4x80xf32>
    tpu.vector_store %arg13[%c32_642, %c0_643], %445 {strides = array<i32>} : memref<72x80xf32, #tpu.memory_space<vmem>>, vector<4x80xf32>,
    %c0_644 = arith.constant 0 : index
    %c0_645 = arith.constant 0 : index
    %447 = vector.load %arg8[%c0_644, %c0_645] : memref<4x36xf32, #tpu.memory_space<vmem>>, vector<4x36xf32>
    %c0_646 = arith.constant 0 : index
    %c0_647 = arith.constant 0 : index
    %448 = vector.load %arg13[%c0_646, %c0_647] : memref<72x80xf32, #tpu.memory_space<vmem>>, vector<36x80xf32>
    %cst_648 = arith.constant dense<0.000000e+00> : vector<4x80xf32>
    %449 = tpu.matmul %447, %448, %cst_648 {dimension_numbers = #tpu.dot_dimension_numbers<[1], [0], [0], [1], [0, 0, 1, 1], [], []>} : vector<4x36xf32>, vector<36x80xf32>, vector<4x80xf32> -> vector<4x80xf32>
    %c0_649 = arith.constant 0 : index
    %c0_650 = arith.constant 0 : index
    %450 = vector.load %arg9[%c0_649, %c0_650] : memref<4x1xf32, #tpu.memory_space<vmem>>, vector<4x1xf32>
    %451 = vector.broadcast %450 : vector<4x1xf32> to vector<4x80xf32>
    %452 = arith.addf %449, %451 : vector<4x80xf32>
    %cst_651 = arith.constant 0.000000e+00 : f32
    %453 = vector.broadcast %cst_651 : f32 to vector<4x80xf32>
    %454 = arith.maximumf %452, %453 : vector<4x80xf32>
    %c0_652 = arith.constant 0 : index
    %c2_653 = arith.constant 2 : index
    %c0_654 = arith.constant 0 : index
    %c0_655 = arith.constant 0 : index
    %455 = vector.load %arg10[%c0_652, %c2_653, %c0_654, %c0_655] : memref<1x4x4x80xf32, #tpu.memory_space<vmem>>, vector<1x1x4x80xf32>
    %456 = vector.shape_cast %455 : vector<1x1x4x80xf32> to vector<4x80xf32>
    %457 = vector.shape_cast %454 : vector<4x80xf32> to vector<1x1x4x80xf32>
    tpu.vector_store %arg10[%c0_652, %c2_653, %c0_654, %c0_655], %457 {strides = array<i32>} : memref<1x4x4x80xf32, #tpu.memory_space<vmem>>, vector<1x1x4x80xf32>,
    %c0_656 = arith.constant 0 : index
    %c0_657 = arith.constant 0 : index
    %c11_658 = arith.constant 11 : index
    %458 = vector.load %arg12[%c0_656, %c0_657, %c11_658] : memref<4x4x110xf32, #tpu.memory_space<vmem>>, vector<1x4x80xf32>
    %459 = vector.shape_cast %458 : vector<1x4x80xf32> to vector<4x80xf32>
    %c0_659 = arith.constant 0 : index
    %c0_660 = arith.constant 0 : index
    %460 = vector.load %arg13[%c0_659, %c0_660] : memref<72x80xf32, #tpu.memory_space<vmem>>, vector<4x80xf32>
    tpu.vector_store %arg13[%c0_659, %c0_660], %459 {strides = array<i32>} : memref<72x80xf32, #tpu.memory_space<vmem>>, vector<4x80xf32>,
    %c1_661 = arith.constant 1 : index
    %c0_662 = arith.constant 0 : index
    %c11_663 = arith.constant 11 : index
    %461 = vector.load %arg12[%c1_661, %c0_662, %c11_663] : memref<4x4x110xf32, #tpu.memory_space<vmem>>, vector<1x4x80xf32>
    %462 = vector.shape_cast %461 : vector<1x4x80xf32> to vector<4x80xf32>
    %c4_664 = arith.constant 4 : index
    %c0_665 = arith.constant 0 : index
    %463 = vector.load %arg13[%c4_664, %c0_665] : memref<72x80xf32, #tpu.memory_space<vmem>>, vector<4x80xf32>
    tpu.vector_store %arg13[%c4_664, %c0_665], %462 {strides = array<i32>} : memref<72x80xf32, #tpu.memory_space<vmem>>, vector<4x80xf32>,
    %c0_666 = arith.constant 0 : index
    %c0_667 = arith.constant 0 : index
    %c12_668 = arith.constant 12 : index
    %464 = vector.load %arg12[%c0_666, %c0_667, %c12_668] : memref<4x4x110xf32, #tpu.memory_space<vmem>>, vector<1x4x80xf32>
    %465 = vector.shape_cast %464 : vector<1x4x80xf32> to vector<4x80xf32>
    %c8_669 = arith.constant 8 : index
    %c0_670 = arith.constant 0 : index
    %466 = vector.load %arg13[%c8_669, %c0_670] : memref<72x80xf32, #tpu.memory_space<vmem>>, vector<4x80xf32>
    tpu.vector_store %arg13[%c8_669, %c0_670], %465 {strides = array<i32>} : memref<72x80xf32, #tpu.memory_space<vmem>>, vector<4x80xf32>,
    %c2_671 = arith.constant 2 : index
    %c0_672 = arith.constant 0 : index
    %c11_673 = arith.constant 11 : index
    %467 = vector.load %arg12[%c2_671, %c0_672, %c11_673] : memref<4x4x110xf32, #tpu.memory_space<vmem>>, vector<1x4x80xf32>
    %468 = vector.shape_cast %467 : vector<1x4x80xf32> to vector<4x80xf32>
    %c12_674 = arith.constant 12 : index
    %c0_675 = arith.constant 0 : index
    %469 = vector.load %arg13[%c12_674, %c0_675] : memref<72x80xf32, #tpu.memory_space<vmem>>, vector<4x80xf32>
    tpu.vector_store %arg13[%c12_674, %c0_675], %468 {strides = array<i32>} : memref<72x80xf32, #tpu.memory_space<vmem>>, vector<4x80xf32>,
    %c3_676 = arith.constant 3 : index
    %c0_677 = arith.constant 0 : index
    %c11_678 = arith.constant 11 : index
    %470 = vector.load %arg12[%c3_676, %c0_677, %c11_678] : memref<4x4x110xf32, #tpu.memory_space<vmem>>, vector<1x4x80xf32>
    %471 = vector.shape_cast %470 : vector<1x4x80xf32> to vector<4x80xf32>
    %c16_679 = arith.constant 16 : index
    %c0_680 = arith.constant 0 : index
    %472 = vector.load %arg13[%c16_679, %c0_680] : memref<72x80xf32, #tpu.memory_space<vmem>>, vector<4x80xf32>
    tpu.vector_store %arg13[%c16_679, %c0_680], %471 {strides = array<i32>} : memref<72x80xf32, #tpu.memory_space<vmem>>, vector<4x80xf32>,
    %c2_681 = arith.constant 2 : index
    %c0_682 = arith.constant 0 : index
    %c12_683 = arith.constant 12 : index
    %473 = vector.load %arg12[%c2_681, %c0_682, %c12_683] : memref<4x4x110xf32, #tpu.memory_space<vmem>>, vector<1x4x80xf32>
    %474 = vector.shape_cast %473 : vector<1x4x80xf32> to vector<4x80xf32>
    %c20_684 = arith.constant 20 : index
    %c0_685 = arith.constant 0 : index
    %475 = vector.load %arg13[%c20_684, %c0_685] : memref<72x80xf32, #tpu.memory_space<vmem>>, vector<4x80xf32>
    tpu.vector_store %arg13[%c20_684, %c0_685], %474 {strides = array<i32>} : memref<72x80xf32, #tpu.memory_space<vmem>>, vector<4x80xf32>,
    %c0_686 = arith.constant 0 : index
    %c0_687 = arith.constant 0 : index
    %c21_688 = arith.constant 21 : index
    %476 = vector.load %arg12[%c0_686, %c0_687, %c21_688] : memref<4x4x110xf32, #tpu.memory_space<vmem>>, vector<1x4x80xf32>
    %477 = vector.shape_cast %476 : vector<1x4x80xf32> to vector<4x80xf32>
    %c24_689 = arith.constant 24 : index
    %c0_690 = arith.constant 0 : index
    %478 = vector.load %arg13[%c24_689, %c0_690] : memref<72x80xf32, #tpu.memory_space<vmem>>, vector<4x80xf32>
    tpu.vector_store %arg13[%c24_689, %c0_690], %477 {strides = array<i32>} : memref<72x80xf32, #tpu.memory_space<vmem>>, vector<4x80xf32>,
    %c1_691 = arith.constant 1 : index
    %c0_692 = arith.constant 0 : index
    %c21_693 = arith.constant 21 : index
    %479 = vector.load %arg12[%c1_691, %c0_692, %c21_693] : memref<4x4x110xf32, #tpu.memory_space<vmem>>, vector<1x4x80xf32>
    %480 = vector.shape_cast %479 : vector<1x4x80xf32> to vector<4x80xf32>
    %c28_694 = arith.constant 28 : index
    %c0_695 = arith.constant 0 : index
    %481 = vector.load %arg13[%c28_694, %c0_695] : memref<72x80xf32, #tpu.memory_space<vmem>>, vector<4x80xf32>
    tpu.vector_store %arg13[%c28_694, %c0_695], %480 {strides = array<i32>} : memref<72x80xf32, #tpu.memory_space<vmem>>, vector<4x80xf32>,
    %c0_696 = arith.constant 0 : index
    %c0_697 = arith.constant 0 : index
    %c22_698 = arith.constant 22 : index
    %482 = vector.load %arg12[%c0_696, %c0_697, %c22_698] : memref<4x4x110xf32, #tpu.memory_space<vmem>>, vector<1x4x80xf32>
    %483 = vector.shape_cast %482 : vector<1x4x80xf32> to vector<4x80xf32>
    %c32_699 = arith.constant 32 : index
    %c0_700 = arith.constant 0 : index
    %484 = vector.load %arg13[%c32_699, %c0_700] : memref<72x80xf32, #tpu.memory_space<vmem>>, vector<4x80xf32>
    tpu.vector_store %arg13[%c32_699, %c0_700], %483 {strides = array<i32>} : memref<72x80xf32, #tpu.memory_space<vmem>>, vector<4x80xf32>,
    %c0_701 = arith.constant 0 : index
    %c0_702 = arith.constant 0 : index
    %485 = vector.load %arg8[%c0_701, %c0_702] : memref<4x36xf32, #tpu.memory_space<vmem>>, vector<4x36xf32>
    %c0_703 = arith.constant 0 : index
    %c0_704 = arith.constant 0 : index
    %486 = vector.load %arg13[%c0_703, %c0_704] : memref<72x80xf32, #tpu.memory_space<vmem>>, vector<36x80xf32>
    %cst_705 = arith.constant dense<0.000000e+00> : vector<4x80xf32>
    %487 = tpu.matmul %485, %486, %cst_705 {dimension_numbers = #tpu.dot_dimension_numbers<[1], [0], [0], [1], [0, 0, 1, 1], [], []>} : vector<4x36xf32>, vector<36x80xf32>, vector<4x80xf32> -> vector<4x80xf32>
    %c0_706 = arith.constant 0 : index
    %c0_707 = arith.constant 0 : index
    %488 = vector.load %arg9[%c0_706, %c0_707] : memref<4x1xf32, #tpu.memory_space<vmem>>, vector<4x1xf32>
    %489 = vector.broadcast %488 : vector<4x1xf32> to vector<4x80xf32>
    %490 = arith.addf %487, %489 : vector<4x80xf32>
    %cst_708 = arith.constant 0.000000e+00 : f32
    %491 = vector.broadcast %cst_708 : f32 to vector<4x80xf32>
    %492 = arith.maximumf %490, %491 : vector<4x80xf32>
    %c0_709 = arith.constant 0 : index
    %c3_710 = arith.constant 3 : index
    %c0_711 = arith.constant 0 : index
    %c0_712 = arith.constant 0 : index
    %493 = vector.load %arg10[%c0_709, %c3_710, %c0_711, %c0_712] : memref<1x4x4x80xf32, #tpu.memory_space<vmem>>, vector<1x1x4x80xf32>
    %494 = vector.shape_cast %493 : vector<1x1x4x80xf32> to vector<4x80xf32>
    %495 = vector.shape_cast %492 : vector<4x80xf32> to vector<1x1x4x80xf32>
    tpu.vector_store %arg10[%c0_709, %c3_710, %c0_711, %c0_712], %495 {strides = array<i32>} : memref<1x4x4x80xf32, #tpu.memory_space<vmem>>, vector<1x1x4x80xf32>,
    return
  }
  func.func @transform_0(%arg0: i32) -> (i32, i32, i32) {
    %c0_i32 = arith.constant 0 : i32
    %c0_i32_0 = arith.constant 0 : i32
    %c0_i32_1 = arith.constant 0 : i32
    return %arg0, %c0_i32, %c0_i32_0 : i32, i32, i32
  }
  func.func @transform_1(%arg0: i32) -> (i32, i32, i32, i32) {
    %c0_i32 = arith.constant 0 : i32
    %c0_i32_0 = arith.constant 0 : i32
    %c0_i32_1 = arith.constant 0 : i32
    %c0_i32_2 = arith.constant 0 : i32
    return %arg0, %c0_i32, %c0_i32_0, %c0_i32_1 : i32, i32, i32, i32
  }
  func.func @transform_2(%arg0: i32) -> (i32, i32) {
    %c0_i32 = arith.constant 0 : i32
    %c0_i32_0 = arith.constant 0 : i32
    %c0_i32_1 = arith.constant 0 : i32
    return %c0_i32, %c0_i32_0 : i32, i32
  }
  func.func @transform_3(%arg0: i32) -> (i32, i32) {
    %c0_i32 = arith.constant 0 : i32
    %c0_i32_0 = arith.constant 0 : i32
    %c0_i32_1 = arith.constant 0 : i32
    return %c0_i32, %c0_i32_0 : i32, i32
  }
  func.func @transform_4(%arg0: i32) -> (i32, i32) {
    %c0_i32 = arith.constant 0 : i32
    %c0_i32_0 = arith.constant 0 : i32
    %c0_i32_1 = arith.constant 0 : i32
    return %c0_i32, %c0_i32_0 : i32, i32
  }
  func.func @transform_5(%arg0: i32) -> (i32, i32) {
    %c0_i32 = arith.constant 0 : i32
    %c0_i32_0 = arith.constant 0 : i32
    %c0_i32_1 = arith.constant 0 : i32
    return %c0_i32, %c0_i32_0 : i32, i32
  }
  func.func @transform_6(%arg0: i32) -> (i32, i32) {
    %c0_i32 = arith.constant 0 : i32
    %c0_i32_0 = arith.constant 0 : i32
    %c0_i32_1 = arith.constant 0 : i32
    return %c0_i32, %c0_i32_0 : i32, i32
  }
  func.func @transform_7(%arg0: i32) -> (i32, i32) {
    %c0_i32 = arith.constant 0 : i32
    %c0_i32_0 = arith.constant 0 : i32
    %c0_i32_1 = arith.constant 0 : i32
    return %c0_i32, %c0_i32_0 : i32, i32
  }
  func.func @transform_8(%arg0: i32) -> (i32, i32) {
    %c0_i32 = arith.constant 0 : i32
    %c0_i32_0 = arith.constant 0 : i32
    %c0_i32_1 = arith.constant 0 : i32
    return %c0_i32, %c0_i32_0 : i32, i32
  }
  func.func @transform_9(%arg0: i32) -> (i32, i32, i32, i32) {
    %c0_i32 = arith.constant 0 : i32
    %c0_i32_0 = arith.constant 0 : i32
    %c0_i32_1 = arith.constant 0 : i32
    %c0_i32_2 = arith.constant 0 : i32
    return %arg0, %c0_i32, %c0_i32_0, %c0_i32_1 : i32, i32, i32, i32
  }
}

</mosaic_0001>

<bundles_post_ra>
// kernel: up_conv_block_forward.1
= control target key start
LH: loop header
LB: loop body
LE: loop exit
PB: predicated region body
PF: predicated region fallthrough
CT: control target
= control target key end

     0   :  { %s2384_s30 = smov 0   ;;  %s2890_s0 = inlined_call_operand.vmem [shape: f32[2,8,80], index: 0, kind: input, shape index: {}]   ;;  %s2891_s1 = inlined_call_operand.vmem [shape: f32[2,4,4,110], index: 1, kind: input, shape index: {}]   ;;  %s2892_s2 = inlined_call_operand.vmem [shape: f32[1,80], index: 2, kind: input, shape index: {}]   ;;  %s2893_s3 = inlined_call_operand.vmem [shape: f32[16,8], index: 3, kind: input, shape index: {}]   ;;  %s2894_s4 = inlined_call_operand.vmem [shape: f32[16,1], index: 4, kind: input, shape index: {}]   ;;  %s2895_s5 = inlined_call_operand.vmem [shape: f32[4,72], index: 5, kind: input, shape index: {}]   ;;  %s2896_s6 = inlined_call_operand.vmem [shape: f32[4,1], index: 6, kind: input, shape index: {}]   ;;  %s2897_s7 = inlined_call_operand.vmem [shape: f32[4,36], index: 7, kind: input, shape index: {}]   ;;  %s2898_s8 = inlined_call_operand.vmem [shape: f32[4,1], index: 8, kind: input, shape index: {}]   ;;  %s2899_s9 = inlined_call_operand.vmem [shape: f32[2,4,4,80], index: 9, kind: output, shape index: {}]  }
   0x1 LB: > { %s1951_s10 = sadd.s32 4294967295, %s2319_s30   ;;  %p1955_p0 = scmp.ge.s32.totalorder %s2319_s30, 1  ;;  %s2319_s30 = sphi %s2384_s30, %s19_s30  }
   0x2   : > { %p296_p1 = scmp.lt.s32.totalorder %s2319_s30, 3 }
   0x4   : > { %p297_p2 = pnand %p1955_p0, %p296_p1 }
   0x5   : > { %p336_p3 = scmp.lt.s32.totalorder (!%p297_p2), %s1951_s10, 1  ;;  %v351_v0 = vld [vmem:[%s2893_s3] sm:$0xff] (!%p297_p2)  ;;  %vm366_vm0 = vcmask (!%p297_p2), 64512   ;;  %v2321_v2 = vmov (!%p297_p2), 0   ;;  %v355_v3 = vld [vmem:[%s2894_s4 + $0x8] sm:$0xff] (!%p297_p2)  ;;  %s2322_s27 = smov (!%p297_p2), 127  }
   0x6   : > { %300 = sbr.rel (%p297_p2) target bundleno = 1313 (0x521), region = 56  ;;  %v354_v1 = vld [vmem:[%s2894_s4] sm:$0xff] (!%p297_p2)  ;;  %2079 = vmatprep.mubr.msk.f32.mxu0 (!%p297_p2), %vm366_vm0, %v351_v0  ;;  %2311 = vset.pattern.permute.xlu0 (!%p297_p2), %v2321_v2  ;;  %v352_v5 = vld [vmem:[%s2893_s3 + $0x8] sm:$0xff] (!%p297_p2)  ;;  %s2323_s28 = smov (!%p297_p2), 117   ;;  %vm456_vm1 = vcmask (!%p297_p2), 158720   ;;  %vm458_vm2 = vcmask (!%p297_p2), 896720  }
   0x7   : > { %358 = vperm.xlu0 (!%p297_p2), %2311, %v354_v1   ;;  %2312 = vset.pattern.permute.xlu1 (!%p297_p2), %v2321_v2  ;;  %s2324_s29 = smov (!%p297_p2), 118   ;;  %s2325_s11 = smov (!%p297_p2), 126   ;;  %v2327_v27 = vmov (!%p297_p2), 0.0   ;;  %vm484_vm3 = vcmask (!%p297_p2), 650240   ;;  %v2521_v54 = vld [vmem:[%s2892_s2] ss:$0 sm:$0xff] (!%p297_p2) }
   0x8   : > { %s2326_s12 = smov (!%p297_p2), 116   ;;  %472 = vst.msk [vmem:[#allocation2 + $0x8] sm:$0xf] (!%p297_p2), %vm456_vm1, %v2327_v27  ;;  %480 = vst.msk [vmem:[#allocation2 + $0xc] sm:$0xf] (!%p297_p2), %vm456_vm1, %v2327_v27  ;;  %s2328_s13 = smov (!%p297_p2), 107  }
   0x9   : > { %457 = vst.msk [vmem:[#allocation2] sm:$0xf] (!%p297_p2), %vm456_vm1, %v2327_v27  ;;  %467 = vst.msk [vmem:[#allocation2 + $0x4] sm:$0xf] (!%p297_p2), %vm456_vm1, %v2327_v27  ;;  %s2329_s16 = smov (!%p297_p2), 11   ;;  %vm464_vm4 = vcmask (!%p297_p2), 740440  }
   0xa   : > { %679 = vst.msk [vmem:[#allocation3] sm:$0xf] (!%p297_p2), %vm456_vm1, %v2327_v27  ;;  %886 = vst.msk [vmem:[#allocation3 + $0x4] sm:$0xf] (!%p297_p2), %vm456_vm1, %v2327_v27  ;;  %vm469_vm5 = vcmask (!%p297_p2), 744540   ;;  %vm2332_vm6 = vmmov (!%p297_p2), 0  }
   0xb   : > { %363 = vperm.xlu0 (!%p297_p2), %2311, %v355_v3   ;;  %1093 = vst.msk [vmem:[#allocation3 + $0x8] sm:$0xf] (!%p297_p2), %vm456_vm1, %v2327_v27  ;;  %1300 = vst.msk [vmem:[#allocation3 + $0xc] sm:$0xf] (!%p297_p2), %vm456_vm1, %v2327_v27  ;;  %2100 = vmatprep.mubr.msk.f32.mxu1 (!%p297_p2), %vm2332_vm6, %v2327_v27  ;;  %vm603_vm7 = vcmask (!%p297_p2), 588800   ;;  %vm1373_vm8 = vcmask (!%p297_p2), 1043456  }
   0xc   : > { %473 = vst.msk [vmem:[#allocation2 + $0x8] sm:$0xf] (!%p297_p2), %vm458_vm2, %v2327_v27  ;;  %481 = vst.msk [vmem:[#allocation2 + $0xc] sm:$0xf] (!%p297_p2), %vm458_vm2, %v2327_v27  ;;  %vm1369_vm9 = vcmask (!%p297_p2), 293888  }
   0xd   : > { %s2901_s10 = smov (!%p336_p3, %s1951_s10), 1  ;;  %459 = vst.msk [vmem:[#allocation2] sm:$0xf] %vm458_vm2, %v2327_v27  ;;  %468 = vst.msk [vmem:[#allocation2 + $0x4] sm:$0xf] %vm458_vm2, %v2327_v27 }
   0xe   : > { %s1956_s17 = sshll.u32 %s2901_s10, 3  ;;  %s2008_s18 = sshll.u32 %s2901_s10, 4  ;;  %680 = vst.msk [vmem:[#allocation3] sm:$0xf] %vm458_vm2, %v2327_v27  ;;  %887 = vst.msk [vmem:[#allocation3 + $0x4] sm:$0xf] %vm458_vm2, %v2327_v27 }
   0xf   : > { %s339_s21 = scalar_lea.vmem %s2890_s0, %s1956_s17  ;;  %s2414_s24 = scalar_lea.vmem %s2891_s1, %s2008_s18  ;;  %1094 = vst.msk [vmem:[#allocation3 + $0x8] sm:$0xf] %vm458_vm2, %v2327_v27  ;;  %1301 = vst.msk [vmem:[#allocation3 + $0xc] sm:$0xf] %vm458_vm2, %v2327_v27 }
  0x10   : > { %v353_v4 = vld [vmem:[%s339_s21] sm:$0xff]  ;;  %v1966_v6 = vld [vmem:[%s2414_s24 + $0xc] sm:$0xf]  ;;  %v1965_v7 = vld [vmem:[%s2414_s24 + $0x8] sm:$0xf]  ;;  %s2330_s17 = smov 108  }
  0x11   : > { %2077 = vmatprep.subr.mxu0 %v353_v4  ;;  %498 = vrot.lane.b32.xlu1 %v1965_v7, %s2322_s27  ;;  %v533_v8 = vld [vmem:[%s2414_s24] sm:$0xf]  ;;  %v1967_v9 = vld [vmem:[%s2414_s24 + $0x4] sm:$0xf]  ;;  %v1969_v10 = vld [vmem:[%s2414_s24 + $0xc] sm:$0xf] }
  0x12   : > { %2078 = vmatpush3.msra.mxu0 %v353_v4  ;;  %510 = vrot.lane.b32.xlu0 %v1966_v6, %s2322_s27  ;;  %v1968_v11 = vld [vmem:[%s2414_s24 + $0x4] sm:$0xf]  ;;  %v1974_v12 = vld [vmem:[%s2414_s24 + $0xc] sm:$0xf]  ;;  %v1973_v13 = vld [vmem:[%s2414_s24 + $0x8] sm:$0xf] }
  0x13   : > { %2080 = vmatmul.mubr.msk.f32.vlgmr.msra.gmra.mrb[0].mxu0 %vm366_vm0, %v352_v5  ;;  %v1971_v14 = vld [vmem:[%s2414_s24 + $0xc] sm:$0xf]  ;;  %v1975_v15 = vld [vmem:[%s2414_s24 + $0x8] sm:$0xf]  ;;  %v1976_v16 = vld [vmem:[%s2414_s24 + $0x4] sm:$0xf] }
  0x14   : > { %v1970_v17 = vld [vmem:[%s2414_s24 + $0x8] sm:$0xf]  ;;  %v728_v19 = vld [vmem:[%s2414_s24] sm:$0xf]  ;;  %v1978_v21 = vld [vmem:[%s2414_s24 + $0xc] sm:$0xf]  ;;  %2121 = vmatprep.mubr.msk.f32.mxu0 %vm2332_vm6, %v2327_v27 }
  0x15   : > { %535 = vrot.lane.b32.xlu1 %v533_v8, %s2323_s28  ;;  %v1977_v18 = vld [vmem:[%s2414_s24 + $0x8] sm:$0xf]  ;;  %v752_v20 = vld [vmem:[%s2414_s24] sm:$0xf]  ;;  %v1981_v23 = vld [vmem:[%s2414_s24 + $0x4] sm:$0xf] }
  0x16   : > { %523 = vrot.lane.b32.xlu0 %v1967_v9, %s2324_s29  ;;  %v1979_v22 = vld [vmem:[%s2414_s24 + $0x8] sm:$0xf]  ;;  %v1982_v24 = vld [vmem:[%s2414_s24 + $0x4] sm:$0xf]  ;;  %v1983_v25 = vld [vmem:[%s2414_s24 + $0xc] sm:$0xf] }
  0x17   : > { %v1985_v26 = vld [vmem:[%s2414_s24 + $0xc] sm:$0xf]  ;;  %v1106_v28 = vld [vmem:[%s2414_s24] sm:$0xf]  ;;  %v1984_v62 = vld [vmem:[%s2414_s24 + $0x8] sm:$0xf] }
  0x18   : > { %v1130_v52 = vld [vmem:[%s2414_s24] sm:$0xf]  ;;  %v1986_v63 = vld [vmem:[%s2414_s24 + $0x4] sm:$0xf]  ;;  %s2333_s21 = smov 106  }
  0x19   : > { %559 = vrot.lane.b32.xlu1 %v1969_v10, %s2324_s29  ;;  %v983_v53 = vld [vmem:[%s2414_s24] sm:$0xf]  ;;  %v1989_v0 = vld [vmem:[%s2414_s24 + $0x4] sm:$0xf] }
  0x1a   : > { %547 = vrot.lane.b32.xlu0 %v1968_v11, %s2323_s28  ;;  %v911_v61 = vld [vmem:[%s2414_s24] sm:$0xf]  ;;  %v1987_v1 = vld [vmem:[%s2414_s24 + $0x4] sm:$0xf] }
  0x1d   : > { %706 = vrot.lane.b32.xlu1 %v1974_v12, %s2322_s27 }
  0x1e   : > { %694 = vrot.lane.b32.xlu0 %v1973_v13, %s2322_s27 }
  0x21   : > { %583 = vrot.lane.b32.xlu1 %v1971_v14, %s2323_s28 }
  0x22   : > { %718 = vrot.lane.b32.xlu0 %v1975_v15, %s2325_s11  ;;  %v1964_v15 = vld [vmem:[%s2414_s24 + $0xc] sm:$0xf] }
  0x23   : > { %488 = vst.msk [vmem:[#allocation4 + $0x24] sm:$0xf] %vm484_vm3, %v1964_v15  ;;  %v1202_v15 = vld [vmem:[%s2414_s24] sm:$0xf] }
  0x25   : > { %742 = vrot.lane.b32.xlu1 %v1976_v16, %s2323_s28 }
  0x26   : > { %571 = vrot.lane.b32.xlu0 %v1970_v17, %s2323_s28 }
  0x29   : > { %766 = vrot.lane.b32.xlu1 %v1977_v18, %s2323_s28 }
  0x2a   : > { %730 = vrot.lane.b32.xlu0 %v728_v19, %s2323_s28 }
  0x2d   : > { %790 = vrot.lane.b32.xlu1 %v1979_v22, %s2326_s12 }
  0x2e   : > { %754 = vrot.lane.b32.xlu0 %v752_v20, %s2326_s12 }
  0x32   : > { %778 = vrot.lane.b32.xlu0 %v1978_v21, %s2323_s28 }
  0x36   : > { %901 = vrot.lane.b32.xlu0 %v1981_v23, %s2324_s29 }
  0x3a   : > { %925 = vrot.lane.b32.xlu0 %v1982_v24, %s2323_s28 }
  0x3e   : > { %937 = vrot.lane.b32.xlu0 %v1983_v25, %s2324_s29 }
  0x42   : > { %961 = vrot.lane.b32.xlu0 %v1985_v26, %s2323_s28 }
  0x46   : > { %1108 = vrot.lane.b32.xlu0 %v1106_v28, %s2323_s28 }
  0x4a   : > { %1132 = vrot.lane.b32.xlu0 %v1130_v52, %s2326_s12 }
  0x4e   : > { %985 = vrot.lane.b32.xlu0 %v983_v53, %s2328_s13 }
  0x83   : > { %v499_v29 = vpop.permute.xlu1 %498 }
  0x84   : > { %501 = vst.msk [vmem:[#allocation4 + $0x28] sm:$0xf] %vm484_vm3, %v499_v29 }
  0x86   : > { %v359_v31 = vpop.permute.xlu0 %358 }
  0x87   : > { %v536_v30 = vpop.permute.xlu1 %535 }
  0x88   : > { %538 = vst.msk [vmem:[#allocation4 + $0x34] sm:$0xf] %vm484_vm3, %v536_v30 }
  0x8a   : > { %v364_v33 = vpop.permute.xlu0 %363 }
  0x8b   : > { %v560_v32 = vpop.permute.xlu1 %559 }
  0x8c   : > { %562 = vst.msk [vmem:[#allocation4 + $0x3c] sm:$0xf] %vm484_vm3, %v560_v32 }
  0x8e   : > { %v511_v35 = vpop.permute.xlu0 %510 }
  0x8f   : > { %v707_v34 = vpop.permute.xlu1 %706  ;;  %513 = vst.msk [vmem:[#allocation4 + $0x2c] sm:$0xf] %vm484_vm3, %v511_v35 }
  0x92   : > { %v524_v37 = vpop.permute.xlu0 %523 }
  0x93   : > { %v584_v36 = vpop.permute.xlu1 %583  ;;  %526 = vst.msk [vmem:[#allocation4 + $0x30] sm:$0xf] %vm484_vm3, %v524_v37 }
  0x94   : > { %586 = vst.msk [vmem:[#allocation4 + $0x44] sm:$0xf] %vm484_vm3, %v584_v36 }
  0x96   : > { %v548_v38 = vpop.permute.xlu0 %547  ;;  %v2494_v39 = vld [vmem:[#allocation4 + $0x28] sm:$0xff] }
  0x97   : > { %v743_v40 = vpop.permute.xlu1 %742  ;;  %550 = vst.msk [vmem:[#allocation4 + $0x38] sm:$0xf] %vm484_vm3, %v548_v38  ;;  %709 = vst.msk [vmem:[#allocation4 + $0x28] sm:$0xf] %vm484_vm3, %v707_v34  ;;  %v2331_v38 = vmov 0.0|0.0  }
  0x98   : > { %2218 = vmatprep.subr.bf16.mxu1 %v2331_v38  ;;  %2230 = vmatprep.subr.bf16.mxu0 %v2331_v38 }
  0x9a   : > { %v2498_v41 = vpop.permute.xlu0 %694  ;;  %v2500_v42 = vld [vmem:[#allocation4 + $0x30] sm:$0xff] }
  0x9b   : > { %745 = vst.msk [vmem:[#allocation4 + $0x34] sm:$0xf] %vm484_vm3, %v743_v40  ;;  %v767_v43 = vpop.permute.xlu1 %766 }
  0x9e   : > { %v719_v44 = vpop.permute.xlu0 %718  ;;  %v2503_v45 = vld [vmem:[#allocation4 + $0x38] sm:$0xff] }
  0x9f   : > { %721 = vst.msk [vmem:[#allocation4 + $0x2c] sm:$0xf] %vm484_vm3, %v719_v44  ;;  %769 = vst.msk [vmem:[#allocation4 + $0x3c] sm:$0xf] %vm484_vm3, %v767_v43  ;;  %v791_v51 = vpop.permute.xlu1 %790 }
  0xa2   : > { %v572_v46 = vpop.permute.xlu0 %571 }
  0xa3   : > { %574 = vst.msk [vmem:[#allocation4 + $0x40] sm:$0xf] %vm484_vm3, %v572_v46 }
  0xa6   : > { %v731_v47 = vpop.permute.xlu0 %730  ;;  %v2539_v4 = vld [vmem:[#allocation4 + $0x28] sm:$0xff] }
  0xa7   : > { %733 = vst.msk [vmem:[#allocation4 + $0x30] sm:$0xf] %vm484_vm3, %v731_v47 }
  0xaa   : > { %v755_v48 = vpop.permute.xlu0 %754  ;;  %v2510_v50 = vld [vmem:[#allocation4 + $0x40] sm:$0xff] }
  0xab   : > { %757 = vst.msk [vmem:[#allocation4 + $0x38] sm:$0xf] %vm484_vm3, %v755_v48  ;;  %793 = vst.msk [vmem:[#allocation4 + $0x44] sm:$0xf] %vm484_vm3, %v791_v51 }
  0xae   : > { %v779_v49 = vpop.permute.xlu0 %778  ;;  %v2542_v6 = vld [vmem:[#allocation4 + $0x30] sm:$0xff] }
  0xaf   : > { %781 = vst.msk [vmem:[#allocation4 + $0x40] sm:$0xf] %vm484_vm3, %v779_v49 }
  0xb2   : > { %v2537_v2 = vpop.permute.xlu0 %901  ;;  %v2545_v8 = vld [vmem:[#allocation4 + $0x38] sm:$0xff] }
  0xb6   : > { %v926_v3 = vpop.permute.xlu0 %925  ;;  %v2550_v12 = vld [vmem:[#allocation4 + $0x40] sm:$0xff] }
  0xb7   : > { %928 = vst.msk [vmem:[#allocation4 + $0x2c] sm:$0xf] %vm484_vm3, %v926_v3  ;;  %v1991_v3 = vld [vmem:[%s2414_s24 + $0xc] sm:$0xf] }
  0xba   : > { %v938_v5 = vpop.permute.xlu0 %937 }
  0xbb   : > { %940 = vst.msk [vmem:[#allocation4 + $0x30] sm:$0xf] %vm484_vm3, %v938_v5  ;;  %v1993_v5 = vld [vmem:[%s2414_s24 + $0x4] sm:$0xf] }
  0xbe   : > { %v962_v7 = vpop.permute.xlu0 %961 }
  0xbf   : > { %964 = vst.msk [vmem:[#allocation4 + $0x38] sm:$0xf] %vm484_vm3, %v962_v7 }
  0xc2   : > { %v2548_v9 = vpop.permute.xlu0 %1108 }
  0xc6   : > { %v1133_v10 = vpop.permute.xlu0 %1132 }
  0xca   : > { %v986_v11 = vpop.permute.xlu0 %985 }
  0xcb   : > { %988 = vst.msk [vmem:[#allocation4 + $0x40] sm:$0xf] %vm484_vm3, %v986_v11 }
  0xe6   : > { %v2081_v55 = vpop.f32.mrb[0].mxu0 }
  0xe7   : > { %v445_v56 = vadd.f32 %v2081_v55, %v364_v33  ;;  %v439_v57 = vpop.f32.mrb[1].mxu0 }
  0xe8   : > { %v440_v59 = vadd.f32 %v439_v57, %v359_v31 }
  0xe9   : > { %v455_v58 = vmul.f32 %v2521_v54, %v445_v56 }
  0xea   : > { %v454_v60 = vmul.f32 %v2521_v54, %v440_v59 }
  0xeb   : > { %475 = vrot.lane.b32.xlu1 %v455_v58, %s2329_s16 }
  0xef   : > { %461 = vrot.lane.b32.xlu1 %v454_v60, %s2329_s16 }
  0xf3   : > { %913 = vrot.lane.b32.xlu1 %v911_v61, %s2323_s28 }
  0xf7   : > { %949 = vrot.lane.b32.xlu1 %v1984_v62, %s2323_s28 }
  0xfb   : > { %973 = vrot.lane.b32.xlu1 %v1986_v63, %s2330_s17  ;;  %v1990_v63 = vld [vmem:[%s2414_s24 + $0x8] sm:$0xf] }
  0xff   : > { %1120 = vrot.lane.b32.xlu1 %v1989_v0, %s2323_s28 }
 0x103   : > { %997 = vrot.lane.b32.xlu1 %v1987_v1, %s2328_s13  ;;  %v1992_v1 = vld [vmem:[%s2414_s24 + $0x8] sm:$0xf] }
 0x15d   : > { %v476_v13 = vpop.permute.xlu1 %475 }
 0x15e   : > { %478 = vst.msk [vmem:[#allocation2 + $0x8] sm:$0xf] %vm464_vm4, %v476_v13 }
 0x15f   : > { %482 = vst.msk [vmem:[#allocation2 + $0x8] sm:$0xf0] %vm469_vm5, %v476_v13  ;;  %v1218_v13 = vld [vmem:[%s2896_s6] sm:$0xf] }
 0x161   : > { %v462_v14 = vpop.permute.xlu1 %461 }
 0x162   : > { %465 = vst.msk [vmem:[#allocation2] sm:$0xf] %vm464_vm4, %v462_v14 }
 0x163   : > { %470 = vst.msk [vmem:[#allocation2] sm:$0xf0] %vm469_vm5, %v462_v14  ;;  %v1178_v14 = vld [vmem:[%s2414_s24] sm:$0xf] }
 0x165   : > { %v489_v16 = vld [vmem:[#allocation2 + $0x8] sm:$0xf]  ;;  %v914_v18 = vpop.permute.xlu1 %913 }
 0x166   : > { %v502_v17 = vld [vmem:[#allocation2 + $0xc] sm:$0xf]  ;;  %491 = vrot.lane.b32.xlu0 %v489_v16, %s2322_s27  ;;  %916 = vst.msk [vmem:[#allocation4 + $0x28] sm:$0xf] %vm484_vm3, %v914_v18  ;;  %v563_v19 = vld [vmem:[#allocation2 + $0x8] sm:$0xf] }
 0x167   : > { %504 = vrot.lane.b32.xlu1 %v502_v17, %s2322_s27  ;;  %v551_v20 = vld [vmem:[#allocation2 + $0xc] sm:$0xf]  ;;  %v686_v22 = vld [vmem:[#allocation2 + $0x8] sm:$0xf]  ;;  %v1011_v16 = vld [vmem:[%s2896_s6] sm:$0xf] }
 0x168   : > { %v575_v23 = vld [vmem:[#allocation2 + $0xc] sm:$0xf]  ;;  %v710_v26 = vld [vmem:[#allocation2 + $0x8] sm:$0xf]  ;;  %v597_v17 = vld [vmem:[%s2896_s6] sm:$0xf] }
 0x169   : > { %v950_v21 = vpop.permute.xlu1 %949  ;;  %v698_v28 = vld [vmem:[#allocation2 + $0xc] sm:$0xf]  ;;  %v758_v31 = vld [vmem:[#allocation2 + $0x8] sm:$0xf]  ;;  %v527_v51 = vld [vmem:[#allocation2] sm:$0xf] }
 0x16a   : > { %565 = vrot.lane.b32.xlu0 %v563_v19, %s2323_s28  ;;  %952 = vst.msk [vmem:[#allocation4 + $0x34] sm:$0xf] %vm484_vm3, %v950_v21  ;;  %v483_v30 = vld [vmem:[#allocation2 + $0xc] sm:$0xf]  ;;  %v941_v34 = vld [vmem:[#allocation2 + $0x8] sm:$0xf] }
 0x16b   : > { %553 = vrot.lane.b32.xlu1 %v551_v20, %s2324_s29  ;;  %485 = vst.msk [vmem:[#allocation4] sm:$0xf] %vm484_vm3, %v483_v30  ;;  %v770_v32 = vld [vmem:[#allocation2 + $0xc] sm:$0xf]  ;;  %v782_v35 = vld [vmem:[#allocation2 + $0x8] sm:$0xf] }
 0x16c   : > { %v1148_v36 = vld [vmem:[#allocation2 + $0xc] sm:$0xf]  ;;  %v514_v43 = vld [vmem:[#allocation2 + $0x4] sm:$0xf]  ;;  %v1136_v44 = vld [vmem:[#allocation2 + $0x8] sm:$0xf] }
 0x16d   : > { %v974_v24 = vpop.permute.xlu1 %973  ;;  %v2566_v25 = vld [vmem:[#allocation4 + $0x28] sm:$0xff]  ;;  %v539_v46 = vld [vmem:[#allocation2 + $0x4] sm:$0xf]  ;;  %v722_v53 = vld [vmem:[#allocation2] sm:$0xf] }
 0x16e   : > { %688 = vrot.lane.b32.xlu0 %v686_v22, %s2322_s27  ;;  %976 = vst.msk [vmem:[#allocation4 + $0x3c] sm:$0xf] %vm484_vm3, %v974_v24  ;;  %1135 = vst.msk [vmem:[#allocation4 + $0x2c] sm:$0xf] %vm484_vm3, %v1133_v10  ;;  %v929_v37 = vld [vmem:[#allocation2 + $0xc] sm:$0xf] }
 0x16f   : > { %577 = vrot.lane.b32.xlu1 %v575_v23, %s2323_s28  ;;  %v953_v40 = vld [vmem:[#allocation2 + $0xc] sm:$0xf]  ;;  %v1160_v47 = vld [vmem:[#allocation2 + $0x8] sm:$0xf]  ;;  %v734_v48 = vld [vmem:[#allocation2 + $0x4] sm:$0xf] }
 0x170   : > { %v893_v49 = vld [vmem:[#allocation2 + $0x4] sm:$0xf]  ;;  %v746_v56 = vld [vmem:[#allocation2] sm:$0xf] }
 0x171   : > { %v1121_v29 = vpop.permute.xlu1 %1120  ;;  %v917_v52 = vld [vmem:[#allocation2 + $0x4] sm:$0xf]  ;;  %v1100_v57 = vld [vmem:[#allocation2] sm:$0xf] }
 0x172   : > { %712 = vrot.lane.b32.xlu0 %v710_v26, %s2325_s11  ;;  %1123 = vst.msk [vmem:[#allocation4 + $0x28] sm:$0xf] %vm484_vm3, %v1121_v29  ;;  %v965_v55 = vld [vmem:[#allocation2 + $0x4] sm:$0xf]  ;;  %v905_v58 = vld [vmem:[#allocation2] sm:$0xf] }
 0x173   : > { %700 = vrot.lane.b32.xlu1 %v698_v28, %s2322_s27  ;;  %v1124_v59 = vld [vmem:[#allocation2] sm:$0xf]  ;;  %v989_v62 = vld [vmem:[#allocation2 + $0x4] sm:$0xf] }
 0x174   : > { %v977_v60 = vld [vmem:[#allocation2] sm:$0xf]  ;;  %v1112_v0 = vld [vmem:[#allocation2 + $0x4] sm:$0xf] }
 0x175   : > { %v998_v33 = vpop.permute.xlu1 %997  ;;  %v1172_v61 = vld [vmem:[#allocation2] sm:$0xf]  ;;  %v1184_v7 = vld [vmem:[#allocation2 + $0x4] sm:$0xf] }
 0x176   : > { %760 = vrot.lane.b32.xlu0 %v758_v31, %s2323_s28  ;;  %1000 = vst.msk [vmem:[#allocation4 + $0x44] sm:$0xf] %vm484_vm3, %v998_v33  ;;  %v804_v10 = vld [vmem:[%s2896_s6] sm:$0xf] }
 0x177   : > { %772 = vrot.lane.b32.xlu1 %v770_v32, %s2323_s28  ;;  %v1196_v11 = vld [vmem:[#allocation2] sm:$0xf] }
 0x17a   : > { %943 = vrot.lane.b32.xlu0 %v941_v34, %s2323_s28 }
 0x17b   : > { %784 = vrot.lane.b32.xlu1 %v782_v35, %s2326_s12 }
 0x17e   : > { %1150 = vrot.lane.b32.xlu0 %v1148_v36, %s2323_s28 }
 0x17f   : > { %931 = vrot.lane.b32.xlu1 %v929_v37, %s2324_s29 }
 0x182   : > { %516 = vrot.lane.b32.xlu0 %v514_v43, %s2324_s29 }
 0x183   : > { %955 = vrot.lane.b32.xlu1 %v953_v40, %s2323_s28 }
 0x186   : > { %541 = vrot.lane.b32.xlu0 %v539_v46, %s2323_s28 }
 0x187   : > { %1138 = vrot.lane.b32.xlu1 %v1136_v44, %s2323_s28 }
 0x18a   : > { %736 = vrot.lane.b32.xlu0 %v734_v48, %s2323_s28 }
 0x18b   : > { %1162 = vrot.lane.b32.xlu1 %v1160_v47, %s2326_s12 }
 0x18e   : > { %895 = vrot.lane.b32.xlu0 %v893_v49, %s2324_s29 }
 0x18f   : > { %529 = vrot.lane.b32.xlu1 %v527_v51, %s2323_s28 }
 0x192   : > { %919 = vrot.lane.b32.xlu0 %v917_v52, %s2323_s28 }
 0x193   : > { %724 = vrot.lane.b32.xlu1 %v722_v53, %s2323_s28 }
 0x196   : > { %967 = vrot.lane.b32.xlu0 %v965_v55, %s2330_s17 }
 0x197   : > { %748 = vrot.lane.b32.xlu1 %v746_v56, %s2326_s12 }
 0x19a   : > { %1102 = vrot.lane.b32.xlu0 %v1100_v57, %s2323_s28 }
 0x19b   : > { %907 = vrot.lane.b32.xlu1 %v905_v58, %s2323_s28 }
 0x19e   : > { %1126 = vrot.lane.b32.xlu0 %v1124_v59, %s2326_s12 }
 0x19f   : > { %979 = vrot.lane.b32.xlu1 %v977_v60, %s2328_s13 }
 0x1a2   : > { %1174 = vrot.lane.b32.xlu0 %v1172_v61, %s2328_s13 }
 0x1a3   : > { %991 = vrot.lane.b32.xlu1 %v989_v62, %s2328_s13 }
 0x1a6   : > { %1144 = vrot.lane.b32.xlu0 %v1990_v63, %s2323_s28 }
 0x1a7   : > { %1114 = vrot.lane.b32.xlu1 %v1112_v0, %s2323_s28 }
 0x1aa   : > { %1168 = vrot.lane.b32.xlu0 %v1992_v1, %s2326_s12 }
 0x1ab   : > { %1156 = vrot.lane.b32.xlu1 %v1991_v3, %s2323_s28 }
 0x1ae   : > { %1192 = vrot.lane.b32.xlu0 %v1993_v5, %s2328_s13 }
 0x1af   : > { %1186 = vrot.lane.b32.xlu1 %v1184_v7, %s2328_s13 }
 0x1b2   : > { %807 = vperm.xlu0 %2311, %v804_v10   ;;  %v2228_v10 = vpack.c.bf16 %v2503_v45, %v2500_v42  ;;  %v587_v45 = vld [vmem:[%s2895_s5] sm:$0xf] }
 0x1b3   : > { %1198 = vrot.lane.b32.xlu1 %v1196_v11, %s2333_s21 }
 0x1b6   : > { %1221 = vperm.xlu0 %2311, %v1218_v13  }
 0x1b7   : > { %1180 = vrot.lane.b32.xlu1 %v1178_v14, %s2328_s13 }
 0x1bb   : > { %1204 = vrot.lane.b32.xlu1 %v1202_v15, %s2333_s21 }
 0x1bf   : > { %1014 = vperm.xlu1 %2312, %v1011_v16  }
 0x1c3   : > { %600 = vperm.xlu1 %2312, %v597_v17  }
 0x1d8   : > { %v492_v18 = vpop.permute.xlu0 %491 }
 0x1d9   : > { %v505_v19 = vpop.permute.xlu1 %504  ;;  %494 = vst.msk [vmem:[#allocation4 + $0x4] sm:$0xf] %vm484_vm3, %v492_v18 }
 0x1da   : > { %507 = vst.msk [vmem:[#allocation4 + $0x8] sm:$0xf] %vm484_vm3, %v505_v19 }
 0x1dc   : > { %v566_v20 = vpop.permute.xlu0 %565 }
 0x1dd   : > { %v554_v21 = vpop.permute.xlu1 %553  ;;  %568 = vst.msk [vmem:[#allocation4 + $0x1c] sm:$0xf] %vm484_vm3, %v566_v20  ;;  %v1008_v20 = vld [vmem:[#allocation4 + $0x30] sm:$0xff] }
 0x1de   : > { %556 = vst.msk [vmem:[#allocation4 + $0x18] sm:$0xf] %vm484_vm3, %v554_v21 }
 0x1e0   : > { %v588_v22 = vld [vmem:[#allocation4] sm:$0xff]  ;;  %v689_v23 = vpop.permute.xlu0 %688 }
 0x1e1   : > { %v578_v24 = vpop.permute.xlu1 %577  ;;  %691 = vst.msk [vmem:[#allocation4] sm:$0xf] %vm484_vm3, %v689_v23 }
 0x1e2   : > { %580 = vst.msk [vmem:[#allocation4 + $0x20] sm:$0xf] %vm484_vm3, %v578_v24  ;;  %v1009_v24 = vld [vmem:[#allocation4 + $0x38] sm:$0xff] }
 0x1e4   : > { %v713_v26 = vpop.permute.xlu0 %712 }
 0x1e5   : > { %v701_v28 = vpop.permute.xlu1 %700  ;;  %v591_v29 = vld [vmem:[#allocation4 + $0x18] sm:$0xff] }
 0x1e6   : > { %703 = vst.msk [vmem:[#allocation4 + $0x4] sm:$0xf] %vm484_vm3, %v701_v28 }
 0x1e8   : > { %v761_v31 = vpop.permute.xlu0 %760 }
 0x1e9   : > { %v592_v30 = vld [vmem:[#allocation4 + $0x20] sm:$0xff]  ;;  %v773_v32 = vpop.permute.xlu1 %772  ;;  %763 = vst.msk [vmem:[#allocation4 + $0x18] sm:$0xf] %vm484_vm3, %v761_v31 }
 0x1ea   : > { %697 = vst.msk [vmem:[#allocation4 + $0x24] sm:$0xf] %vm484_vm3, %v2498_v41  ;;  %775 = vst.msk [vmem:[#allocation4 + $0x1c] sm:$0xf] %vm484_vm3, %v773_v32  ;;  %v2225_v0 = vpack.c.bf16 %v2494_v39, %v592_v30  ;;  %v1010_v31 = vld [vmem:[#allocation4 + $0x40] sm:$0xff] }
 0x1ec   : > { %v944_v33 = vpop.permute.xlu0 %943 }
 0x1ed   : > { %v785_v34 = vpop.permute.xlu1 %784  ;;  %v795_v51 = vld [vmem:[#allocation4] sm:$0xff] }
 0x1ee   : > { %787 = vst.msk [vmem:[#allocation4 + $0x20] sm:$0xf] %vm484_vm3, %v785_v34 }
 0x1f0   : > { %v2643_v35 = vpop.permute.xlu0 %1150 }
 0x1f1   : > { %v932_v36 = vpop.permute.xlu1 %931  ;;  %v798_v56 = vld [vmem:[#allocation4 + $0x18] sm:$0xff] }
 0x1f4   : > { %v517_v37 = vpop.permute.xlu0 %516 }
 0x1f5   : > { %v956_v40 = vpop.permute.xlu1 %955  ;;  %v2645_v43 = vld [vmem:[#allocation4 + $0x20] sm:$0xff]  ;;  %519 = vst.msk [vmem:[#allocation4 + $0xc] sm:$0xf] %vm484_vm3, %v517_v37 }
 0x1f6   : > { %904 = vst.msk [vmem:[#allocation4 + $0x24] sm:$0xf] %vm484_vm3, %v2537_v2  ;;  %v2237_v42 = vpack.c.bf16 %v2539_v4, %v2645_v43 }
 0x1f8   : > { %v542_v41 = vpop.permute.xlu0 %541 }
 0x1f9   : > { %v1139_v44 = vpop.permute.xlu1 %1138  ;;  %544 = vst.msk [vmem:[#allocation4 + $0x14] sm:$0xf] %vm484_vm3, %v542_v41  ;;  %v1214_v41 = vld [vmem:[#allocation4 + $0x28] sm:$0xff] }
 0x1fc   : > { %v589_v46 = vld [vmem:[#allocation4 + $0x8] sm:$0xff]  ;;  %v737_v47 = vpop.permute.xlu0 %736 }
 0x1fd   : > { %v2651_v48 = vpop.permute.xlu1 %1162  ;;  %715 = vst.msk [vmem:[#allocation4 + $0x8] sm:$0xf] %vm484_vm3, %v713_v26  ;;  %v2219_v49 = vpack.c.bf16 %v589_v46, %v588_v22 }
 0x1ff   : > { %2220 = vmatpush3.bf16.msra.mxu1 %v2219_v49 }
 0x200   : > { %v896_v52 = vpop.permute.xlu0 %895  ;;  %2221 = vmatprep.subr.bf16.mxu1 %v2331_v38 }
 0x201   : > { %v530_v53 = vpop.permute.xlu1 %529  ;;  %898 = vst.msk [vmem:[#allocation4] sm:$0xf] %vm484_vm3, %v896_v52 }
 0x202   : > { %532 = vst.msk [vmem:[#allocation4 + $0x10] sm:$0xf] %vm484_vm3, %v530_v53 }
 0x204   : > { %v920_v2 = vpop.permute.xlu0 %919 }
 0x205   : > { %v725_v55 = vpop.permute.xlu1 %724 }
 0x206   : > { %727 = vst.msk [vmem:[#allocation4 + $0xc] sm:$0xf] %vm484_vm3, %v725_v55 }
 0x208   : > { %v968_v58 = vpop.permute.xlu0 %967 }
 0x209   : > { %v590_v57 = vld [vmem:[#allocation4 + $0x10] sm:$0xff]  ;;  %v749_v59 = vpop.permute.xlu1 %748  ;;  %970 = vst.msk [vmem:[#allocation4 + $0x18] sm:$0xf] %vm484_vm3, %v968_v58 }
 0x20a   : > { %739 = vst.msk [vmem:[#allocation4 + $0x10] sm:$0xf] %vm484_vm3, %v737_v47  ;;  %751 = vst.msk [vmem:[#allocation4 + $0x14] sm:$0xf] %vm484_vm3, %v749_v59  ;;  %v2222_v60 = vpack.c.bf16 %v591_v29, %v590_v57 }
 0x20c   : > { %2223 = vmatpush3.bf16.msra.mxu1 %v2222_v60  ;;  %v1103_v62 = vpop.permute.xlu0 %1102 }
 0x20d   : > { %v796_v61 = vld [vmem:[#allocation4 + $0x8] sm:$0xff]  ;;  %v908_v63 = vpop.permute.xlu1 %907  ;;  %2224 = vmatprep.subr.bf16.mxu1 %v2331_v38 }
 0x20e   : > { %934 = vst.msk [vmem:[#allocation4 + $0xc] sm:$0xf] %vm484_vm3, %v932_v36  ;;  %922 = vst.msk [vmem:[#allocation4 + $0x8] sm:$0xf] %vm484_vm3, %v920_v2  ;;  %v2231_v1 = vpack.c.bf16 %v796_v61, %v795_v51  ;;  %v1208_v51 = vld [vmem:[%s2895_s5] sm:$0xf] }
 0x20f   : > { %910 = vst.msk [vmem:[#allocation4 + $0x4] sm:$0xf] %vm484_vm3, %v908_v63 }
 0x210   : > { %2226 = vmatpush3.bf16.msra.mxu1 %v2225_v0  ;;  %2232 = vmatpush3.bf16.msra.mxu0 %v2231_v1  ;;  %v1127_v5 = vpop.permute.xlu0 %1126 }
 0x211   : > { %v797_v3 = vld [vmem:[#allocation4 + $0x10] sm:$0xff]  ;;  %v980_v7 = vpop.permute.xlu1 %979  ;;  %2227 = vmatprep.subr.bf16.mxu1 %v2331_v38  ;;  %2233 = vmatprep.subr.bf16.mxu0 %v2331_v38 }
 0x212   : > { %946 = vst.msk [vmem:[#allocation4 + $0x10] sm:$0xf] %vm484_vm3, %v944_v33  ;;  %958 = vst.msk [vmem:[#allocation4 + $0x14] sm:$0xf] %vm484_vm3, %v956_v40  ;;  %v2234_v39 = vpack.c.bf16 %v798_v56, %v797_v3  ;;  %v1001_v33 = vld [vmem:[%s2895_s5] sm:$0xf] }
 0x213   : > { %982 = vst.msk [vmem:[#allocation4 + $0x1c] sm:$0xf] %vm484_vm3, %v980_v7 }
 0x214   : > { %2229 = vmatpush3.bf16.msra.mxu1 %v2228_v10  ;;  %2235 = vmatpush3.bf16.msra.mxu0 %v2234_v39  ;;  %v1175_v14 = vpop.permute.xlu0 %1174 }
 0x215   : > { %v1003_v13 = vld [vmem:[#allocation4 + $0x8] sm:$0xff]  ;;  %v992_v15 = vpop.permute.xlu1 %991  ;;  %2098 = vmatprep.subr.mxu1 %v2327_v27  ;;  %2236 = vmatprep.subr.bf16.mxu0 %v2331_v38 }
 0x216   : > { %v1002_v11 = vld [vmem:[#allocation4] sm:$0xff]  ;;  %1129 = vst.msk [vmem:[#allocation4 + $0x8] sm:$0xf] %vm484_vm3, %v1127_v5  ;;  %1141 = vst.msk [vmem:[#allocation4 + $0xc] sm:$0xf] %vm484_vm3, %v1139_v44 }
 0x217   : > { %1105 = vst.msk [vmem:[#allocation4] sm:$0xf] %vm484_vm3, %v1103_v62  ;;  %994 = vst.msk [vmem:[#allocation4 + $0x20] sm:$0xf] %vm484_vm3, %v992_v15  ;;  %v2243_v16 = vpack.c.bf16 %v1003_v13, %v1002_v11 }
 0x218   : > { %2099 = vmatpush3.msra.mxu1 %v2510_v50  ;;  %2238 = vmatpush3.bf16.msra.mxu0 %v2237_v42  ;;  %v1145_v21 = vpop.permute.xlu0 %1144  ;;  %v2240_v50 = vpack.c.bf16 %v2545_v8, %v2542_v6  ;;  %v794_v6 = vld [vmem:[%s2895_s5] sm:$0xf] }
 0x219   : > { %v1004_v17 = vld [vmem:[#allocation4 + $0x10] sm:$0xff]  ;;  %2101 = vmatmul.mubr.msk.f32.vlgmr.msra.gmra.mrb[0].mxu1 %vm603_vm7, %v587_v45  ;;  %2242 = vmatprep.subr.bf16.mxu1 %v2331_v38  ;;  %v1115_v19 = vpop.permute.xlu1 %1114  ;;  %1147 = vst.msk [vmem:[#allocation4 + $0x30] sm:$0xf] %vm484_vm3, %v1145_v21 }
 0x21a   : > { %v1005_v18 = vld [vmem:[#allocation4 + $0x18] sm:$0xff]  ;;  %1165 = vst.msk [vmem:[#allocation4 + $0x14] sm:$0xf] %vm484_vm3, %v2651_v48  ;;  %1153 = vst.msk [vmem:[#allocation4 + $0x10] sm:$0xf] %vm484_vm3, %v2643_v35  ;;  %2244 = vmatpush3.bf16.msra.mxu1 %v2243_v16  ;;  %2239 = vmatprep.subr.bf16.mxu0 %v2331_v38 }
 0x21b   : > { %1177 = vst.msk [vmem:[#allocation4 + $0x18] sm:$0xf] %vm484_vm3, %v1175_v14  ;;  %1117 = vst.msk [vmem:[#allocation4 + $0x4] sm:$0xf] %vm484_vm3, %v1115_v19  ;;  %2245 = vmatprep.subr.bf16.mxu1 %v2331_v38  ;;  %2142 = vmatprep.mubr.msk.f32.mxu1 %vm2332_vm6, %v2327_v27  ;;  %v2246_v4 = vpack.c.bf16 %v1005_v18, %v1004_v17 }
 0x21c   : > { %2241 = vmatpush3.bf16.msra.mxu0 %v2240_v50  ;;  %v1169_v26 = vpop.permute.xlu0 %1168 }
 0x21d   : > { %v1157_v22 = vpop.permute.xlu1 %1156  ;;  %2119 = vmatprep.subr.mxu0 %v2327_v27  ;;  %1171 = vst.msk [vmem:[#allocation4 + $0x38] sm:$0xf] %vm484_vm3, %v1169_v26  ;;  %v1210_v30 = vld [vmem:[#allocation4 + $0x8] sm:$0xff] }
 0x21e   : > { %v1006_v23 = vld [vmem:[#allocation4 + $0x20] sm:$0xff]  ;;  %1159 = vst.msk [vmem:[#allocation4 + $0x34] sm:$0xf] %vm484_vm3, %v1157_v22  ;;  %2247 = vmatpush3.bf16.msra.mxu1 %v2246_v4 }
 0x21f   : > { %1111 = vst.msk [vmem:[#allocation4 + $0x24] sm:$0xf] %vm484_vm3, %v2548_v9  ;;  %2248 = vmatprep.subr.bf16.mxu1 %v2331_v38  ;;  %v2249_v8 = vpack.c.bf16 %v2566_v25, %v1006_v23 }
 0x220   : > { %2120 = vmatpush3.msra.mxu0 %v2550_v12  ;;  %v1193_v32 = vpop.permute.xlu0 %1192  ;;  %v2252_v12 = vpack.c.bf16 %v1009_v24, %v1008_v20 }
 0x221   : > { %2122 = vmatmul.mubr.msk.f32.vlgmr.msra.gmra.mrb[2].mxu0 %vm603_vm7, %v794_v6  ;;  %v1187_v28 = vpop.permute.xlu1 %1186  ;;  %2254 = vmatprep.subr.bf16.mxu0 %v2331_v38  ;;  %1195 = vst.msk [vmem:[#allocation4 + $0x40] sm:$0xf] %vm484_vm3, %v1193_v32  ;;  %v1211_v35 = vld [vmem:[#allocation4 + $0x10] sm:$0xff] }
 0x222   : > { %v1209_v29 = vld [vmem:[#allocation4] sm:$0xff]  ;;  %1189 = vst.msk [vmem:[#allocation4 + $0x1c] sm:$0xf] %vm484_vm3, %v1187_v28  ;;  %2250 = vmatpush3.bf16.msra.mxu1 %v2249_v8  ;;  %2163 = vmatprep.mubr.msk.f32.mxu0 %vm2332_vm6, %v2327_v27 }
 0x223   : > { %v2255_v9 = vpack.c.bf16 %v1210_v30, %v1209_v29  ;;  %2251 = vmatprep.subr.bf16.mxu1 %v2331_v38 }
 0x225   : > { %2256 = vmatpush3.bf16.msra.mxu0 %v2255_v9  ;;  %v1199_v25 = vpop.permute.xlu1 %1198  ;;  %v1215_v46 = vld [vmem:[#allocation4 + $0x30] sm:$0xff] }
 0x226   : > { %2257 = vmatprep.subr.bf16.mxu0 %v2331_v38  ;;  %1201 = vst.msk [vmem:[#allocation4 + $0x20] sm:$0xf] %vm484_vm3, %v1199_v25  ;;  %2253 = vmatpush3.bf16.msra.mxu1 %v2252_v12 }
 0x227   : > { %2140 = vmatprep.subr.mxu1 %v2327_v27 }
 0x229   : > { %v1181_v34 = vpop.permute.xlu1 %1180  ;;  %v1212_v36 = vld [vmem:[#allocation4 + $0x18] sm:$0xff] }
 0x22a   : > { %1183 = vst.msk [vmem:[#allocation4 + $0x3c] sm:$0xf] %vm484_vm3, %v1181_v34  ;;  %2141 = vmatpush3.msra.mxu1 %v1010_v31  ;;  %v2258_v37 = vpack.c.bf16 %v1212_v36, %v1211_v35 }
 0x22b   : > { %2143 = vmatmul.mubr.msk.f32.vlgmr.msra.gmra.mrb[2].mxu1 %vm603_vm7, %v1001_v33  ;;  %2266 = vmatprep.subr.bf16.mxu1 %v2331_v38 }
 0x22c   : > { %2259 = vmatpush3.bf16.msra.mxu0 %v2258_v37  ;;  %2176 = vmatprep.mubr.msk.f32.mxu1 %vm2332_vm6, %v2327_v27 }
 0x22d   : > { %2260 = vmatprep.subr.bf16.mxu0 %v2331_v38  ;;  %v1205_v40 = vpop.permute.xlu1 %1204  ;;  %v1213_v43 = vld [vmem:[#allocation4 + $0x20] sm:$0xff] }
 0x22e   : > { %1207 = vst.msk [vmem:[#allocation4 + $0x44] sm:$0xf] %vm484_vm3, %v1205_v40  ;;  %v2261_v44 = vpack.c.bf16 %v1214_v41, %v1213_v43 }
 0x230   : > { %2262 = vmatpush3.bf16.msra.mxu0 %v2261_v44 }
 0x231   : > { %2263 = vmatprep.subr.bf16.mxu0 %v2331_v38  ;;  %v1216_v47 = vld [vmem:[#allocation4 + $0x38] sm:$0xff]  ;;  %v808_v2 = vpop.permute.xlu0 %807 }
 0x232   : > { %v2264_v48 = vpack.c.bf16 %v1216_v47, %v1215_v46 }
 0x234   : > { %2265 = vmatpush3.bf16.msra.mxu0 %v2264_v48 }
 0x235   : > { %2161 = vmatprep.subr.mxu0 %v2327_v27  ;;  %v1217_v49 = vld [vmem:[#allocation4 + $0x40] sm:$0xff]  ;;  %v1222_v39 = vpop.permute.xlu0 %1221 }
 0x238   : > { %2162 = vmatpush3.msra.mxu0 %v1217_v49 }
 0x239   : > { %2164 = vmatmul.mubr.msk.f32.vlgmr.msra.gmra.mrb[4].mxu0 %vm603_vm7, %v1208_v51  ;;  %2272 = vmatprep.subr.bf16.mxu0 %v2331_v38 }
 0x23a   : > { %2189 = vmatprep.mubr.msk.f32.mxu0 %vm2332_vm6, %v2327_v27 }
 0x23e   : > { %v1015_v58 = vpop.permute.xlu1 %1014 }
 0x242   : > { %v601_v61 = vpop.permute.xlu1 %600 }
 0x2ec   : > { %v673_v52 = vpop.f32.mrb[0].mxu1 }
 0x2ed   : > { %v2102_v53 = vpop.f32.mrb[1].mxu1  ;;  %v674_v63 = vadd.f32 %v673_v52, %v601_v61 }
 0x2ee   : > { %v1363_v53 = vld [vmem:[%s2898_s8] sm:$0xf] }
 0x2ef   : > { %v677_v5 = vmax.f32 %v674_v63, 0.0 }
 0x2f1   : > { %v678_v10 = vmul.f32 %v2521_v54, %v677_v5 }
 0x2f4   : > { %v879_v55 = vpop.f32.mrb[2].mxu0 }
 0x2f5   : > { %v880_v56 = vadd.f32 %v879_v55, %v808_v2  ;;  %v2123_v57 = vpop.f32.mrb[3].mxu0  ;;  %v1509_v55 = vld [vmem:[%s2898_s8] sm:$0xf] }
 0x2f6   : > { %v1799_v57 = vld [vmem:[%s2898_s8] sm:$0xf] }
 0x2f7   : > { %v883_v59 = vmax.f32 %v880_v56, 0.0  ;;  %v1654_v56 = vld [vmem:[%s2898_s8] sm:$0xf] }
 0x2f9   : > { %v884_v60 = vmul.f32 %v2521_v54, %v883_v59 }
 0x2fb   : > { %889 = vrot.lane.b32.xlu0 %v884_v60, %s2329_s16 }
 0x2fe   : > { %v1086_v62 = vpop.f32.mrb[2].mxu1 }
 0x2ff   : > { %v1087_v0 = vadd.f32 %v1086_v62, %v1015_v58  ;;  %v2144_v1 = vpop.f32.mrb[3].mxu1 }
 0x301   : > { %v1090_v3 = vmax.f32 %v1087_v0, 0.0 }
 0x303   : > { %v1091_v7 = vmul.f32 %v2521_v54, %v1090_v3 }
 0x305   : > { %1096 = vrot.lane.b32.xlu1 %v1091_v7, %s2329_s16 }
 0x309   : > { %682 = vrot.lane.b32.xlu1 %v678_v10, %s2329_s16 }
 0x30c   : > { %v1293_v11 = vpop.f32.mrb[4].mxu0 }
 0x30d   : > { %v1294_v13 = vadd.f32 %v1293_v11, %v1222_v39  ;;  %v2165_v14 = vpop.f32.mrb[5].mxu0 }
 0x30f   : > { %v1297_v15 = vmax.f32 %v1294_v13, 0.0 }
 0x311   : > { %v1298_v42 = vmul.f32 %v2521_v54, %v1297_v15 }
 0x313   : > { %1303 = vrot.lane.b32.xlu0 %v1298_v42, %s2329_s16 }
 0x36d   : > { %v890_v45 = vpop.permute.xlu0 %889 }
 0x36e   : > { %892 = vst.msk [vmem:[#allocation3 + $0x4] sm:$0xf] %vm464_vm4, %v890_v45 }
 0x375   : > { %v1321_v50 = vld [vmem:[#allocation3 + $0x4] sm:$0xf] }
 0x376   : > { %v1333_v23 = vld [vmem:[#allocation3 + $0x4] sm:$0xf] }
 0x377   : > { %v1097_v16 = vpop.permute.xlu1 %1096  ;;  %v1473_v26 = vld [vmem:[#allocation3 + $0x4] sm:$0xf] }
 0x378   : > { %1099 = vst.msk [vmem:[#allocation3 + $0x8] sm:$0xf] %vm464_vm4, %v1097_v16  ;;  %v1630_v6 = vld [vmem:[#allocation3 + $0x4] sm:$0xf] }
 0x379   : > { %v1594_v8 = vld [vmem:[#allocation3 + $0x4] sm:$0xf] }
 0x37a   : > { %v1606_v29 = vld [vmem:[#allocation3 + $0x4] sm:$0xf] }
 0x37b   : > { %v683_v17 = vpop.permute.xlu1 %682  ;;  %v1745_v40 = vld [vmem:[#allocation3 + $0x4] sm:$0xf] }
 0x37c   : > { %685 = vst.msk [vmem:[#allocation3] sm:$0xf] %vm464_vm4, %v683_v17  ;;  %v1642_v47 = vld [vmem:[#allocation3 + $0x4] sm:$0xf] }
 0x37d   : > { %v1781_v52 = vld [vmem:[#allocation3 + $0x4] sm:$0xf] }
 0x37f   : > { %v1449_v28 = vld [vmem:[#allocation3 + $0x8] sm:$0xf] }
 0x380   : > { %v1461_v30 = vld [vmem:[#allocation3 + $0x8] sm:$0xf] }
 0x381   : > { %v1309_v31 = vld [vmem:[#allocation3 + $0x8] sm:$0xf] }
 0x382   : > { %v1618_v32 = vld [vmem:[#allocation3 + $0x8] sm:$0xf] }
 0x383   : > { %v1467_v18 = vld [vmem:[#allocation3] sm:$0xf]  ;;  %v1345_v9 = vld [vmem:[#allocation3 + $0x8] sm:$0xf] }
 0x384   : > { %v1327_v19 = vld [vmem:[#allocation3] sm:$0xf]  ;;  %1469 = vrot.lane.b32.xlu0 %v1467_v18, %s2323_s28  ;;  %v1485_v25 = vld [vmem:[#allocation3 + $0x8] sm:$0xf] }
 0x385   : > { %1329 = vrot.lane.b32.xlu1 %v1327_v19, %s2323_s28  ;;  %v1304_v20 = vpop.permute.xlu0 %1303  ;;  %v1636_v54 = vld [vmem:[#allocation3] sm:$0xf]  ;;  %v1497_v34 = vld [vmem:[#allocation3 + $0x8] sm:$0xf] }
 0x386   : > { %1306 = vst.msk [vmem:[#allocation3 + $0xc] sm:$0xf] %vm464_vm4, %v1304_v20  ;;  %v1479_v21 = vld [vmem:[#allocation3] sm:$0xf]  ;;  %v1757_v41 = vld [vmem:[#allocation3 + $0x8] sm:$0xf] }
 0x387   : > { %v1600_v4 = vld [vmem:[#allocation3] sm:$0xf]  ;;  %v1769_v49 = vld [vmem:[#allocation3 + $0x8] sm:$0xf] }
 0x388   : > { %1638 = vrot.lane.b32.xlu0 %v1636_v54, %s2328_s13  ;;  %v1739_v24 = vld [vmem:[#allocation3] sm:$0xf] }
 0x389   : > { %1481 = vrot.lane.b32.xlu1 %v1479_v21, %s2326_s12  ;;  %v1751_v35 = vld [vmem:[#allocation3] sm:$0xf] }
 0x38a   : > { %v1775_v51 = vld [vmem:[#allocation3] sm:$0xf] }
 0x38b   : > { %v1787_v2 = vld [vmem:[#allocation3] sm:$0xf] }
 0x38c   : > { %1323 = vrot.lane.b32.xlu0 %v1321_v50, %s2324_s29 }
 0x38d   : > { %1602 = vrot.lane.b32.xlu1 %v1600_v4, %s2323_s28  ;;  %v1307_v22 = vld [vmem:[#allocation3 + $0xc] sm:$0xf] }
 0x38e   : > { %1308 = vst.msk [vmem:[#allocation4] sm:$0xf] %vm484_vm3, %v1307_v22  ;;  %v1315_v12 = vld [vmem:[#allocation3 + $0xc] sm:$0xf] }
 0x38f   : > { %v1339_v33 = vld [vmem:[#allocation3 + $0xc] sm:$0xf] }
 0x390   : > { %1335 = vrot.lane.b32.xlu0 %v1333_v23, %s2323_s28  ;;  %v1455_v36 = vld [vmem:[#allocation3 + $0xc] sm:$0xf] }
 0x391   : > { %1741 = vrot.lane.b32.xlu1 %v1739_v24, %s2323_s28  ;;  %v1351_v37 = vld [vmem:[#allocation3 + $0xc] sm:$0xf] }
 0x392   : > { %v1491_v43 = vld [vmem:[#allocation3 + $0xc] sm:$0xf] }
 0x393   : > { %v1612_v44 = vld [vmem:[#allocation3 + $0xc] sm:$0xf] }
 0x394   : > { %1475 = vrot.lane.b32.xlu0 %v1473_v26, %s2323_s28  ;;  %v1624_v46 = vld [vmem:[#allocation3 + $0xc] sm:$0xf] }
 0x395   : > { %1632 = vrot.lane.b32.xlu1 %v1630_v6, %s2330_s17  ;;  %v1763_v48 = vld [vmem:[#allocation3 + $0xc] sm:$0xf] }
 0x398   : > { %1596 = vrot.lane.b32.xlu0 %v1594_v8, %s2324_s29 }
 0x399   : > { %1451 = vrot.lane.b32.xlu1 %v1449_v28, %s2322_s27  ;;  %v1357_v28 = vld [vmem:[%s2897_s7] sm:$0xf] }
 0x39c   : > { %1608 = vrot.lane.b32.xlu0 %v1606_v29, %s2323_s28 }
 0x39d   : > { %1463 = vrot.lane.b32.xlu1 %v1461_v30, %s2325_s11 }
 0x3a0   : > { %1311 = vrot.lane.b32.xlu0 %v1309_v31, %s2322_s27 }
 0x3a1   : > { %1620 = vrot.lane.b32.xlu1 %v1618_v32, %s2323_s28 }
 0x3a4   : > { %1347 = vrot.lane.b32.xlu0 %v1345_v9, %s2323_s28 }
 0x3a5   : > { %1317 = vrot.lane.b32.xlu1 %v1315_v12, %s2322_s27 }
 0x3a8   : > { %1487 = vrot.lane.b32.xlu0 %v1485_v25, %s2323_s28 }
 0x3a9   : > { %1341 = vrot.lane.b32.xlu1 %v1339_v33, %s2324_s29 }
 0x3ac   : > { %1499 = vrot.lane.b32.xlu0 %v1497_v34, %s2326_s12 }
 0x3ad   : > { %1753 = vrot.lane.b32.xlu1 %v1751_v35, %s2326_s12 }
 0x3b0   : > { %1457 = vrot.lane.b32.xlu0 %v1455_v36, %s2322_s27  ;;  %s349_s27 = scalar_lea.vmem %s2899_s9, %s2008_s18 }
 0x3b1   : > { %1353 = vrot.lane.b32.xlu1 %v1351_v37, %s2323_s28 }
 0x3b4   : > { %1747 = vrot.lane.b32.xlu0 %v1745_v40, %s2323_s28 }
 0x3b5   : > { %1493 = vrot.lane.b32.xlu1 %v1491_v43, %s2323_s28 }
 0x3b8   : > { %1759 = vrot.lane.b32.xlu0 %v1757_v41, %s2323_s28 }
 0x3b9   : > { %1614 = vrot.lane.b32.xlu1 %v1612_v44, %s2324_s29  ;;  %v1503_v44 = vld [vmem:[%s2897_s7] sm:$0xf] }
 0x3bc   : > { %1626 = vrot.lane.b32.xlu0 %v1624_v46, %s2323_s28 }
 0x3bd   : > { %1644 = vrot.lane.b32.xlu1 %v1642_v47, %s2328_s13 }
 0x3c0   : > { %1765 = vrot.lane.b32.xlu0 %v1763_v48, %s2323_s28 }
 0x3c1   : > { %1771 = vrot.lane.b32.xlu1 %v1769_v49, %s2326_s12 }
 0x3c4   : > { %1777 = vrot.lane.b32.xlu0 %v1775_v51, %s2328_s13 }
 0x3c5   : > { %1783 = vrot.lane.b32.xlu1 %v1781_v52, %s2328_s13 }
 0x3c8   : > { %1789 = vrot.lane.b32.xlu0 %v1787_v2, %s2333_s21 }
 0x3c9   : > { %1366 = vperm.xlu1 %2312, %v1363_v53  }
 0x3cc   : > { %1512 = vperm.xlu0 %2311, %v1509_v55  }
 0x3cd   : > { %1657 = vperm.xlu1 %2312, %v1654_v56  }
 0x3d0   : > { %1802 = vperm.xlu0 %2311, %v1799_v57   ;;  %v1648_v57 = vld [vmem:[%s2897_s7] sm:$0xf] }
 0x3f6   : > { %v1470_v58 = vpop.permute.xlu0 %1469 }
 0x3f7   : > { %v1330_v59 = vpop.permute.xlu1 %1329 }
 0x3f8   : > { %1332 = vst.msk [vmem:[#allocation4 + $0x10] sm:$0xf] %vm484_vm3, %v1330_v59 }
 0x3fa   : > { %v2801_v60 = vpop.permute.xlu0 %1638 }
 0x3fb   : > { %v1482_v61 = vpop.permute.xlu1 %1481 }
 0x3fe   : > { %v1324_v62 = vpop.permute.xlu0 %1323 }
 0x3ff   : > { %v1603_v63 = vpop.permute.xlu1 %1602  ;;  %1326 = vst.msk [vmem:[#allocation4 + $0xc] sm:$0xf] %vm484_vm3, %v1324_v62 }
 0x402   : > { %v1336_v0 = vpop.permute.xlu0 %1335 }
 0x403   : > { %v2804_v1 = vpop.permute.xlu1 %1741  ;;  %1338 = vst.msk [vmem:[#allocation4 + $0x14] sm:$0xf] %vm484_vm3, %v1336_v0 }
 0x406   : > { %v1476_v3 = vpop.permute.xlu0 %1475 }
 0x407   : > { %v2807_v5 = vpop.permute.xlu1 %1632 }
 0x40a   : > { %v1360_v7 = vld [vmem:[#allocation4 + $0x10] sm:$0xff]  ;;  %v1597_v10 = vpop.permute.xlu0 %1596 }
 0x40b   : > { %v1452_v39 = vpop.permute.xlu1 %1451  ;;  %1478 = vst.msk [vmem:[#allocation4 + $0x10] sm:$0xf] %vm484_vm3, %v1476_v3  ;;  %1484 = vst.msk [vmem:[#allocation4 + $0x14] sm:$0xf] %vm484_vm3, %v1482_v61  ;;  %v1793_v61 = vld [vmem:[%s2897_s7] sm:$0xf] }
 0x40e   : > { %v1609_v11 = vpop.permute.xlu0 %1608 }
 0x40f   : > { %v1464_v13 = vpop.permute.xlu1 %1463 }
 0x412   : > { %v1312_v14 = vpop.permute.xlu0 %1311  ;;  %v1506_v42 = vld [vmem:[#allocation4 + $0x10] sm:$0xff] }
 0x413   : > { %v1621_v15 = vpop.permute.xlu1 %1620  ;;  %1314 = vst.msk [vmem:[#allocation4 + $0x4] sm:$0xf] %vm484_vm3, %v1312_v14 }
 0x414   : > { %1623 = vst.msk [vmem:[#allocation4 + $0x10] sm:$0xf] %vm484_vm3, %v1621_v15 }
 0x416   : > { %v1348_v45 = vpop.permute.xlu0 %1347 }
 0x417   : > { %v1318_v16 = vpop.permute.xlu1 %1317  ;;  %1350 = vst.msk [vmem:[#allocation4 + $0x1c] sm:$0xf] %vm484_vm3, %v1348_v45 }
 0x418   : > { %1320 = vst.msk [vmem:[#allocation4 + $0x8] sm:$0xf] %vm484_vm3, %v1318_v16 }
 0x41a   : > { %v1488_v17 = vpop.permute.xlu0 %1487  ;;  %v1358_v19 = vld [vmem:[#allocation4] sm:$0xff] }
 0x41b   : > { %v1342_v18 = vpop.permute.xlu1 %1341  ;;  %1454 = vst.msk [vmem:[#allocation4] sm:$0xf] %vm484_vm3, %v1452_v39 }
 0x41c   : > { %1344 = vst.msk [vmem:[#allocation4 + $0x18] sm:$0xf] %vm484_vm3, %v1342_v18 }
 0x41e   : > { %v1500_v20 = vpop.permute.xlu0 %1499 }
 0x41f   : > { %v1754_v54 = vpop.permute.xlu1 %1753  ;;  %v1359_v21 = vld [vmem:[#allocation4 + $0x8] sm:$0xff] }
 0x420   : > { %v2267_v50 = vpack.c.bf16 %v1359_v21, %v1358_v19  ;;  %1466 = vst.msk [vmem:[#allocation4 + $0x8] sm:$0xf] %vm484_vm3, %v1464_v13  ;;  %1472 = vst.msk [vmem:[#allocation4 + $0xc] sm:$0xf] %vm484_vm3, %v1470_v58 }
 0x422   : > { %2268 = vmatpush3.bf16.msra.mxu1 %v2267_v50  ;;  %v1458_v4 = vpop.permute.xlu0 %1457 }
 0x423   : > { %v1354_v22 = vpop.permute.xlu1 %1353  ;;  %2269 = vmatprep.subr.bf16.mxu1 %v2331_v38  ;;  %v1361_v23 = vld [vmem:[#allocation4 + $0x18] sm:$0xff]  ;;  %1460 = vst.msk [vmem:[#allocation4 + $0x4] sm:$0xf] %vm484_vm3, %v1458_v4 }
 0x424   : > { %1356 = vst.msk [vmem:[#allocation4 + $0x20] sm:$0xf] %vm484_vm3, %v1354_v22  ;;  %v2270_v24 = vpack.c.bf16 %v1361_v23, %v1360_v7  ;;  %1490 = vst.msk [vmem:[#allocation4 + $0x18] sm:$0xf] %vm484_vm3, %v1488_v17 }
 0x426   : > { %2271 = vmatpush3.bf16.msra.mxu1 %v2270_v24  ;;  %v1748_v26 = vpop.permute.xlu0 %1747 }
 0x427   : > { %v1494_v6 = vpop.permute.xlu1 %1493  ;;  %2174 = vmatprep.subr.mxu1 %v2327_v27  ;;  %v1505_v8 = vld [vmem:[#allocation4 + $0x8] sm:$0xff] }
 0x428   : > { %1496 = vst.msk [vmem:[#allocation4 + $0x1c] sm:$0xf] %vm484_vm3, %v1494_v6  ;;  %1611 = vst.msk [vmem:[#allocation4 + $0x8] sm:$0xf] %vm484_vm3, %v1609_v11 }
 0x42a   : > { %v1760_v29 = vpop.permute.xlu0 %1759  ;;  %v1504_v32 = vld [vmem:[#allocation4] sm:$0xff] }
 0x42b   : > { %v1615_v30 = vpop.permute.xlu1 %1614  ;;  %v1362_v31 = vld [vmem:[#allocation4 + $0x20] sm:$0xf]  ;;  %v2273_v9 = vpack.c.bf16 %v1505_v8, %v1504_v32  ;;  %1599 = vst.msk [vmem:[#allocation4] sm:$0xf] %vm484_vm3, %v1597_v10  ;;  %1605 = vst.msk [vmem:[#allocation4 + $0x4] sm:$0xf] %vm484_vm3, %v1603_v63 }
 0x42c   : > { %2175 = vmatpush3.msk.msra.mxu1 %vm1373_vm8, %v1362_v31  ;;  %1502 = vst.msk [vmem:[#allocation4 + $0x20] sm:$0xf] %vm484_vm3, %v1500_v20  ;;  %1617 = vst.msk [vmem:[#allocation4 + $0xc] sm:$0xf] %vm484_vm3, %v1615_v30 }
 0x42d   : > { %2177 = vmatmul.mubr.msk.f32.vlgmr.msra.gmra.mrb[4].mxu1 %vm1369_vm9, %v1357_v28  ;;  %2278 = vmatprep.subr.bf16.mxu1 %v2331_v38 }
 0x42e   : > { %2274 = vmatpush3.bf16.msra.mxu0 %v2273_v9  ;;  %2202 = vmatprep.mubr.msk.f32.mxu1 %vm2332_vm6, %v2327_v27  ;;  %v1627_v12 = vpop.permute.xlu0 %1626 }
 0x42f   : > { %v1645_v25 = vpop.permute.xlu1 %1644  ;;  %2275 = vmatprep.subr.bf16.mxu0 %v2331_v38  ;;  %v1507_v33 = vld [vmem:[#allocation4 + $0x18] sm:$0xff]  ;;  %1629 = vst.msk [vmem:[#allocation4 + $0x14] sm:$0xf] %vm484_vm3, %v1627_v12 }
 0x430   : > { %v2276_v34 = vpack.c.bf16 %v1507_v33, %v1506_v42  ;;  %1635 = vst.msk [vmem:[#allocation4 + $0x18] sm:$0xf] %vm484_vm3, %v2807_v5  ;;  %1641 = vst.msk [vmem:[#allocation4 + $0x1c] sm:$0xf] %vm484_vm3, %v2801_v60 }
 0x432   : > { %2277 = vmatpush3.bf16.msra.mxu0 %v2276_v34  ;;  %v1766_v35 = vpop.permute.xlu0 %1765  ;;  %v1649_v40 = vld [vmem:[#allocation4] sm:$0xff] }
 0x433   : > { %v1772_v36 = vpop.permute.xlu1 %1771  ;;  %2187 = vmatprep.subr.mxu0 %v2327_v27  ;;  %v1508_v37 = vld [vmem:[#allocation4 + $0x20] sm:$0xf]  ;;  %v1650_v43 = vld [vmem:[#allocation4 + $0x8] sm:$0xff]  ;;  %1744 = vst.msk [vmem:[#allocation4] sm:$0xf] %vm484_vm3, %v2804_v1 }
 0x434   : > { %1647 = vst.msk [vmem:[#allocation4 + $0x20] sm:$0xf] %vm484_vm3, %v1645_v25  ;;  %v2279_v41 = vpack.c.bf16 %v1650_v43, %v1649_v40  ;;  %1750 = vst.msk [vmem:[#allocation4 + $0x4] sm:$0xf] %vm484_vm3, %v1748_v26 }
 0x435   : > { %1756 = vst.msk [vmem:[#allocation4 + $0x8] sm:$0xf] %vm484_vm3, %v1754_v54  ;;  %1762 = vst.msk [vmem:[#allocation4 + $0xc] sm:$0xf] %vm484_vm3, %v1760_v29 }
 0x436   : > { %2188 = vmatpush3.msk.msra.mxu0 %vm1373_vm8, %v1508_v37  ;;  %2280 = vmatpush3.bf16.msra.mxu1 %v2279_v41  ;;  %v1778_v46 = vpop.permute.xlu0 %1777  ;;  %v1651_v48 = vld [vmem:[#allocation4 + $0x10] sm:$0xff] }
 0x437   : > { %2190 = vmatmul.mubr.msk.f32.vlgmr.msra.gmra.mrb[6].mxu0 %vm1369_vm9, %v1503_v44  ;;  %v1784_v47 = vpop.permute.xlu1 %1783  ;;  %2281 = vmatprep.subr.bf16.mxu1 %v2331_v38  ;;  %v1652_v49 = vld [vmem:[#allocation4 + $0x18] sm:$0xff]  ;;  %1768 = vst.msk [vmem:[#allocation4 + $0x10] sm:$0xf] %vm484_vm3, %v1766_v35  ;;  %1774 = vst.msk [vmem:[#allocation4 + $0x14] sm:$0xf] %vm484_vm3, %v1772_v36 }
 0x438   : > { %v2282_v51 = vpack.c.bf16 %v1652_v49, %v1651_v48  ;;  %1780 = vst.msk [vmem:[#allocation4 + $0x18] sm:$0xf] %vm484_vm3, %v1778_v46  ;;  %1786 = vst.msk [vmem:[#allocation4 + $0x1c] sm:$0xf] %vm484_vm3, %v1784_v47  ;;  %2284 = vmatprep.subr.bf16.mxu0 %v2331_v38  ;;  %2215 = vmatprep.mubr.msk.f32.mxu0 %vm2332_vm6, %v2327_v27 }
 0x43a   : > { %2283 = vmatpush3.bf16.msra.mxu1 %v2282_v51  ;;  %v1790_v52 = vpop.permute.xlu0 %1789 }
 0x43b   : > { %2200 = vmatprep.subr.mxu1 %v2327_v27  ;;  %v1653_v53 = vld [vmem:[#allocation4 + $0x20] sm:$0xf] }
 0x43c   : > { %v1794_v2 = vld [vmem:[#allocation4] sm:$0xff]  ;;  %v1795_v55 = vld [vmem:[#allocation4 + $0x8] sm:$0xff]  ;;  %1792 = vst.msk [vmem:[#allocation4 + $0x20] sm:$0xf] %vm484_vm3, %v1790_v52 }
 0x43d   : > { %v2285_v56 = vpack.c.bf16 %v1795_v55, %v1794_v2 }
 0x43e   : > { %2201 = vmatpush3.msk.msra.mxu1 %vm1373_vm8, %v1653_v53  ;;  %v1796_v58 = vld [vmem:[#allocation4 + $0x10] sm:$0xff] }
 0x43f   : > { %2286 = vmatpush3.bf16.msra.mxu0 %v2285_v56  ;;  %2203 = vmatmul.mubr.msk.f32.vlgmr.msra.gmra.mrb[6].mxu1 %vm1369_vm9, %v1648_v57  ;;  %v1797_v59 = vld [vmem:[#allocation4 + $0x18] sm:$0xff] }
 0x440   : > { %2287 = vmatprep.subr.bf16.mxu0 %v2331_v38  ;;  %v2288_v60 = vpack.c.bf16 %v1797_v59, %v1796_v58 }
 0x443   : > { %2289 = vmatpush3.bf16.msra.mxu0 %v2288_v60  ;;  %v1798_v62 = vld [vmem:[#allocation4 + $0x20] sm:$0xf] }
 0x444   : > { %2213 = vmatprep.subr.mxu0 %v2327_v27 }
 0x447   : > { %2214 = vmatpush3.msk.msra.mxu0 %vm1373_vm8, %v1798_v62 }
 0x448   : > { %2216 = vmatmul.mubr.msk.f32.vlgmr.msra.gmra.mrb[8].mxu0 %vm1369_vm9, %v1793_v61  ;;  %v1367_v63 = vpop.permute.xlu1 %1366 }
 0x44b   : > { %v1513_v27 = vpop.permute.xlu0 %1512 }
 0x44c   : > { %v1658_v11 = vpop.permute.xlu1 %1657 }
 0x44f   : > { %v1803_v45 = vpop.permute.xlu0 %1802 }
 0x500   : > { %v1443_v0 = vpop.f32.mrb[4].mxu1 }
 0x501   : > { %v1444_v1 = vadd.f32 %v1443_v0, %v1367_v63  ;;  %v2178_v3 = vpop.f32.mrb[5].mxu1 }
 0x503   : > { %v1447_v38 = vmax.f32 %v1444_v1, 0.0 }
 0x505   : > { %1448 = vst.msk [vmem:[%s349_s27] sm:$0xf] %vm484_vm3, %v1447_v38 }
 0x50a   : > { %v1587_v5 = vpop.f32.mrb[6].mxu0 }
 0x50b   : > { %v1588_v7 = vadd.f32 %v1587_v5, %v1513_v27  ;;  %v2191_v10 = vpop.f32.mrb[7].mxu0 }
 0x50d   : > { %v1591_v39 = vmax.f32 %v1588_v7, 0.0 }
 0x50f   : > { %1999 = vst.msk [vmem:[%s349_s27 + $0x4] sm:$0xf] %vm484_vm3, %v1591_v39 }
 0x512   : > { %v1732_v13 = vpop.f32.mrb[6].mxu1 }
 0x513   : > { %v1733_v14 = vadd.f32 %v1732_v13, %v1658_v11  ;;  %v2204_v15 = vpop.f32.mrb[7].mxu1 }
 0x515   : > { %v1736_v42 = vmax.f32 %v1733_v14, 0.0 }
 0x517   : > { %2002 = vst.msk [vmem:[%s349_s27 + $0x8] sm:$0xf] %vm484_vm3, %v1736_v42 }
 0x51b   : > { %v1877_v16 = vpop.f32.mrb[8].mxu0 }
 0x51c   : > { %v1878_v17 = vadd.f32 %v1877_v16, %v1803_v45  ;;  %v2217_v18 = vpop.f32.mrb[9].mxu0 }
 0x51e   : > { %v1881_v19 = vmax.f32 %v1878_v17, 0.0 }
 0x520   : > { %2005 = vst.msk [vmem:[%s349_s27 + $0xc] sm:$0xf] %vm484_vm3, %v1881_v19 }
 0x521 PF: > { %s19_s30 = sadd.s32 1, %s2319_s30  }
 0x522   : > { %p16_p4 = scmp.ge.s32.totalorder %s19_s30, 4  }
 0x524   :  { %18 = sbr.rel (!%p16_p4) target bundleno = 1 (0x1), region = 101 }

</bundles_post_ra>
